<compile_context>
chip_gen: v5e
topology: v5e:2x2
jax: 0.10.0
libtpu: 0.0.40
codegen_flags: <defaults>
</compile_context>

<pallas_src>
import functools

import jax
import jax.numpy as jnp
from jax.experimental import pallas as pl
from jax.experimental.pallas import tpu as pltpu

_MXU_DTYPE = jnp.bfloat16   # bf16 MXU operands + f32 accumulation.  Set to
                            # jnp.float32 for bit-exact parity with f32 torch.
_NEG_SLOPE = 0.2            # nn.LeakyReLU(0.2) in the reference module.


def _leaky(v):
    return jnp.where(v > 0, v, _NEG_SLOPE * v)


def _mm(a, b):
    """MXU matmul: bf16 (or f32) operands, f32 accumulation."""
    return jnp.dot(a.astype(_MXU_DTYPE), b.astype(_MXU_DTYPE),
                   preferred_element_type=jnp.float32)


def _conv3(x, w_ref, b_ref):
    """Valid Conv1d(K=3) as ONE widened dot: lane-concat im2col of the 3 taps.

    x: (L, Cin) f32 value; w_ref: (3*Cin, Cout) (tap-major rows); b_ref: (1, Cout).
    Returns (L-2, Cout) f32.
    """
    lout = x.shape[0] - 2
    a = jnp.concatenate([x[0:lout], x[1:lout + 1], x[2:lout + 2]], axis=-1)
    return _mm(a, w_ref[...]) + b_ref[...].astype(jnp.float32)


def _interleave_rows(e, o):
    """dense[2s] = e[s], dense[2s+1] = o[s] via a 0/1 permutation matmul
    (sublane-dense result without strided stores)."""
    n = e.shape[0]
    cat = jnp.concatenate([e, o], axis=0)                          # (2n, C)
    row = jax.lax.broadcasted_iota(jnp.int32, (2 * n, 2 * n), 0)
    col = jax.lax.broadcasted_iota(jnp.int32, (2 * n, 2 * n), 1)
    perm = (col == (row >> 1) + (row & 1) * n).astype(jnp.float32)
    return jnp.dot(perm, cat, preferred_element_type=jnp.float32)


def _dec_block(x, sk_ref, lo, wd_ref, bd_ref, w1_ref, b1_ref, w2_ref, b2_ref):
    """Fused decoder block: ConvTranspose1d(2,2) -> crop+concat skip ->
    conv1 -> LReLU -> conv2 -> LReLU, returned as a dense (2*(L-2), Cout) value.

    x: (L, Cin) f32; sk_ref: VMEM ref with the full skip feature (Lt, Csk);
    lo: static center-crop offset.  wd: (Cin, 2*Cup) = [Wd(:, :, 0) | Wd(:, :, 1)],
    w1: (3*Cin, Cout) per-tap rows ordered up-channels-first then skip-channels
    (matches torch.cat([x, encf], dim=1)); w2: (3*Cout, Cout).
    """
    l_in = x.shape[0]
    cup = bd_ref.shape[-1] // 2
    n1, n2 = l_in - 1, l_in - 2

    # ConvTranspose1d(k=2, s=2): up[2s] = y0[s], up[2s+1] = y1[s]; one wide dot.
    y = _mm(x, wd_ref[...]) + bd_ref[...].astype(jnp.float32)     # (L, 2*Cup)
    y0, y1 = y[:, :cup], y[:, cup:]

    # Center-cropped skip, parity-split via sublane-strided VMEM reads.
    s0 = sk_ref[pl.ds(lo, l_in, stride=2), :].astype(jnp.float32)      # skip[lo+2s]
    s1 = sk_ref[pl.ds(lo + 1, l_in, stride=2), :].astype(jnp.float32)  # skip[lo+2s+1]

    # Channel concat (== torch.cat([up, skip], C)) at the 4 needed up-positions.
    pa = jnp.concatenate([y0[:n1], s0[:n1]], axis=-1)   # position 2s
    pb = jnp.concatenate([y1[:n1], s1[:n1]], axis=-1)   # 2s + 1
    pc = jnp.concatenate([y0[1:], s0[1:]], axis=-1)     # 2s + 2
    pd = jnp.concatenate([y1[1:], s1[1:]], axis=-1)     # 2s + 3

    # conv1: even/odd output rows stacked along M, 3 taps lane-concatenated.
    lhs1 = jnp.concatenate(
        [jnp.concatenate([pa, pb], axis=0),
         jnp.concatenate([pb, pc], axis=0),
         jnp.concatenate([pc, pd], axis=0)], axis=-1)              # (2*n1, 3*Cin)
    r1 = _leaky(_mm(lhs1, w1_ref[...]) + b1_ref[...].astype(jnp.float32))
    e1, o1 = r1[:n1], r1[n1:]

    # conv2: same parity-stacked, tap-fused single dot.
    lhs2 = jnp.concatenate(
        [jnp.concatenate([e1[:n2], o1[:n2]], axis=0),
         jnp.concatenate([o1[:n2], e1[1:]], axis=0),
         jnp.concatenate([e1[1:], o1[1:]], axis=0)], axis=-1)      # (2*n2, 3*Cout)
    r2 = _leaky(_mm(lhs2, w2_ref[...]) + b2_ref[...].astype(jnp.float32))
    e2, o2 = r2[:n2], r2[n2:]

    return _interleave_rows(e2, o2)                                # (2*n2, Cout)


def _unet_kernel(*refs, n_enc, n_dec, skip_idx, lo_list, nclass):
    # ref order: x, [enc w1,b1,w2,b2]*n_enc, [dec wd,bd,w1,b1,w2,b2]*n_dec,
    #            head w, head b, out, [feature scratch]*(n_enc-1)
    x_ref = refs[0]
    idx = 1
    enc_p = []
    for _ in range(n_enc):
        enc_p.append(refs[idx:idx + 4]); idx += 4
    dec_p = []
    for _ in range(n_dec):
        dec_p.append(refs[idx:idx + 6]); idx += 6
    wh_ref, bh_ref = refs[idx], refs[idx + 1]
    o_ref = refs[idx + 2]
    feat_refs = refs[idx + 3:]

    # ------------------------------ encoder ------------------------------
    cur = x_ref[0].astype(jnp.float32)                  # (L, Cin0)
    for i in range(n_enc):
        w1, b1, w2, b2 = enc_p[i]
        if cur.shape[1] == 1:
            # Degenerate Cin=1 conv (K=1 matmul): broadcast mult-add on the VPU.
            l1 = cur.shape[0] - 2
            wf = w1[...].astype(jnp.float32)            # (3, C1)
            h = (b1[...].astype(jnp.float32)
                 + cur[0:l1] * wf[0:1]
                 + cur[1:1 + l1] * wf[1:2]
                 + cur[2:2 + l1] * wf[2:3])
        else:
            h = _conv3(cur, w1, b1)
        h = _leaky(h)
        feat = _leaky(_conv3(h, w2, b2))
        if i < n_enc - 1:
            feat_refs[i][...] = feat                    # skip stays in VMEM scratch
            lp = feat.shape[0] // 2
            # MaxPool1d(2) fused via sublane-strided reads of the scratch.
            cur = jnp.maximum(feat_refs[i][pl.ds(0, lp, stride=2), :],
                              feat_refs[i][pl.ds(1, lp, stride=2), :])
        else:
            cur = feat      # last feature feeds the decoder directly (no pool)

    # ------------------------------ decoder ------------------------------
    for i in range(n_dec):
        wd, bd, w1, b1, w2, b2 = dec_p[i]
        cur = _dec_block(cur, feat_refs[skip_idx[i]], lo_list[i],
                         wd, bd, w1, b1, w2, b2)

    # ------------------------------ 1x1 head ------------------------------
    bh = bh_ref[...].astype(jnp.float32)
    if nclass == 1:
        # N=1 matmul is pure MXU push/drain latency -> VPU multiply + XLU reduce.
        wh = wh_ref[...].astype(jnp.float32)            # (1, C)
        out = jnp.sum(cur * wh, axis=-1, keepdims=True) + bh
    else:
        out = _mm(cur, wh_ref[...]) + bh                # wh: (C, nclass)
    o_ref[0] = out.astype(o_ref.dtype)


# --------------------------------- wrapper -----------------------------------

def unet_forward(params, x_ncl):
    """x_ncl: (B, Cin, L) like the PyTorch module; returns (B, num_class, L_out)."""
    x = jnp.transpose(x_ncl, (0, 2, 1))                 # NCL -> NLC (C on lanes)
    bsz, l_in, cin0 = x.shape
    n_enc = len(params["enc"])
    n_dec = len(params["dec"])
    nclass = params["head"]["b"].shape[-1]

    # Static length trace (everything is compile-time constant).
    feat_len, feat_ch = [], []
    l = l_in
    for blk in params["enc"]:
        l -= 4                                          # two valid K=3 convs
        feat_len.append(l)
        feat_ch.append(blk["w2"].shape[-1])
        l //= 2                                         # MaxPool1d(2)
    skip_idx = tuple(range(n_enc - 1))[::-1]
    lo_list = []
    l = feat_len[-1]
    for i in range(n_dec):
        lo_list.append((feat_len[skip_idx[i]] - 2 * l) // 2)   # Decoder.crop
        l = 2 * l - 4                                   # deconv x2 then two convs
    l_out = l

    def full_spec(arr):
        zeros = (0,) * arr.ndim
        return pl.BlockSpec(arr.shape, lambda b: zeros)

    args = [x]
    in_specs = [pl.BlockSpec((1, l_in, cin0), lambda b: (b, 0, 0))]
    for blk in params["enc"]:
        for name in ("w1", "b1", "w2", "b2"):
            args.append(blk[name]); in_specs.append(full_spec(blk[name]))
    for blk in params["dec"]:
        for name in ("wd", "bd", "w1", "b1", "w2", "b2"):
            args.append(blk[name]); in_specs.append(full_spec(blk[name]))
    for name in ("w", "b"):
        args.append(params["head"][name])
        in_specs.append(full_spec(params["head"][name]))

    kernel = functools.partial(_unet_kernel, n_enc=n_enc, n_dec=n_dec,
                               skip_idx=skip_idx, lo_list=tuple(lo_list),
                               nclass=nclass)
    out = pl.pallas_call(
        kernel,
        out_shape=jax.ShapeDtypeStruct((bsz, l_out, nclass), x.dtype),
        grid=(bsz,),
        in_specs=in_specs,
        out_specs=pl.BlockSpec((1, l_out, nclass), lambda b: (b, 0, 0)),
        scratch_shapes=[pltpu.VMEM((feat_len[i], feat_ch[i]), jnp.float32)
                        for i in range(n_enc - 1)],
        compiler_params=pltpu.CompilerParams(
            dimension_semantics=("parallel",)),          # v7x: batch over 2 TCs
    )(*args)
    # TODO(synk): retain_dim=True F.interpolate resize path not implemented
    # (module default retain_dim=False, so this forward path is complete).
    return jnp.transpose(out, (0, 2, 1))                # NLC -> NCL


# ------------------------- parameters (deterministic) -------------------------

def _uniform(key, shape, bound):
    return jax.random.uniform(key, shape, jnp.float32, -bound, bound)


def init_unet_params(key, ch_encoder, ch_decoder, num_class):
    """Params in the layouts the kernel consumes.

    Porting from PyTorch:
      Conv1d weight (Cout, Cin, K)          -> transpose to (K, Cin, Cout), reshape (K*Cin, Cout)
      ConvTranspose1d weight (Cin, Cout, 2) -> wd = concat([W[:,:,0], W[:,:,1]], axis=1)
      decoder conv1 per-tap rows: upsampled channels first, then skip channels
      (matches torch.cat([x, encf], dim=1)); head weight (1, Cin, 1) -> (1, Cin).
    """
    params = {"enc": [], "dec": []}
    for i in range(len(ch_encoder) - 1):
        cin, cout = ch_encoder[i], ch_encoder[i + 1]
        key, k1, k2, k3, k4 = jax.random.split(key, 5)
        bo1 = 1.0 / float(cin * 3) ** 0.5
        bo2 = 1.0 / float(cout * 3) ** 0.5
        params["enc"].append({
            "w1": _uniform(k1, (3 * cin, cout), bo1),
            "b1": _uniform(k2, (1, cout), bo1),
            "w2": _uniform(k3, (3 * cout, cout), bo2),
            "b2": _uniform(k4, (1, cout), bo2),
        })
    for i in range(len(ch_decoder) - 1):
        cin, cout = ch_decoder[i], ch_decoder[i + 1]
        cup = cout
        key, kd1, kd2, k1w, kb1, k2w, kb2 = jax.random.split(key, 7)
        bd = 1.0 / float(cin * 2) ** 0.5
        bb1 = 1.0 / float(cin * 3) ** 0.5
        bb2 = 1.0 / float(cout * 3) ** 0.5
        params["dec"].append({
            "wd": _uniform(kd1, (cin, 2 * cup), bd),
            "bd": jnp.tile(_uniform(kd2, (1, cup), bd), (1, 2)),
            "w1": _uniform(k1w, (3 * cin, cout), bb1),
            "b1": _uniform(kb1, (1, cout), bb1),
            "w2": _uniform(k2w, (3 * cout, cout), bb2),
            "b2": _uniform(kb2, (1, cout), bb2),
        })
    key, kh1, kh2 = jax.random.split(key, 3)
    bh = 1.0 / float(ch_decoder[-1]) ** 0.5
    if num_class == 1:
        wh = _uniform(kh1, (1, ch_decoder[-1]), bh)      # row layout for VPU head
    else:
        wh = _uniform(kh1, (ch_decoder[-1], num_class), bh)
    params["head"] = {"w": wh, "b": _uniform(kh2, (1, num_class), bh)}
    return params


# ----------------------------------- main -------------------------------------

if __name__ == "__main__":
    # Small but structurally-faithful config (module is parametric in channels).
    ch_encoder = (1, 16, 32, 64)
    ch_decoder = (64, 32, 16)
    num_class = 1

    key = jax.random.PRNGKey(0)
    kp, kx = jax.random.split(key)
    params = init_unet_params(kp, ch_encoder, ch_decoder, num_class)

    # Input: PyTorch-style (B, C, L) = (2, 1, 64).
    x = jax.random.normal(kx, (2, 1, 64), jnp.float32)

    fwd = jax.jit(functools.partial(unet_forward, params))
    out = jax.block_until_ready(fwd(x))

    # length trace: 64 -(enc)-> 60 -pool-> 30 -> 26 -> 13 -> 9 ; dec: 18->14, 28->24
    assert out.shape == (2, 1, 24), out.shape
    assert out.dtype == jnp.float32
    print("KERNEL_OK")
</pallas_src>

<mosaic_0001>
module attributes {stable_mosaic.version = 11 : i64} {
  func.func @_unet_kernel(%arg0: i32, %arg1: memref<1x64x1xf32, #tpu.memory_space<vmem>>, %arg2: memref<3x16xf32, #tpu.memory_space<vmem>>, %arg3: memref<1x16xf32, #tpu.memory_space<vmem>>, %arg4: memref<48x16xf32, #tpu.memory_space<vmem>>, %arg5: memref<1x16xf32, #tpu.memory_space<vmem>>, %arg6: memref<48x32xf32, #tpu.memory_space<vmem>>, %arg7: memref<1x32xf32, #tpu.memory_space<vmem>>, %arg8: memref<96x32xf32, #tpu.memory_space<vmem>>, %arg9: memref<1x32xf32, #tpu.memory_space<vmem>>, %arg10: memref<96x64xf32, #tpu.memory_space<vmem>>, %arg11: memref<1x64xf32, #tpu.memory_space<vmem>>, %arg12: memref<192x64xf32, #tpu.memory_space<vmem>>, %arg13: memref<1x64xf32, #tpu.memory_space<vmem>>, %arg14: memref<64x64xf32, #tpu.memory_space<vmem>>, %arg15: memref<1x64xf32, #tpu.memory_space<vmem>>, %arg16: memref<192x32xf32, #tpu.memory_space<vmem>>, %arg17: memref<1x32xf32, #tpu.memory_space<vmem>>, %arg18: memref<96x32xf32, #tpu.memory_space<vmem>>, %arg19: memref<1x32xf32, #tpu.memory_space<vmem>>, %arg20: memref<32x32xf32, #tpu.memory_space<vmem>>, %arg21: memref<1x32xf32, #tpu.memory_space<vmem>>, %arg22: memref<96x16xf32, #tpu.memory_space<vmem>>, %arg23: memref<1x16xf32, #tpu.memory_space<vmem>>, %arg24: memref<48x16xf32, #tpu.memory_space<vmem>>, %arg25: memref<1x16xf32, #tpu.memory_space<vmem>>, %arg26: memref<1x16xf32, #tpu.memory_space<vmem>>, %arg27: memref<1x1xf32, #tpu.memory_space<vmem>>, %arg28: memref<1x24x1xf32, #tpu.memory_space<vmem>>, %arg29: memref<60x16xf32, #tpu.memory_space<vmem>>, %arg30: memref<26x32xf32, #tpu.memory_space<vmem>>) attributes {dimension_semantics = [#tpu.dimension_semantics<parallel>], iteration_bounds = array<i64: 2>, scalar_prefetch = 0 : i64, scratch_operands = 2 : i64, tpu.core_type = #tpu.core_type<tc>, window_params = [{transform_indices = @transform_0, window_bounds = array<i64: 1, 64, 1>}, {pipeline_mode = #tpu.pipeline_mode<synchronous>, transform_indices = @transform_1, window_bounds = array<i64: 3, 16>}, {pipeline_mode = #tpu.pipeline_mode<synchronous>, transform_indices = @transform_2, window_bounds = array<i64: 1, 16>}, {pipeline_mode = #tpu.pipeline_mode<synchronous>, transform_indices = @transform_3, window_bounds = array<i64: 48, 16>}, {pipeline_mode = #tpu.pipeline_mode<synchronous>, transform_indices = @transform_4, window_bounds = array<i64: 1, 16>}, {pipeline_mode = #tpu.pipeline_mode<synchronous>, transform_indices = @transform_5, window_bounds = array<i64: 48, 32>}, {pipeline_mode = #tpu.pipeline_mode<synchronous>, transform_indices = @transform_6, window_bounds = array<i64: 1, 32>}, {pipeline_mode = #tpu.pipeline_mode<synchronous>, transform_indices = @transform_7, window_bounds = array<i64: 96, 32>}, {pipeline_mode = #tpu.pipeline_mode<synchronous>, transform_indices = @transform_8, window_bounds = array<i64: 1, 32>}, {pipeline_mode = #tpu.pipeline_mode<synchronous>, transform_indices = @transform_9, window_bounds = array<i64: 96, 64>}, {pipeline_mode = #tpu.pipeline_mode<synchronous>, transform_indices = @transform_10, window_bounds = array<i64: 1, 64>}, {pipeline_mode = #tpu.pipeline_mode<synchronous>, transform_indices = @transform_11, window_bounds = array<i64: 192, 64>}, {pipeline_mode = #tpu.pipeline_mode<synchronous>, transform_indices = @transform_12, window_bounds = array<i64: 1, 64>}, {pipeline_mode = #tpu.pipeline_mode<synchronous>, transform_indices = @transform_13, window_bounds = array<i64: 64, 64>}, {pipeline_mode = #tpu.pipeline_mode<synchronous>, transform_indices = @transform_14, window_bounds = array<i64: 1, 64>}, {pipeline_mode = #tpu.pipeline_mode<synchronous>, transform_indices = @transform_15, window_bounds = array<i64: 192, 32>}, {pipeline_mode = #tpu.pipeline_mode<synchronous>, transform_indices = @transform_16, window_bounds = array<i64: 1, 32>}, {pipeline_mode = #tpu.pipeline_mode<synchronous>, transform_indices = @transform_17, window_bounds = array<i64: 96, 32>}, {pipeline_mode = #tpu.pipeline_mode<synchronous>, transform_indices = @transform_18, window_bounds = array<i64: 1, 32>}, {pipeline_mode = #tpu.pipeline_mode<synchronous>, transform_indices = @transform_19, window_bounds = array<i64: 32, 32>}, {pipeline_mode = #tpu.pipeline_mode<synchronous>, transform_indices = @transform_20, window_bounds = array<i64: 1, 32>}, {pipeline_mode = #tpu.pipeline_mode<synchronous>, transform_indices = @transform_21, window_bounds = array<i64: 96, 16>}, {pipeline_mode = #tpu.pipeline_mode<synchronous>, transform_indices = @transform_22, window_bounds = array<i64: 1, 16>}, {pipeline_mode = #tpu.pipeline_mode<synchronous>, transform_indices = @transform_23, window_bounds = array<i64: 48, 16>}, {pipeline_mode = #tpu.pipeline_mode<synchronous>, transform_indices = @transform_24, window_bounds = array<i64: 1, 16>}, {pipeline_mode = #tpu.pipeline_mode<synchronous>, transform_indices = @transform_25, window_bounds = array<i64: 1, 16>}, {pipeline_mode = #tpu.pipeline_mode<synchronous>, transform_indices = @transform_26, window_bounds = array<i64: 1, 1>}, {transform_indices = @transform_27, window_bounds = array<i64: 1, 24, 1>}]} {
    %c0 = arith.constant 0 : index
    %c0_0 = arith.constant 0 : index
    %c0_1 = arith.constant 0 : index
    %0 = vector.load %arg1[%c0, %c0_0, %c0_1] : memref<1x64x1xf32, #tpu.memory_space<vmem>>, vector<1x64x1xf32>
    %1 = vector.shape_cast %0 : vector<1x64x1xf32> to vector<64x1xf32>
    %c0_2 = arith.constant 0 : index
    %c0_3 = arith.constant 0 : index
    %2 = vector.load %arg2[%c0_2, %c0_3] : memref<3x16xf32, #tpu.memory_space<vmem>>, vector<3x16xf32>
    %c0_4 = arith.constant 0 : index
    %c0_5 = arith.constant 0 : index
    %3 = vector.load %arg3[%c0_4, %c0_5] : memref<1x16xf32, #tpu.memory_space<vmem>>, vector<1x16xf32>
    %4 = vector.extract_strided_slice %1 {offsets = [0, 0], sizes = [62, 1], strides = [1, 1]} : vector<64x1xf32> to vector<62x1xf32>
    %5 = vector.extract_strided_slice %2 {offsets = [0, 0], sizes = [1, 16], strides = [1, 1]} : vector<3x16xf32> to vector<1x16xf32>
    %6 = vector.broadcast %4 : vector<62x1xf32> to vector<62x16xf32>
    %7 = vector.broadcast %5 : vector<1x16xf32> to vector<62x16xf32>
    %8 = arith.mulf %6, %7 : vector<62x16xf32>
    %9 = vector.broadcast %3 : vector<1x16xf32> to vector<62x16xf32>
    %10 = arith.addf %9, %8 : vector<62x16xf32>
    %11 = vector.extract_strided_slice %1 {offsets = [1, 0], sizes = [62, 1], strides = [1, 1]} : vector<64x1xf32> to vector<62x1xf32>
    %12 = vector.extract_strided_slice %2 {offsets = [1, 0], sizes = [1, 16], strides = [1, 1]} : vector<3x16xf32> to vector<1x16xf32>
    %13 = vector.broadcast %11 : vector<62x1xf32> to vector<62x16xf32>
    %14 = vector.broadcast %12 : vector<1x16xf32> to vector<62x16xf32>
    %15 = arith.mulf %13, %14 : vector<62x16xf32>
    %16 = arith.addf %10, %15 : vector<62x16xf32>
    %17 = vector.extract_strided_slice %1 {offsets = [2, 0], sizes = [62, 1], strides = [1, 1]} : vector<64x1xf32> to vector<62x1xf32>
    %18 = vector.extract_strided_slice %2 {offsets = [2, 0], sizes = [1, 16], strides = [1, 1]} : vector<3x16xf32> to vector<1x16xf32>
    %19 = vector.broadcast %17 : vector<62x1xf32> to vector<62x16xf32>
    %20 = vector.broadcast %18 : vector<1x16xf32> to vector<62x16xf32>
    %21 = arith.mulf %19, %20 : vector<62x16xf32>
    %22 = arith.addf %16, %21 : vector<62x16xf32>
    %cst = arith.constant 0.000000e+00 : f32
    %23 = vector.broadcast %cst : f32 to vector<62x16xf32>
    %24 = arith.cmpf ogt, %22, %23 : vector<62x16xf32>
    %cst_6 = arith.constant 2.000000e-01 : f32
    %25 = vector.broadcast %cst_6 : f32 to vector<62x16xf32>
    %26 = arith.mulf %25, %22 : vector<62x16xf32>
    %27 = arith.select %24, %22, %26 : vector<62x16xi1>, vector<62x16xf32>
    %28 = vector.extract_strided_slice %27 {offsets = [0, 0], sizes = [60, 16], strides = [1, 1]} : vector<62x16xf32> to vector<60x16xf32>
    %29 = vector.extract_strided_slice %27 {offsets = [1, 0], sizes = [60, 16], strides = [1, 1]} : vector<62x16xf32> to vector<60x16xf32>
    %30 = vector.extract_strided_slice %27 {offsets = [2, 0], sizes = [60, 16], strides = [1, 1]} : vector<62x16xf32> to vector<60x16xf32>
    %31 = tpu.concatenate %28, %29, %30 in 1 : vector<60x16xf32>, vector<60x16xf32>, vector<60x16xf32> -> vector<60x48xf32>
    %c0_7 = arith.constant 0 : index
    %c0_8 = arith.constant 0 : index
    %32 = vector.load %arg4[%c0_7, %c0_8] : memref<48x16xf32, #tpu.memory_space<vmem>>, vector<48x16xf32>
    %33 = arith.truncf %31 : vector<60x48xf32> to vector<60x48xbf16>
    %34 = arith.truncf %32 : vector<48x16xf32> to vector<48x16xbf16>
    %cst_9 = arith.constant dense<0.000000e+00> : vector<60x16xf32>
    %35 = tpu.matmul %33, %34, %cst_9 {dimension_numbers = #tpu.dot_dimension_numbers<[1], [0], [0], [1], [0, 0, 1, 1], [], []>} : vector<60x48xbf16>, vector<48x16xbf16>, vector<60x16xf32> -> vector<60x16xf32>
    %c0_10 = arith.constant 0 : index
    %c0_11 = arith.constant 0 : index
    %36 = vector.load %arg5[%c0_10, %c0_11] : memref<1x16xf32, #tpu.memory_space<vmem>>, vector<1x16xf32>
    %37 = vector.broadcast %36 : vector<1x16xf32> to vector<60x16xf32>
    %38 = arith.addf %35, %37 : vector<60x16xf32>
    %cst_12 = arith.constant 0.000000e+00 : f32
    %39 = vector.broadcast %cst_12 : f32 to vector<60x16xf32>
    %40 = arith.cmpf ogt, %38, %39 : vector<60x16xf32>
    %cst_13 = arith.constant 2.000000e-01 : f32
    %41 = vector.broadcast %cst_13 : f32 to vector<60x16xf32>
    %42 = arith.mulf %41, %38 : vector<60x16xf32>
    %43 = arith.select %40, %38, %42 : vector<60x16xi1>, vector<60x16xf32>
    %c0_14 = arith.constant 0 : index
    %c0_15 = arith.constant 0 : index
    %44 = vector.load %arg29[%c0_14, %c0_15] : memref<60x16xf32, #tpu.memory_space<vmem>>, vector<60x16xf32>
    tpu.vector_store %arg29[%c0_14, %c0_15], %43 {strides = array<i32>} : memref<60x16xf32, #tpu.memory_space<vmem>>, vector<60x16xf32>,
    %c0_16 = arith.constant 0 : index
    %c0_17 = arith.constant 0 : index
    %45 = tpu.strided_load %arg29[%c0_16, %c0_17] {strides = array<i32: 2, 1>} : memref<60x16xf32, #tpu.memory_space<vmem>>, vector<30x16xf32>
    %c1 = arith.constant 1 : index
    %c0_18 = arith.constant 0 : index
    %46 = tpu.strided_load %arg29[%c1, %c0_18] {strides = array<i32: 2, 1>} : memref<60x16xf32, #tpu.memory_space<vmem>>, vector<30x16xf32>
    %47 = arith.maximumf %45, %46 : vector<30x16xf32>
    %48 = vector.extract_strided_slice %47 {offsets = [0, 0], sizes = [28, 16], strides = [1, 1]} : vector<30x16xf32> to vector<28x16xf32>
    %49 = vector.extract_strided_slice %47 {offsets = [1, 0], sizes = [28, 16], strides = [1, 1]} : vector<30x16xf32> to vector<28x16xf32>
    %50 = vector.extract_strided_slice %47 {offsets = [2, 0], sizes = [28, 16], strides = [1, 1]} : vector<30x16xf32> to vector<28x16xf32>
    %51 = tpu.concatenate %48, %49, %50 in 1 : vector<28x16xf32>, vector<28x16xf32>, vector<28x16xf32> -> vector<28x48xf32>
    %c0_19 = arith.constant 0 : index
    %c0_20 = arith.constant 0 : index
    %52 = vector.load %arg6[%c0_19, %c0_20] : memref<48x32xf32, #tpu.memory_space<vmem>>, vector<48x32xf32>
    %53 = arith.truncf %51 : vector<28x48xf32> to vector<28x48xbf16>
    %54 = arith.truncf %52 : vector<48x32xf32> to vector<48x32xbf16>
    %cst_21 = arith.constant dense<0.000000e+00> : vector<28x32xf32>
    %55 = tpu.matmul %53, %54, %cst_21 {dimension_numbers = #tpu.dot_dimension_numbers<[1], [0], [0], [1], [0, 0, 1, 1], [], []>} : vector<28x48xbf16>, vector<48x32xbf16>, vector<28x32xf32> -> vector<28x32xf32>
    %c0_22 = arith.constant 0 : index
    %c0_23 = arith.constant 0 : index
    %56 = vector.load %arg7[%c0_22, %c0_23] : memref<1x32xf32, #tpu.memory_space<vmem>>, vector<1x32xf32>
    %57 = vector.broadcast %56 : vector<1x32xf32> to vector<28x32xf32>
    %58 = arith.addf %55, %57 : vector<28x32xf32>
    %cst_24 = arith.constant 0.000000e+00 : f32
    %59 = vector.broadcast %cst_24 : f32 to vector<28x32xf32>
    %60 = arith.cmpf ogt, %58, %59 : vector<28x32xf32>
    %cst_25 = arith.constant 2.000000e-01 : f32
    %61 = vector.broadcast %cst_25 : f32 to vector<28x32xf32>
    %62 = arith.mulf %61, %58 : vector<28x32xf32>
    %63 = arith.select %60, %58, %62 : vector<28x32xi1>, vector<28x32xf32>
    %64 = vector.extract_strided_slice %63 {offsets = [0, 0], sizes = [26, 32], strides = [1, 1]} : vector<28x32xf32> to vector<26x32xf32>
    %65 = vector.extract_strided_slice %63 {offsets = [1, 0], sizes = [26, 32], strides = [1, 1]} : vector<28x32xf32> to vector<26x32xf32>
    %66 = vector.extract_strided_slice %63 {offsets = [2, 0], sizes = [26, 32], strides = [1, 1]} : vector<28x32xf32> to vector<26x32xf32>
    %67 = tpu.concatenate %64, %65, %66 in 1 : vector<26x32xf32>, vector<26x32xf32>, vector<26x32xf32> -> vector<26x96xf32>
    %c0_26 = arith.constant 0 : index
    %c0_27 = arith.constant 0 : index
    %68 = vector.load %arg8[%c0_26, %c0_27] : memref<96x32xf32, #tpu.memory_space<vmem>>, vector<96x32xf32>
    %69 = arith.truncf %67 : vector<26x96xf32> to vector<26x96xbf16>
    %70 = arith.truncf %68 : vector<96x32xf32> to vector<96x32xbf16>
    %cst_28 = arith.constant dense<0.000000e+00> : vector<26x32xf32>
    %71 = tpu.matmul %69, %70, %cst_28 {dimension_numbers = #tpu.dot_dimension_numbers<[1], [0], [0], [1], [0, 0, 1, 1], [], []>} : vector<26x96xbf16>, vector<96x32xbf16>, vector<26x32xf32> -> vector<26x32xf32>
    %c0_29 = arith.constant 0 : index
    %c0_30 = arith.constant 0 : index
    %72 = vector.load %arg9[%c0_29, %c0_30] : memref<1x32xf32, #tpu.memory_space<vmem>>, vector<1x32xf32>
    %73 = vector.broadcast %72 : vector<1x32xf32> to vector<26x32xf32>
    %74 = arith.addf %71, %73 : vector<26x32xf32>
    %cst_31 = arith.constant 0.000000e+00 : f32
    %75 = vector.broadcast %cst_31 : f32 to vector<26x32xf32>
    %76 = arith.cmpf ogt, %74, %75 : vector<26x32xf32>
    %cst_32 = arith.constant 2.000000e-01 : f32
    %77 = vector.broadcast %cst_32 : f32 to vector<26x32xf32>
    %78 = arith.mulf %77, %74 : vector<26x32xf32>
    %79 = arith.select %76, %74, %78 : vector<26x32xi1>, vector<26x32xf32>
    %c0_33 = arith.constant 0 : index
    %c0_34 = arith.constant 0 : index
    %80 = vector.load %arg30[%c0_33, %c0_34] : memref<26x32xf32, #tpu.memory_space<vmem>>, vector<26x32xf32>
    tpu.vector_store %arg30[%c0_33, %c0_34], %79 {strides = array<i32>} : memref<26x32xf32, #tpu.memory_space<vmem>>, vector<26x32xf32>,
    %c0_35 = arith.constant 0 : index
    %c0_36 = arith.constant 0 : index
    %81 = tpu.strided_load %arg30[%c0_35, %c0_36] {strides = array<i32: 2, 1>} : memref<26x32xf32, #tpu.memory_space<vmem>>, vector<13x32xf32>
    %c1_37 = arith.constant 1 : index
    %c0_38 = arith.constant 0 : index
    %82 = tpu.strided_load %arg30[%c1_37, %c0_38] {strides = array<i32: 2, 1>} : memref<26x32xf32, #tpu.memory_space<vmem>>, vector<13x32xf32>
    %83 = arith.maximumf %81, %82 : vector<13x32xf32>
    %84 = vector.extract_strided_slice %83 {offsets = [0, 0], sizes = [11, 32], strides = [1, 1]} : vector<13x32xf32> to vector<11x32xf32>
    %85 = vector.extract_strided_slice %83 {offsets = [1, 0], sizes = [11, 32], strides = [1, 1]} : vector<13x32xf32> to vector<11x32xf32>
    %86 = vector.extract_strided_slice %83 {offsets = [2, 0], sizes = [11, 32], strides = [1, 1]} : vector<13x32xf32> to vector<11x32xf32>
    %87 = tpu.concatenate %84, %85, %86 in 1 : vector<11x32xf32>, vector<11x32xf32>, vector<11x32xf32> -> vector<11x96xf32>
    %c0_39 = arith.constant 0 : index
    %c0_40 = arith.constant 0 : index
    %88 = vector.load %arg10[%c0_39, %c0_40] : memref<96x64xf32, #tpu.memory_space<vmem>>, vector<96x64xf32>
    %89 = arith.truncf %87 : vector<11x96xf32> to vector<11x96xbf16>
    %90 = arith.truncf %88 : vector<96x64xf32> to vector<96x64xbf16>
    %cst_41 = arith.constant dense<0.000000e+00> : vector<11x64xf32>
    %91 = tpu.matmul %89, %90, %cst_41 {dimension_numbers = #tpu.dot_dimension_numbers<[1], [0], [0], [1], [0, 0, 1, 1], [], []>} : vector<11x96xbf16>, vector<96x64xbf16>, vector<11x64xf32> -> vector<11x64xf32>
    %c0_42 = arith.constant 0 : index
    %c0_43 = arith.constant 0 : index
    %92 = vector.load %arg11[%c0_42, %c0_43] : memref<1x64xf32, #tpu.memory_space<vmem>>, vector<1x64xf32>
    %93 = vector.broadcast %92 : vector<1x64xf32> to vector<11x64xf32>
    %94 = arith.addf %91, %93 : vector<11x64xf32>
    %cst_44 = arith.constant 0.000000e+00 : f32
    %95 = vector.broadcast %cst_44 : f32 to vector<11x64xf32>
    %96 = arith.cmpf ogt, %94, %95 : vector<11x64xf32>
    %cst_45 = arith.constant 2.000000e-01 : f32
    %97 = vector.broadcast %cst_45 : f32 to vector<11x64xf32>
    %98 = arith.mulf %97, %94 : vector<11x64xf32>
    %99 = arith.select %96, %94, %98 : vector<11x64xi1>, vector<11x64xf32>
    %100 = vector.extract_strided_slice %99 {offsets = [0, 0], sizes = [9, 64], strides = [1, 1]} : vector<11x64xf32> to vector<9x64xf32>
    %101 = vector.extract_strided_slice %99 {offsets = [1, 0], sizes = [9, 64], strides = [1, 1]} : vector<11x64xf32> to vector<9x64xf32>
    %102 = vector.extract_strided_slice %99 {offsets = [2, 0], sizes = [9, 64], strides = [1, 1]} : vector<11x64xf32> to vector<9x64xf32>
    %103 = tpu.concatenate %100, %101, %102 in 1 : vector<9x64xf32>, vector<9x64xf32>, vector<9x64xf32> -> vector<9x192xf32>
    %c0_46 = arith.constant 0 : index
    %c0_47 = arith.constant 0 : index
    %104 = vector.load %arg12[%c0_46, %c0_47] : memref<192x64xf32, #tpu.memory_space<vmem>>, vector<192x64xf32>
    %105 = arith.truncf %103 : vector<9x192xf32> to vector<9x192xbf16>
    %106 = arith.truncf %104 : vector<192x64xf32> to vector<192x64xbf16>
    %cst_48 = arith.constant dense<0.000000e+00> : vector<9x64xf32>
    %107 = tpu.matmul %105, %106, %cst_48 {dimension_numbers = #tpu.dot_dimension_numbers<[1], [0], [0], [1], [0, 0, 1, 1], [], []>} : vector<9x192xbf16>, vector<192x64xbf16>, vector<9x64xf32> -> vector<9x64xf32>
    %c0_49 = arith.constant 0 : index
    %c0_50 = arith.constant 0 : index
    %108 = vector.load %arg13[%c0_49, %c0_50] : memref<1x64xf32, #tpu.memory_space<vmem>>, vector<1x64xf32>
    %109 = vector.broadcast %108 : vector<1x64xf32> to vector<9x64xf32>
    %110 = arith.addf %107, %109 : vector<9x64xf32>
    %cst_51 = arith.constant 0.000000e+00 : f32
    %111 = vector.broadcast %cst_51 : f32 to vector<9x64xf32>
    %112 = arith.cmpf ogt, %110, %111 : vector<9x64xf32>
    %cst_52 = arith.constant 2.000000e-01 : f32
    %113 = vector.broadcast %cst_52 : f32 to vector<9x64xf32>
    %114 = arith.mulf %113, %110 : vector<9x64xf32>
    %115 = arith.select %112, %110, %114 : vector<9x64xi1>, vector<9x64xf32>
    %c0_53 = arith.constant 0 : index
    %c0_54 = arith.constant 0 : index
    %116 = vector.load %arg14[%c0_53, %c0_54] : memref<64x64xf32, #tpu.memory_space<vmem>>, vector<64x64xf32>
    %117 = arith.truncf %115 : vector<9x64xf32> to vector<9x64xbf16>
    %118 = arith.truncf %116 : vector<64x64xf32> to vector<64x64xbf16>
    %cst_55 = arith.constant dense<0.000000e+00> : vector<9x64xf32>
    %119 = tpu.matmul %117, %118, %cst_55 {dimension_numbers = #tpu.dot_dimension_numbers<[1], [0], [0], [1], [0, 0, 1, 1], [], []>} : vector<9x64xbf16>, vector<64x64xbf16>, vector<9x64xf32> -> vector<9x64xf32>
    %c0_56 = arith.constant 0 : index
    %c0_57 = arith.constant 0 : index
    %120 = vector.load %arg15[%c0_56, %c0_57] : memref<1x64xf32, #tpu.memory_space<vmem>>, vector<1x64xf32>
    %121 = vector.broadcast %120 : vector<1x64xf32> to vector<9x64xf32>
    %122 = arith.addf %119, %121 : vector<9x64xf32>
    %123 = vector.extract_strided_slice %122 {offsets = [0, 0], sizes = [9, 32], strides = [1, 1]} : vector<9x64xf32> to vector<9x32xf32>
    %124 = vector.extract_strided_slice %122 {offsets = [0, 32], sizes = [9, 32], strides = [1, 1]} : vector<9x64xf32> to vector<9x32xf32>
    %c4 = arith.constant 4 : index
    %c0_58 = arith.constant 0 : index
    %125 = tpu.strided_load %arg30[%c4, %c0_58] {strides = array<i32: 2, 1>} : memref<26x32xf32, #tpu.memory_space<vmem>>, vector<9x32xf32>
    %c5 = arith.constant 5 : index
    %c0_59 = arith.constant 0 : index
    %126 = tpu.strided_load %arg30[%c5, %c0_59] {strides = array<i32: 2, 1>} : memref<26x32xf32, #tpu.memory_space<vmem>>, vector<9x32xf32>
    %127 = vector.extract_strided_slice %123 {offsets = [0, 0], sizes = [8, 32], strides = [1, 1]} : vector<9x32xf32> to vector<8x32xf32>
    %128 = vector.extract_strided_slice %125 {offsets = [0, 0], sizes = [8, 32], strides = [1, 1]} : vector<9x32xf32> to vector<8x32xf32>
    %129 = tpu.concatenate %127, %128 in 1 : vector<8x32xf32>, vector<8x32xf32> -> vector<8x64xf32>
    %130 = vector.extract_strided_slice %124 {offsets = [0, 0], sizes = [8, 32], strides = [1, 1]} : vector<9x32xf32> to vector<8x32xf32>
    %131 = vector.extract_strided_slice %126 {offsets = [0, 0], sizes = [8, 32], strides = [1, 1]} : vector<9x32xf32> to vector<8x32xf32>
    %132 = tpu.concatenate %130, %131 in 1 : vector<8x32xf32>, vector<8x32xf32> -> vector<8x64xf32>
    %133 = vector.extract_strided_slice %123 {offsets = [1, 0], sizes = [8, 32], strides = [1, 1]} : vector<9x32xf32> to vector<8x32xf32>
    %134 = vector.extract_strided_slice %125 {offsets = [1, 0], sizes = [8, 32], strides = [1, 1]} : vector<9x32xf32> to vector<8x32xf32>
    %135 = tpu.concatenate %133, %134 in 1 : vector<8x32xf32>, vector<8x32xf32> -> vector<8x64xf32>
    %136 = vector.extract_strided_slice %124 {offsets = [1, 0], sizes = [8, 32], strides = [1, 1]} : vector<9x32xf32> to vector<8x32xf32>
    %137 = vector.extract_strided_slice %126 {offsets = [1, 0], sizes = [8, 32], strides = [1, 1]} : vector<9x32xf32> to vector<8x32xf32>
    %138 = tpu.concatenate %136, %137 in 1 : vector<8x32xf32>, vector<8x32xf32> -> vector<8x64xf32>
    %139 = tpu.concatenate %129, %132 in 0 : vector<8x64xf32>, vector<8x64xf32> -> vector<16x64xf32>
    %140 = tpu.concatenate %132, %135 in 0 : vector<8x64xf32>, vector<8x64xf32> -> vector<16x64xf32>
    %141 = tpu.concatenate %135, %138 in 0 : vector<8x64xf32>, vector<8x64xf32> -> vector<16x64xf32>
    %142 = tpu.concatenate %139, %140, %141 in 1 : vector<16x64xf32>, vector<16x64xf32>, vector<16x64xf32> -> vector<16x192xf32>
    %c0_60 = arith.constant 0 : index
    %c0_61 = arith.constant 0 : index
    %143 = vector.load %arg16[%c0_60, %c0_61] : memref<192x32xf32, #tpu.memory_space<vmem>>, vector<192x32xf32>
    %144 = arith.truncf %142 : vector<16x192xf32> to vector<16x192xbf16>
    %145 = arith.truncf %143 : vector<192x32xf32> to vector<192x32xbf16>
    %cst_62 = arith.constant dense<0.000000e+00> : vector<16x32xf32>
    %146 = tpu.matmul %144, %145, %cst_62 {dimension_numbers = #tpu.dot_dimension_numbers<[1], [0], [0], [1], [0, 0, 1, 1], [], []>} : vector<16x192xbf16>, vector<192x32xbf16>, vector<16x32xf32> -> vector<16x32xf32>
    %c0_63 = arith.constant 0 : index
    %c0_64 = arith.constant 0 : index
    %147 = vector.load %arg17[%c0_63, %c0_64] : memref<1x32xf32, #tpu.memory_space<vmem>>, vector<1x32xf32>
    %148 = vector.broadcast %147 : vector<1x32xf32> to vector<16x32xf32>
    %149 = arith.addf %146, %148 : vector<16x32xf32>
    %cst_65 = arith.constant 0.000000e+00 : f32
    %150 = vector.broadcast %cst_65 : f32 to vector<16x32xf32>
    %151 = arith.cmpf ogt, %149, %150 : vector<16x32xf32>
    %cst_66 = arith.constant 2.000000e-01 : f32
    %152 = vector.broadcast %cst_66 : f32 to vector<16x32xf32>
    %153 = arith.mulf %152, %149 : vector<16x32xf32>
    %154 = arith.select %151, %149, %153 : vector<16x32xi1>, vector<16x32xf32>
    %155 = vector.extract_strided_slice %154 {offsets = [0, 0], sizes = [8, 32], strides = [1, 1]} : vector<16x32xf32> to vector<8x32xf32>
    %156 = vector.extract_strided_slice %154 {offsets = [8, 0], sizes = [8, 32], strides = [1, 1]} : vector<16x32xf32> to vector<8x32xf32>
    %157 = vector.extract_strided_slice %155 {offsets = [0, 0], sizes = [7, 32], strides = [1, 1]} : vector<8x32xf32> to vector<7x32xf32>
    %158 = vector.extract_strided_slice %156 {offsets = [0, 0], sizes = [7, 32], strides = [1, 1]} : vector<8x32xf32> to vector<7x32xf32>
    %159 = tpu.concatenate %157, %158 in 0 : vector<7x32xf32>, vector<7x32xf32> -> vector<14x32xf32>
    %160 = vector.extract_strided_slice %156 {offsets = [0, 0], sizes = [7, 32], strides = [1, 1]} : vector<8x32xf32> to vector<7x32xf32>
    %161 = vector.extract_strided_slice %155 {offsets = [1, 0], sizes = [7, 32], strides = [1, 1]} : vector<8x32xf32> to vector<7x32xf32>
    %162 = tpu.concatenate %160, %161 in 0 : vector<7x32xf32>, vector<7x32xf32> -> vector<14x32xf32>
    %163 = vector.extract_strided_slice %155 {offsets = [1, 0], sizes = [7, 32], strides = [1, 1]} : vector<8x32xf32> to vector<7x32xf32>
    %164 = vector.extract_strided_slice %156 {offsets = [1, 0], sizes = [7, 32], strides = [1, 1]} : vector<8x32xf32> to vector<7x32xf32>
    %165 = tpu.concatenate %163, %164 in 0 : vector<7x32xf32>, vector<7x32xf32> -> vector<14x32xf32>
    %166 = tpu.concatenate %159, %162, %165 in 1 : vector<14x32xf32>, vector<14x32xf32>, vector<14x32xf32> -> vector<14x96xf32>
    %c0_67 = arith.constant 0 : index
    %c0_68 = arith.constant 0 : index
    %167 = vector.load %arg18[%c0_67, %c0_68] : memref<96x32xf32, #tpu.memory_space<vmem>>, vector<96x32xf32>
    %168 = arith.truncf %166 : vector<14x96xf32> to vector<14x96xbf16>
    %169 = arith.truncf %167 : vector<96x32xf32> to vector<96x32xbf16>
    %cst_69 = arith.constant dense<0.000000e+00> : vector<14x32xf32>
    %170 = tpu.matmul %168, %169, %cst_69 {dimension_numbers = #tpu.dot_dimension_numbers<[1], [0], [0], [1], [0, 0, 1, 1], [], []>} : vector<14x96xbf16>, vector<96x32xbf16>, vector<14x32xf32> -> vector<14x32xf32>
    %c0_70 = arith.constant 0 : index
    %c0_71 = arith.constant 0 : index
    %171 = vector.load %arg19[%c0_70, %c0_71] : memref<1x32xf32, #tpu.memory_space<vmem>>, vector<1x32xf32>
    %172 = vector.broadcast %171 : vector<1x32xf32> to vector<14x32xf32>
    %173 = arith.addf %170, %172 : vector<14x32xf32>
    %cst_72 = arith.constant 0.000000e+00 : f32
    %174 = vector.broadcast %cst_72 : f32 to vector<14x32xf32>
    %175 = arith.cmpf ogt, %173, %174 : vector<14x32xf32>
    %cst_73 = arith.constant 2.000000e-01 : f32
    %176 = vector.broadcast %cst_73 : f32 to vector<14x32xf32>
    %177 = arith.mulf %176, %173 : vector<14x32xf32>
    %178 = arith.select %175, %173, %177 : vector<14x32xi1>, vector<14x32xf32>
    %179 = vector.extract_strided_slice %178 {offsets = [0, 0], sizes = [7, 32], strides = [1, 1]} : vector<14x32xf32> to vector<7x32xf32>
    %180 = vector.extract_strided_slice %178 {offsets = [7, 0], sizes = [7, 32], strides = [1, 1]} : vector<14x32xf32> to vector<7x32xf32>
    %181 = tpu.concatenate %179, %180 in 0 : vector<7x32xf32>, vector<7x32xf32> -> vector<14x32xf32>
    %182 = tpu.iota {dimensions = array<i32: 0>} : vector<14x14xi32>
    %183 = tpu.iota {dimensions = array<i32: 1>} : vector<14x14xi32>
    %c1_i32 = arith.constant 1 : i32
    %184 = vector.broadcast %c1_i32 : i32 to vector<14x14xi32>
    %185 = arith.shrsi %182, %184 : vector<14x14xi32>
    %c1_i32_74 = arith.constant 1 : i32
    %186 = vector.broadcast %c1_i32_74 : i32 to vector<14x14xi32>
    %187 = arith.andi %182, %186 : vector<14x14xi32>
    %c7_i32 = arith.constant 7 : i32
    %188 = vector.broadcast %c7_i32 : i32 to vector<14x14xi32>
    %189 = arith.muli %187, %188 : vector<14x14xi32>
    %190 = arith.addi %185, %189 : vector<14x14xi32>
    %191 = arith.cmpi eq, %183, %190 : vector<14x14xi32>
    %192 = arith.extui %191 : vector<14x14xi1> to vector<14x14xi32>
    %193 = arith.sitofp %192 : vector<14x14xi32> to vector<14x14xf32>
    %cst_75 = arith.constant dense<0.000000e+00> : vector<14x32xf32>
    %194 = tpu.matmul %193, %181, %cst_75 {dimension_numbers = #tpu.dot_dimension_numbers<[1], [0], [0], [1], [0, 0, 1, 1], [], []>} : vector<14x14xf32>, vector<14x32xf32>, vector<14x32xf32> -> vector<14x32xf32>
    %c0_76 = arith.constant 0 : index
    %c0_77 = arith.constant 0 : index
    %195 = vector.load %arg20[%c0_76, %c0_77] : memref<32x32xf32, #tpu.memory_space<vmem>>, vector<32x32xf32>
    %196 = arith.truncf %194 : vector<14x32xf32> to vector<14x32xbf16>
    %197 = arith.truncf %195 : vector<32x32xf32> to vector<32x32xbf16>
    %cst_78 = arith.constant dense<0.000000e+00> : vector<14x32xf32>
    %198 = tpu.matmul %196, %197, %cst_78 {dimension_numbers = #tpu.dot_dimension_numbers<[1], [0], [0], [1], [0, 0, 1, 1], [], []>} : vector<14x32xbf16>, vector<32x32xbf16>, vector<14x32xf32> -> vector<14x32xf32>
    %c0_79 = arith.constant 0 : index
    %c0_80 = arith.constant 0 : index
    %199 = vector.load %arg21[%c0_79, %c0_80] : memref<1x32xf32, #tpu.memory_space<vmem>>, vector<1x32xf32>
    %200 = vector.broadcast %199 : vector<1x32xf32> to vector<14x32xf32>
    %201 = arith.addf %198, %200 : vector<14x32xf32>
    %202 = vector.extract_strided_slice %201 {offsets = [0, 0], sizes = [14, 16], strides = [1, 1]} : vector<14x32xf32> to vector<14x16xf32>
    %203 = vector.extract_strided_slice %201 {offsets = [0, 16], sizes = [14, 16], strides = [1, 1]} : vector<14x32xf32> to vector<14x16xf32>
    %c16 = arith.constant 16 : index
    %c0_81 = arith.constant 0 : index
    %204 = tpu.strided_load %arg29[%c16, %c0_81] {strides = array<i32: 2, 1>} : memref<60x16xf32, #tpu.memory_space<vmem>>, vector<14x16xf32>
    %c17 = arith.constant 17 : index
    %c0_82 = arith.constant 0 : index
    %205 = tpu.strided_load %arg29[%c17, %c0_82] {strides = array<i32: 2, 1>} : memref<60x16xf32, #tpu.memory_space<vmem>>, vector<14x16xf32>
    %206 = vector.extract_strided_slice %202 {offsets = [0, 0], sizes = [13, 16], strides = [1, 1]} : vector<14x16xf32> to vector<13x16xf32>
    %207 = vector.extract_strided_slice %204 {offsets = [0, 0], sizes = [13, 16], strides = [1, 1]} : vector<14x16xf32> to vector<13x16xf32>
    %208 = tpu.concatenate %206, %207 in 1 : vector<13x16xf32>, vector<13x16xf32> -> vector<13x32xf32>
    %209 = vector.extract_strided_slice %203 {offsets = [0, 0], sizes = [13, 16], strides = [1, 1]} : vector<14x16xf32> to vector<13x16xf32>
    %210 = vector.extract_strided_slice %205 {offsets = [0, 0], sizes = [13, 16], strides = [1, 1]} : vector<14x16xf32> to vector<13x16xf32>
    %211 = tpu.concatenate %209, %210 in 1 : vector<13x16xf32>, vector<13x16xf32> -> vector<13x32xf32>
    %212 = vector.extract_strided_slice %202 {offsets = [1, 0], sizes = [13, 16], strides = [1, 1]} : vector<14x16xf32> to vector<13x16xf32>
    %213 = vector.extract_strided_slice %204 {offsets = [1, 0], sizes = [13, 16], strides = [1, 1]} : vector<14x16xf32> to vector<13x16xf32>
    %214 = tpu.concatenate %212, %213 in 1 : vector<13x16xf32>, vector<13x16xf32> -> vector<13x32xf32>
    %215 = vector.extract_strided_slice %203 {offsets = [1, 0], sizes = [13, 16], strides = [1, 1]} : vector<14x16xf32> to vector<13x16xf32>
    %216 = vector.extract_strided_slice %205 {offsets = [1, 0], sizes = [13, 16], strides = [1, 1]} : vector<14x16xf32> to vector<13x16xf32>
    %217 = tpu.concatenate %215, %216 in 1 : vector<13x16xf32>, vector<13x16xf32> -> vector<13x32xf32>
    %218 = tpu.concatenate %208, %211 in 0 : vector<13x32xf32>, vector<13x32xf32> -> vector<26x32xf32>
    %219 = tpu.concatenate %211, %214 in 0 : vector<13x32xf32>, vector<13x32xf32> -> vector<26x32xf32>
    %220 = tpu.concatenate %214, %217 in 0 : vector<13x32xf32>, vector<13x32xf32> -> vector<26x32xf32>
    %221 = tpu.concatenate %218, %219, %220 in 1 : vector<26x32xf32>, vector<26x32xf32>, vector<26x32xf32> -> vector<26x96xf32>
    %c0_83 = arith.constant 0 : index
    %c0_84 = arith.constant 0 : index
    %222 = vector.load %arg22[%c0_83, %c0_84] : memref<96x16xf32, #tpu.memory_space<vmem>>, vector<96x16xf32>
    %223 = arith.truncf %221 : vector<26x96xf32> to vector<26x96xbf16>
    %224 = arith.truncf %222 : vector<96x16xf32> to vector<96x16xbf16>
    %cst_85 = arith.constant dense<0.000000e+00> : vector<26x16xf32>
    %225 = tpu.matmul %223, %224, %cst_85 {dimension_numbers = #tpu.dot_dimension_numbers<[1], [0], [0], [1], [0, 0, 1, 1], [], []>} : vector<26x96xbf16>, vector<96x16xbf16>, vector<26x16xf32> -> vector<26x16xf32>
    %c0_86 = arith.constant 0 : index
    %c0_87 = arith.constant 0 : index
    %226 = vector.load %arg23[%c0_86, %c0_87] : memref<1x16xf32, #tpu.memory_space<vmem>>, vector<1x16xf32>
    %227 = vector.broadcast %226 : vector<1x16xf32> to vector<26x16xf32>
    %228 = arith.addf %225, %227 : vector<26x16xf32>
    %cst_88 = arith.constant 0.000000e+00 : f32
    %229 = vector.broadcast %cst_88 : f32 to vector<26x16xf32>
    %230 = arith.cmpf ogt, %228, %229 : vector<26x16xf32>
    %cst_89 = arith.constant 2.000000e-01 : f32
    %231 = vector.broadcast %cst_89 : f32 to vector<26x16xf32>
    %232 = arith.mulf %231, %228 : vector<26x16xf32>
    %233 = arith.select %230, %228, %232 : vector<26x16xi1>, vector<26x16xf32>
    %234 = vector.extract_strided_slice %233 {offsets = [0, 0], sizes = [13, 16], strides = [1, 1]} : vector<26x16xf32> to vector<13x16xf32>
    %235 = vector.extract_strided_slice %233 {offsets = [13, 0], sizes = [13, 16], strides = [1, 1]} : vector<26x16xf32> to vector<13x16xf32>
    %236 = vector.extract_strided_slice %234 {offsets = [0, 0], sizes = [12, 16], strides = [1, 1]} : vector<13x16xf32> to vector<12x16xf32>
    %237 = vector.extract_strided_slice %235 {offsets = [0, 0], sizes = [12, 16], strides = [1, 1]} : vector<13x16xf32> to vector<12x16xf32>
    %238 = tpu.concatenate %236, %237 in 0 : vector<12x16xf32>, vector<12x16xf32> -> vector<24x16xf32>
    %239 = vector.extract_strided_slice %235 {offsets = [0, 0], sizes = [12, 16], strides = [1, 1]} : vector<13x16xf32> to vector<12x16xf32>
    %240 = vector.extract_strided_slice %234 {offsets = [1, 0], sizes = [12, 16], strides = [1, 1]} : vector<13x16xf32> to vector<12x16xf32>
    %241 = tpu.concatenate %239, %240 in 0 : vector<12x16xf32>, vector<12x16xf32> -> vector<24x16xf32>
    %242 = vector.extract_strided_slice %234 {offsets = [1, 0], sizes = [12, 16], strides = [1, 1]} : vector<13x16xf32> to vector<12x16xf32>
    %243 = vector.extract_strided_slice %235 {offsets = [1, 0], sizes = [12, 16], strides = [1, 1]} : vector<13x16xf32> to vector<12x16xf32>
    %244 = tpu.concatenate %242, %243 in 0 : vector<12x16xf32>, vector<12x16xf32> -> vector<24x16xf32>
    %245 = tpu.concatenate %238, %241, %244 in 1 : vector<24x16xf32>, vector<24x16xf32>, vector<24x16xf32> -> vector<24x48xf32>
    %c0_90 = arith.constant 0 : index
    %c0_91 = arith.constant 0 : index
    %246 = vector.load %arg24[%c0_90, %c0_91] : memref<48x16xf32, #tpu.memory_space<vmem>>, vector<48x16xf32>
    %247 = arith.truncf %245 : vector<24x48xf32> to vector<24x48xbf16>
    %248 = arith.truncf %246 : vector<48x16xf32> to vector<48x16xbf16>
    %cst_92 = arith.constant dense<0.000000e+00> : vector<24x16xf32>
    %249 = tpu.matmul %247, %248, %cst_92 {dimension_numbers = #tpu.dot_dimension_numbers<[1], [0], [0], [1], [0, 0, 1, 1], [], []>} : vector<24x48xbf16>, vector<48x16xbf16>, vector<24x16xf32> -> vector<24x16xf32>
    %c0_93 = arith.constant 0 : index
    %c0_94 = arith.constant 0 : index
    %250 = vector.load %arg25[%c0_93, %c0_94] : memref<1x16xf32, #tpu.memory_space<vmem>>, vector<1x16xf32>
    %251 = vector.broadcast %250 : vector<1x16xf32> to vector<24x16xf32>
    %252 = arith.addf %249, %251 : vector<24x16xf32>
    %cst_95 = arith.constant 0.000000e+00 : f32
    %253 = vector.broadcast %cst_95 : f32 to vector<24x16xf32>
    %254 = arith.cmpf ogt, %252, %253 : vector<24x16xf32>
    %cst_96 = arith.constant 2.000000e-01 : f32
    %255 = vector.broadcast %cst_96 : f32 to vector<24x16xf32>
    %256 = arith.mulf %255, %252 : vector<24x16xf32>
    %257 = arith.select %254, %252, %256 : vector<24x16xi1>, vector<24x16xf32>
    %258 = vector.extract_strided_slice %257 {offsets = [0, 0], sizes = [12, 16], strides = [1, 1]} : vector<24x16xf32> to vector<12x16xf32>
    %259 = vector.extract_strided_slice %257 {offsets = [12, 0], sizes = [12, 16], strides = [1, 1]} : vector<24x16xf32> to vector<12x16xf32>
    %260 = tpu.concatenate %258, %259 in 0 : vector<12x16xf32>, vector<12x16xf32> -> vector<24x16xf32>
    %261 = tpu.iota {dimensions = array<i32: 0>} : vector<24x24xi32>
    %262 = tpu.iota {dimensions = array<i32: 1>} : vector<24x24xi32>
    %c1_i32_97 = arith.constant 1 : i32
    %263 = vector.broadcast %c1_i32_97 : i32 to vector<24x24xi32>
    %264 = arith.shrsi %261, %263 : vector<24x24xi32>
    %c1_i32_98 = arith.constant 1 : i32
    %265 = vector.broadcast %c1_i32_98 : i32 to vector<24x24xi32>
    %266 = arith.andi %261, %265 : vector<24x24xi32>
    %c12_i32 = arith.constant 12 : i32
    %267 = vector.broadcast %c12_i32 : i32 to vector<24x24xi32>
    %268 = arith.muli %266, %267 : vector<24x24xi32>
    %269 = arith.addi %264, %268 : vector<24x24xi32>
    %270 = arith.cmpi eq, %262, %269 : vector<24x24xi32>
    %271 = arith.extui %270 : vector<24x24xi1> to vector<24x24xi32>
    %272 = arith.sitofp %271 : vector<24x24xi32> to vector<24x24xf32>
    %cst_99 = arith.constant dense<0.000000e+00> : vector<24x16xf32>
    %273 = tpu.matmul %272, %260, %cst_99 {dimension_numbers = #tpu.dot_dimension_numbers<[1], [0], [0], [1], [0, 0, 1, 1], [], []>} : vector<24x24xf32>, vector<24x16xf32>, vector<24x16xf32> -> vector<24x16xf32>
    %c0_100 = arith.constant 0 : index
    %c0_101 = arith.constant 0 : index
    %274 = vector.load %arg27[%c0_100, %c0_101] : memref<1x1xf32, #tpu.memory_space<vmem>>, vector<1x1xf32>
    %c0_102 = arith.constant 0 : index
    %c0_103 = arith.constant 0 : index
    %275 = vector.load %arg26[%c0_102, %c0_103] : memref<1x16xf32, #tpu.memory_space<vmem>>, vector<1x16xf32>
    %276 = vector.broadcast %275 : vector<1x16xf32> to vector<24x16xf32>
    %277 = arith.mulf %273, %276 : vector<24x16xf32>
    %cst_104 = arith.constant dense<0.000000e+00> : vector<24xf32>
    %278 = vector.multi_reduction <add>, %277, %cst_104 [1] : vector<24x16xf32> to vector<24xf32>
    %279 = vector.shape_cast %278 : vector<24xf32> to vector<24x1xf32>
    %280 = vector.broadcast %274 : vector<1x1xf32> to vector<24x1xf32>
    %281 = arith.addf %279, %280 : vector<24x1xf32>
    %c0_105 = arith.constant 0 : index
    %c0_106 = arith.constant 0 : index
    %c0_107 = arith.constant 0 : index
    %282 = vector.load %arg28[%c0_105, %c0_106, %c0_107] : memref<1x24x1xf32, #tpu.memory_space<vmem>>, vector<1x24x1xf32>
    %283 = vector.shape_cast %282 : vector<1x24x1xf32> to vector<24x1xf32>
    %284 = vector.shape_cast %281 : vector<24x1xf32> to vector<1x24x1xf32>
    tpu.vector_store %arg28[%c0_105, %c0_106, %c0_107], %284 {strides = array<i32>} : memref<1x24x1xf32, #tpu.memory_space<vmem>>, vector<1x24x1xf32>,
    return
  }
  func.func @transform_0(%arg0: i32) -> (i32, i32, i32) {
    %c0_i32 = arith.constant 0 : i32
    %c0_i32_0 = arith.constant 0 : i32
    %c0_i32_1 = arith.constant 0 : i32
    return %arg0, %c0_i32, %c0_i32_0 : i32, i32, i32
  }
  func.func @transform_1(%arg0: i32) -> (i32, i32) {
    %c0_i32 = arith.constant 0 : i32
    %c0_i32_0 = arith.constant 0 : i32
    %c0_i32_1 = arith.constant 0 : i32
    return %c0_i32, %c0_i32_0 : i32, i32
  }
  func.func @transform_2(%arg0: i32) -> (i32, i32) {
    %c0_i32 = arith.constant 0 : i32
    %c0_i32_0 = arith.constant 0 : i32
    %c0_i32_1 = arith.constant 0 : i32
    return %c0_i32, %c0_i32_0 : i32, i32
  }
  func.func @transform_3(%arg0: i32) -> (i32, i32) {
    %c0_i32 = arith.constant 0 : i32
    %c0_i32_0 = arith.constant 0 : i32
    %c0_i32_1 = arith.constant 0 : i32
    return %c0_i32, %c0_i32_0 : i32, i32
  }
  func.func @transform_4(%arg0: i32) -> (i32, i32) {
    %c0_i32 = arith.constant 0 : i32
    %c0_i32_0 = arith.constant 0 : i32
    %c0_i32_1 = arith.constant 0 : i32
    return %c0_i32, %c0_i32_0 : i32, i32
  }
  func.func @transform_5(%arg0: i32) -> (i32, i32) {
    %c0_i32 = arith.constant 0 : i32
    %c0_i32_0 = arith.constant 0 : i32
    %c0_i32_1 = arith.constant 0 : i32
    return %c0_i32, %c0_i32_0 : i32, i32
  }
  func.func @transform_6(%arg0: i32) -> (i32, i32) {
    %c0_i32 = arith.constant 0 : i32
    %c0_i32_0 = arith.constant 0 : i32
    %c0_i32_1 = arith.constant 0 : i32
    return %c0_i32, %c0_i32_0 : i32, i32
  }
  func.func @transform_7(%arg0: i32) -> (i32, i32) {
    %c0_i32 = arith.constant 0 : i32
    %c0_i32_0 = arith.constant 0 : i32
    %c0_i32_1 = arith.constant 0 : i32
    return %c0_i32, %c0_i32_0 : i32, i32
  }
  func.func @transform_8(%arg0: i32) -> (i32, i32) {
    %c0_i32 = arith.constant 0 : i32
    %c0_i32_0 = arith.constant 0 : i32
    %c0_i32_1 = arith.constant 0 : i32
    return %c0_i32, %c0_i32_0 : i32, i32
  }
  func.func @transform_9(%arg0: i32) -> (i32, i32) {
    %c0_i32 = arith.constant 0 : i32
    %c0_i32_0 = arith.constant 0 : i32
    %c0_i32_1 = arith.constant 0 : i32
    return %c0_i32, %c0_i32_0 : i32, i32
  }
  func.func @transform_10(%arg0: i32) -> (i32, i32) {
    %c0_i32 = arith.constant 0 : i32
    %c0_i32_0 = arith.constant 0 : i32
    %c0_i32_1 = arith.constant 0 : i32
    return %c0_i32, %c0_i32_0 : i32, i32
  }
  func.func @transform_11(%arg0: i32) -> (i32, i32) {
    %c0_i32 = arith.constant 0 : i32
    %c0_i32_0 = arith.constant 0 : i32
    %c0_i32_1 = arith.constant 0 : i32
    return %c0_i32, %c0_i32_0 : i32, i32
  }
  func.func @transform_12(%arg0: i32) -> (i32, i32) {
    %c0_i32 = arith.constant 0 : i32
    %c0_i32_0 = arith.constant 0 : i32
    %c0_i32_1 = arith.constant 0 : i32
    return %c0_i32, %c0_i32_0 : i32, i32
  }
  func.func @transform_13(%arg0: i32) -> (i32, i32) {
    %c0_i32 = arith.constant 0 : i32
    %c0_i32_0 = arith.constant 0 : i32
    %c0_i32_1 = arith.constant 0 : i32
    return %c0_i32, %c0_i32_0 : i32, i32
  }
  func.func @transform_14(%arg0: i32) -> (i32, i32) {
    %c0_i32 = arith.constant 0 : i32
    %c0_i32_0 = arith.constant 0 : i32
    %c0_i32_1 = arith.constant 0 : i32
    return %c0_i32, %c0_i32_0 : i32, i32
  }
  func.func @transform_15(%arg0: i32) -> (i32, i32) {
    %c0_i32 = arith.constant 0 : i32
    %c0_i32_0 = arith.constant 0 : i32
    %c0_i32_1 = arith.constant 0 : i32
    return %c0_i32, %c0_i32_0 : i32, i32
  }
  func.func @transform_16(%arg0: i32) -> (i32, i32) {
    %c0_i32 = arith.constant 0 : i32
    %c0_i32_0 = arith.constant 0 : i32
    %c0_i32_1 = arith.constant 0 : i32
    return %c0_i32, %c0_i32_0 : i32, i32
  }
  func.func @transform_17(%arg0: i32) -> (i32, i32) {
    %c0_i32 = arith.constant 0 : i32
    %c0_i32_0 = arith.constant 0 : i32
    %c0_i32_1 = arith.constant 0 : i32
    return %c0_i32, %c0_i32_0 : i32, i32
  }
  func.func @transform_18(%arg0: i32) -> (i32, i32) {
    %c0_i32 = arith.constant 0 : i32
    %c0_i32_0 = arith.constant 0 : i32
    %c0_i32_1 = arith.constant 0 : i32
    return %c0_i32, %c0_i32_0 : i32, i32
  }
  func.func @transform_19(%arg0: i32) -> (i32, i32) {
    %c0_i32 = arith.constant 0 : i32
    %c0_i32_0 = arith.constant 0 : i32
    %c0_i32_1 = arith.constant 0 : i32
    return %c0_i32, %c0_i32_0 : i32, i32
  }
  func.func @transform_20(%arg0: i32) -> (i32, i32) {
    %c0_i32 = arith.constant 0 : i32
    %c0_i32_0 = arith.constant 0 : i32
    %c0_i32_1 = arith.constant 0 : i32
    return %c0_i32, %c0_i32_0 : i32, i32
  }
  func.func @transform_21(%arg0: i32) -> (i32, i32) {
    %c0_i32 = arith.constant 0 : i32
    %c0_i32_0 = arith.constant 0 : i32
    %c0_i32_1 = arith.constant 0 : i32
    return %c0_i32, %c0_i32_0 : i32, i32
  }
  func.func @transform_22(%arg0: i32) -> (i32, i32) {
    %c0_i32 = arith.constant 0 : i32
    %c0_i32_0 = arith.constant 0 : i32
    %c0_i32_1 = arith.constant 0 : i32
    return %c0_i32, %c0_i32_0 : i32, i32
  }
  func.func @transform_23(%arg0: i32) -> (i32, i32) {
    %c0_i32 = arith.constant 0 : i32
    %c0_i32_0 = arith.constant 0 : i32
    %c0_i32_1 = arith.constant 0 : i32
    return %c0_i32, %c0_i32_0 : i32, i32
  }
  func.func @transform_24(%arg0: i32) -> (i32, i32) {
    %c0_i32 = arith.constant 0 : i32
    %c0_i32_0 = arith.constant 0 : i32
    %c0_i32_1 = arith.constant 0 : i32
    return %c0_i32, %c0_i32_0 : i32, i32
  }
  func.func @transform_25(%arg0: i32) -> (i32, i32) {
    %c0_i32 = arith.constant 0 : i32
    %c0_i32_0 = arith.constant 0 : i32
    %c0_i32_1 = arith.constant 0 : i32
    return %c0_i32, %c0_i32_0 : i32, i32
  }
  func.func @transform_26(%arg0: i32) -> (i32, i32) {
    %c0_i32 = arith.constant 0 : i32
    %c0_i32_0 = arith.constant 0 : i32
    %c0_i32_1 = arith.constant 0 : i32
    return %c0_i32, %c0_i32_0 : i32, i32
  }
  func.func @transform_27(%arg0: i32) -> (i32, i32, i32) {
    %c0_i32 = arith.constant 0 : i32
    %c0_i32_0 = arith.constant 0 : i32
    %c0_i32_1 = arith.constant 0 : i32
    return %arg0, %c0_i32, %c0_i32_0 : i32, i32, i32
  }
}

</mosaic_0001>

<bundles_post_ra>
// kernel: unet_forward.1
= control target key start
LH: loop header
LB: loop body
LE: loop exit
PB: predicated region body
PF: predicated region fallthrough
CT: control target
= control target key end

     0   :  { %s4635_s0 = inlined_call_operand.vmem [shape: f32[2,64,1], index: 0, kind: input, shape index: {}]   ;;  %s4636_s1 = inlined_call_operand.vmem [shape: f32[3,16], index: 1, kind: input, shape index: {}]   ;;  %s4637_s2 = inlined_call_operand.hbm [shape: f32[1,16], index: 2, kind: input, shape index: {}]   ;;  %s4638_s3 = inlined_call_operand.hbm [shape: f32[48,16], index: 3, kind: input, shape index: {}]   ;;  %s4639_s4 = inlined_call_operand.hbm [shape: f32[1,16], index: 4, kind: input, shape index: {}]   ;;  %s4640_s5 = inlined_call_operand.hbm [shape: f32[48,32], index: 5, kind: input, shape index: {}]   ;;  %s4641_s6 = inlined_call_operand.hbm [shape: f32[1,32], index: 6, kind: input, shape index: {}]   ;;  %s4642_s7 = inlined_call_operand.hbm [shape: f32[96,32], index: 7, kind: input, shape index: {}]   ;;  %s4643_s8 = inlined_call_operand.hbm [shape: f32[1,32], index: 8, kind: input, shape index: {}]   ;;  %s4644_s9 = inlined_call_operand.hbm [shape: f32[96,64], index: 9, kind: input, shape index: {}]   ;;  %s4645_s10 = inlined_call_operand.hbm [shape: f32[1,64], index: 10, kind: input, shape index: {}]   ;;  %s4646_s11 = inlined_call_operand.hbm [shape: f32[192,64], index: 11, kind: input, shape index: {}]   ;;  %s4647_s12 = inlined_call_operand.hbm [shape: f32[1,64], index: 12, kind: input, shape index: {}]   ;;  %s4648_s13 = inlined_call_operand.hbm [shape: f32[64,64], index: 13, kind: input, shape index: {}]   ;;  %s4649_s14 = inlined_call_operand.hbm [shape: f32[1,64], index: 14, kind: input, shape index: {}]   ;;  %s4650_s15 = inlined_call_operand.hbm [shape: f32[192,32], index: 15, kind: input, shape index: {}]   ;;  %s4651_s16 = inlined_call_operand.hbm [shape: f32[1,32], index: 16, kind: input, shape index: {}]   ;;  %s4652_s17 = inlined_call_operand.hbm [shape: f32[96,32], index: 17, kind: input, shape index: {}]   ;;  %s4653_s18 = inlined_call_operand.hbm [shape: f32[1,32], index: 18, kind: input, shape index: {}]   ;;  %s4654_s19 = inlined_call_operand.hbm [shape: f32[32,32], index: 19, kind: input, shape index: {}]   ;;  %s4655_s20 = inlined_call_operand.vmem [shape: f32[1,32], index: 20, kind: input, shape index: {}]   ;;  %s4656_s21 = inlined_call_operand.vmem [shape: f32[96,16], index: 21, kind: input, shape index: {}]   ;;  %s4657_s22 = inlined_call_operand.vmem [shape: f32[1,16], index: 22, kind: input, shape index: {}]   ;;  %s4658_s23 = inlined_call_operand.vmem [shape: f32[48,16], index: 23, kind: input, shape index: {}]   ;;  %s4659_s24 = inlined_call_operand.vmem [shape: f32[1,16], index: 24, kind: input, shape index: {}]   ;;  %s4660_s25 = inlined_call_operand.vmem [shape: f32[1,16], index: 25, kind: input, shape index: {}]   ;;  %s4661_s26 = inlined_call_operand.<no memory space> [shape: f32[1,1], index: 26, kind: input, shape index: {}]   ;;  %s4662_s27 = inlined_call_operand.vmem [shape: f32[2,24,1], index: 27, kind: output, shape index: {}]  }
   0x1   :  { %4664 = sst [smem:[#allocation44_spill]] %s4635_s0  ;;  %v32_v0 = vstv %s4661_s26 }
   0x2   :  { %4665 = sst [smem:[#allocation45_spill]] %s4636_s1  ;;  %33 = vst [vmem:[#allocation4] sm:$0x1] %v32_v0 }
   0x3   :  { %4666 = sst [smem:[#allocation46_spill]] %s4637_s2 }
   0x4   :  { %4667 = sst [smem:[#allocation47_spill]] %s4638_s3 }
   0x5   :  { %4668 = sst [smem:[#allocation48_spill]] %s4639_s4 }
   0x6   :  { %4669 = sst [smem:[#allocation49_spill]] %s4640_s5 }
   0x7   :  { %4670 = sst [smem:[#allocation50_spill]] %s4641_s6 }
   0x8   :  { %4671 = sst [smem:[#allocation51_spill]] %s4642_s7 }
   0x9   :  { %4672 = sst [smem:[#allocation52_spill]] %s4643_s8 }
   0xa   :  { %4673 = sst [smem:[#allocation53_spill]] %s4644_s9 }
   0xb   :  { %4674 = sst [smem:[#allocation54_spill]] %s4645_s10 }
   0xc   :  { %4675 = sst [smem:[#allocation55_spill]] %s4646_s11 }
   0xd   :  { %4676 = sst [smem:[#allocation56_spill]] %s4648_s13 }
   0xe   :  { %4677 = sst [smem:[#allocation57_spill]] %s4650_s15 }
   0xf   :  { %4678 = sst [smem:[#allocation58_spill]] %s4660_s25 }
  0x10   :  { %4679 = sst [smem:[#allocation59_spill]] %s4662_s27 }
  0x11   :  { %34 = vsyncpa [#allocation6], 0 }
  0x12   :  { %35 = vsyncpa [#allocation8], 0 }
  0x13   :  { %36 = vsyncpa [#allocation11], 0 }
  0x14   :  { %37 = vsyncpa [#allocation14], 0 }
  0x15   :  { %38 = vsyncpa [#allocation17], 0 }
  0x16   :  { %39 = vsyncpa [#allocation20], 0 }
  0x17   :  { %40 = vsyncpa [#allocation23], 0 }
  0x18   :  { %41 = vsyncpa [#allocation26], 0 }
  0x19   :  { %42 = vsyncpa [#allocation29], 0 }
  0x1a   :  { %43 = vsyncpa [#allocation32], 0  ;;  %s4012_s8 = smov 0  }
  0x1b LB: > { %4680 = sst [smem:[#allocation43_spill]] %s3840_s8  ;;  %s4021_s28 = sadd.s32 4294967295, %s3840_s8   ;;  %s3840_s8 = sphi %s4012_s8, %s49_s8  }
  0x1c   : > { %s4681_s9 = sld [smem:[#allocation47_spill]]  ;;  %p2804_p0 = scmp.ge.s32.totalorder %s3840_s8, 1 }
  0x1d   : > { %p652_p1 = scmp.lt.s32.totalorder %s3840_s8, 3  ;;  %p3006_p2 = scmp.eq.s32.totalorder %s4021_s28, 0 }
  0x1e   : > { %s3842_s10 = smov [#allocation7]   ;;  %s4683_s11 = sld [smem:[#allocation49_spill]] }
  0x1f   : > { %p4026_p3 = pnand %p2804_p0, %p652_p1  ;;  %s680_s29 = sshll.u32 %s3842_s10, 4  ;;  %s681_s29 = int_to_ptr.vmem [resolvable:$true] %s680_s29 }
  0x20   : > { %s3843_s7 = smov [#allocation10]   ;;  %s3844_s8 = smov 128  }
  0x21   : > { %p2951_p4 = pneg %p4026_p3  ;;  %s706_s4 = sshll.u32 %s3843_s7, 4  ;;  %s707_s4 = int_to_ptr.vmem [resolvable:$true] %s706_s4 }
  0x22   : > { %s678_s5 = sshll.u32 %s4681_s9, 4  ;;  %s4685_s9 = sld [smem:[#allocation51_spill]]  ;;  %s679_s5 = int_to_ptr.hbm [resolvable:$true] %s678_s5 }
  0x23   : > { %p4037_p5 = pnand %p3006_p2, %p2951_p4  ;;  %s3845_s1 = smov 8  }
  0x24   : > { %s704_s2 = sshll.u32 %s4683_s11, 4  ;;  %s3846_s6 = smov [#allocation13]   ;;  %s705_s2 = int_to_ptr.hbm [resolvable:$true] %s704_s2 }
  0x25   : > { %2957 = dma.hbm_to_vmem [thread:$0]  (!%p4037_p5), %s679_s5, 768, %s681_s29, [#allocation8], %s3844_s8, %s3844_s8, %s3845_s1  }
  0x26   : > { %2963 = dma.hbm_to_vmem [thread:$0]  (!%p4037_p5), %s705_s2, 768, %s707_s4, [#allocation11], %s3844_s8, %s3844_s8, %s3845_s1  }
  0x27   : > { %s732_s11 = sshll.u32 %s3846_s6, 4  ;;  %s4686_s26 = sld [smem:[#allocation53_spill]]  ;;  %s733_s11 = int_to_ptr.vmem [resolvable:$true] %s732_s11 }
  0x28   : > { %s730_s10 = sshll.u32 %s4685_s9, 4  ;;  %s4687_s27 = sld [smem:[#allocation55_spill]]  ;;  %s731_s10 = int_to_ptr.hbm [resolvable:$true] %s730_s10 }
  0x29   : > { %2969 = dma.hbm_to_vmem [thread:$0]  (!%p4037_p5), %s731_s10, 1536, %s733_s11, [#allocation14], %s3844_s8, %s3844_s8, %s3845_s1  }
  0x2a   : > { %s3847_s2 = smov [#allocation16]   ;;  %s3848_s6 = smov [#allocation19]  }
  0x2b   : > { %s758_s4 = sshll.u32 %s3847_s2, 4  ;;  %s784_s7 = sshll.u32 %s3848_s6, 4  ;;  %s759_s4 = int_to_ptr.vmem [resolvable:$true] %s758_s4  ;;  %s785_s7 = int_to_ptr.vmem [resolvable:$true] %s784_s7 }
  0x2c   : > { %s4688_s13 = sld [smem:[#allocation56_spill]]  ;;  %s3849_s29 = smov [#allocation22]  }
  0x2d   : > { %s756_s9 = sshll.u32 %s4686_s26, 4  ;;  %s4689_s15 = sld [smem:[#allocation57_spill]]  ;;  %s757_s9 = int_to_ptr.hbm [resolvable:$true] %s756_s9 }
  0x2e   : > { %s782_s25 = sshll.u32 %s4687_s27, 4  ;;  %s3850_s2 = smov [#allocation25]   ;;  %s783_s25 = int_to_ptr.hbm [resolvable:$true] %s782_s25 }
  0x2f   : > { %2975 = dma.hbm_to_vmem [thread:$0]  (!%p4037_p5), %s757_s9, 1536, %s759_s4, [#allocation17], %s3844_s8, %s3844_s8, %s3845_s1  }
  0x30   : > { %2981 = dma.hbm_to_vmem [thread:$0]  (!%p4037_p5), %s783_s25, 3072, %s785_s7, [#allocation20], %s3844_s8, %s3844_s8, %s3845_s1  }
  0x31   : > { %s810_s9 = sshll.u32 %s3849_s29, 4  ;;  %s836_s4 = sshll.u32 %s3850_s2, 4  ;;  %s811_s9 = int_to_ptr.vmem [resolvable:$true] %s810_s9  ;;  %s837_s4 = int_to_ptr.vmem [resolvable:$true] %s836_s4 }
  0x32   : > { %s808_s10 = sshll.u32 %s4688_s13, 4  ;;  %s860_s25 = sshll.u32 %s4652_s17, 4  ;;  %s809_s10 = int_to_ptr.hbm [resolvable:$true] %s808_s10  ;;  %s861_s25 = int_to_ptr.hbm [resolvable:$true] %s860_s25 }
  0x33   : > { %s834_s5 = sshll.u32 %s4689_s15, 4  ;;  %s4690_s27 = sld [smem:[#allocation46_spill]]  ;;  %s835_s5 = int_to_ptr.hbm [resolvable:$true] %s834_s5 }
  0x34   : > { %2987 = dma.hbm_to_vmem [thread:$0]  (!%p4037_p5), %s809_s10, 1024, %s811_s9, [#allocation23], %s3844_s8, %s3844_s8, %s3845_s1  }
  0x35   : > { %2993 = dma.hbm_to_vmem [thread:$0]  (!%p4037_p5), %s835_s5, 3072, %s837_s4, [#allocation26], %s3844_s8, %s3844_s8, %s3845_s1  }
  0x36   : > { %s3851_s29 = smov [#allocation28]   ;;  %s3852_s9 = smov [#allocation5]  }
  0x37   : > { %s862_s10 = sshll.u32 %s3851_s29, 4  ;;  %s669_s2 = sshll.u32 %s3852_s9, 4  ;;  %s863_s10 = int_to_ptr.vmem [resolvable:$true] %s862_s10  ;;  %s670_s2 = int_to_ptr.vmem [resolvable:$true] %s669_s2 }
  0x38   : > { %2999 = dma.hbm_to_vmem [thread:$0]  (!%p4037_p5), %s861_s25, 1536, %s863_s10, [#allocation29], %s3844_s8, %s3844_s8, %s3845_s1  }
  0x39   : > { %s667_s11 = sshll.u32 %s4690_s27, 4  ;;  %s4691_s13 = sld [smem:[#allocation48_spill]]  ;;  %s668_s11 = int_to_ptr.hbm [resolvable:$true] %s667_s11 }
  0x3a   : > { %2954 = dma.hbm_to_vmem [thread:$0]  (!%p4037_p5), %s668_s11, 16, %s670_s2, [#allocation6]  }
  0x3b   : > { %s4692_s26 = sld [smem:[#allocation50_spill]]  ;;  %s3853_s29 = smov [#allocation9]  }
  0x3c   : > { %s695_s15 = sshll.u32 %s3853_s29, 4  ;;  %s3854_s25 = smov [#allocation12]   ;;  %s696_s15 = int_to_ptr.vmem [resolvable:$true] %s695_s15 }
  0x3d   : > { %s721_s10 = sshll.u32 %s3854_s25, 4  ;;  %s4694_s4 = sld [smem:[#allocation54_spill]]  ;;  %s722_s10 = int_to_ptr.vmem [resolvable:$true] %s721_s10 }
  0x3e   : > { %s797_s6 = sshll.u32 %s4647_s12, 4  ;;  %s3857_s11 = smov [#allocation21]   ;;  %s798_s6 = int_to_ptr.hbm [resolvable:$true] %s797_s6 }
  0x3f   : > { %s693_s5 = sshll.u32 %s4691_s13, 4  ;;  %s4693_s13 = sld [smem:[#allocation52_spill]]  ;;  %s694_s5 = int_to_ptr.hbm [resolvable:$true] %s693_s5 }
  0x40   : > { %2960 = dma.hbm_to_vmem [thread:$0]  (!%p4037_p5), %s694_s5, 16, %s696_s15, [#allocation8]  }
  0x41   : > { %s719_s27 = sshll.u32 %s4692_s26, 4  ;;  %s3855_s26 = smov [#allocation15]   ;;  %s720_s27 = int_to_ptr.hbm [resolvable:$true] %s719_s27 }
  0x42   : > { %2966 = dma.hbm_to_vmem [thread:$0]  (!%p4037_p5), %s720_s27, 16, %s722_s10, [#allocation11]  }
  0x43   : > { %s771_s7 = sshll.u32 %s4694_s4, 4  ;;  %s747_s29 = sshll.u32 %s3855_s26, 4  ;;  %s772_s7 = int_to_ptr.hbm [resolvable:$true] %s771_s7  ;;  %s748_s29 = int_to_ptr.vmem [resolvable:$true] %s747_s29 }
  0x44   : > { %s3856_s15 = smov [#allocation18]   ;;  %s799_s2 = sshll.u32 %s3857_s11, 4  ;;  %s800_s2 = int_to_ptr.vmem [resolvable:$true] %s799_s2 }
  0x45   : > { %s745_s30 = sshll.u32 %s4693_s13, 4  ;;  %s773_s5 = sshll.u32 %s3856_s15, 4  ;;  %s746_s30 = int_to_ptr.hbm [resolvable:$true] %s745_s30  ;;  %s774_s5 = int_to_ptr.vmem [resolvable:$true] %s773_s5 }
  0x46   : > { %2972 = dma.hbm_to_vmem [thread:$0]  (!%p4037_p5), %s746_s30, 16, %s748_s29, [#allocation14]  }
  0x47   : > { %2978 = dma.hbm_to_vmem [thread:$0]  (!%p4037_p5), %s772_s7, 16, %s774_s5, [#allocation17]  }
  0x48   : > { %s823_s13 = sshll.u32 %s4649_s14, 4  ;;  %s3858_s30 = smov [#allocation24]   ;;  %s824_s13 = int_to_ptr.hbm [resolvable:$true] %s823_s13 }
  0x49   : > { %2984 = dma.hbm_to_vmem [thread:$0]  (!%p4037_p5), %s798_s6, 16, %s800_s2, [#allocation20]  }
  0x4a   : > { %s825_s4 = sshll.u32 %s3858_s30, 4  ;;  %s849_s15 = sshll.u32 %s4651_s16, 4  ;;  %s826_s4 = int_to_ptr.vmem [resolvable:$true] %s825_s4  ;;  %s850_s15 = int_to_ptr.hbm [resolvable:$true] %s849_s15 }
  0x4b   : > { %2990 = dma.hbm_to_vmem [thread:$0]  (!%p4037_p5), %s824_s13, 16, %s826_s4, [#allocation23]  }
  0x4c   : > { %s875_s25 = sshll.u32 %s4653_s18, 4  ;;  %s3859_s9 = smov [#allocation27]   ;;  %s876_s25 = int_to_ptr.hbm [resolvable:$true] %s875_s25 }
  0x4d   : > { %s851_s27 = sshll.u32 %s3859_s9, 4  ;;  %s3860_s6 = smov [#allocation30]   ;;  %s852_s27 = int_to_ptr.vmem [resolvable:$true] %s851_s27 }
  0x4e   : > { %2996 = dma.hbm_to_vmem [thread:$0]  (!%p4037_p5), %s850_s15, 16, %s852_s27, [#allocation26]  }
  0x4f   : > { %s877_s10 = sshll.u32 %s3860_s6, 4  ;;  %s886_s30 = sshll.u32 %s4654_s19, 4  ;;  %s878_s10 = int_to_ptr.vmem [resolvable:$true] %s877_s10  ;;  %s887_s30 = int_to_ptr.hbm [resolvable:$true] %s886_s30 }
  0x50   : > { %3002 = dma.hbm_to_vmem [thread:$0]  (!%p4037_p5), %s876_s25, 16, %s878_s10, [#allocation29]  }
  0x51   : > { %s3861_s13 = smov [#allocation31]   ;;  %933 = sbr.rel (%p4026_p3) target bundleno = 3658 (0xe4a), region = 128 }
  0x52   : > { %s888_s4 = sshll.u32 %s3861_s13, 4  ;;  %s889_s4 = int_to_ptr.vmem [resolvable:$true] %s888_s4 }
  0x53   : > { %3005 = dma.hbm_to_vmem [thread:$0]  (!%p4037_p5), %s887_s30, 512, %s889_s4, [#allocation32], %s3844_s8, %s3844_s8, %s3845_s1  }
  0x56   : > { %3799 = dma.done.wait (%p3006_p2), [#allocation6], 16  }
  0x57   : > { %3801 = vsyncadd (%p3006_p2), [#allocation6], 4294967280 }
  0x58   : > { %3803 = dma.done.wait (%p3006_p2), [#allocation8], 784  }
  0x59   : > { %3805 = vsyncadd (%p3006_p2), [#allocation8], 4294966512 }
  0x5a   : > { %3807 = dma.done.wait (%p3006_p2), [#allocation11], 784  }
  0x5b   : > { %3809 = vsyncadd (%p3006_p2), [#allocation11], 4294966512 }
  0x5c   : > { %3811 = dma.done.wait (%p3006_p2), [#allocation14], 1552  }
  0x5d   : > { %3813 = vsyncadd (%p3006_p2), [#allocation14], 4294965744 }
  0x5e   : > { %3815 = dma.done.wait (%p3006_p2), [#allocation17], 1552  }
  0x5f   : > { %3817 = vsyncadd (%p3006_p2), [#allocation17], 4294965744 }
  0x60   : > { %3819 = dma.done.wait (%p3006_p2), [#allocation20], 3088  }
  0x61   : > { %3821 = vsyncadd (%p3006_p2), [#allocation20], 4294964208 }
  0x62   : > { %3823 = dma.done.wait (%p3006_p2), [#allocation23], 1040  }
  0x63   : > { %3825 = vsyncadd (%p3006_p2), [#allocation23], 4294966256 }
  0x64   : > { %3827 = dma.done.wait (%p3006_p2), [#allocation26], 3088  }
  0x65   : > { %3829 = vsyncadd (%p3006_p2), [#allocation26], 4294964208 }
  0x66   : > { %3831 = dma.done.wait (%p3006_p2), [#allocation29], 1552  }
  0x67   : > { %3833 = vsyncadd (%p3006_p2), [#allocation29], 4294965744 }
  0x68   : > { %3835 = dma.done.wait (%p3006_p2), [#allocation32], 512  }
  0x69   : > { %3837 = vsyncadd (%p3006_p2), [#allocation32], 4294966784  ;;  %p1091_p6 = scmp.lt.s32.totalorder %s4021_s28, 1  ;;  %v3862_v1 = vmov 0   ;;  %s4695_s1 = sld [smem:[#allocation44_spill]]  ;;  %vm1189_vm0 = vcmask 1046528  }
  0x6a   : > { %3078 = vset.pattern.permute.xlu1 %v3862_v1  ;;  %3077 = vset.pattern.permute.xlu0 %v3862_v1  ;;  %s4696_s7 = sld [smem:[#allocation45_spill]]  ;;  %v4219_v21 = vld [vmem:[#allocation5] ss:$0 sm:$0xff]  ;;  %vm1238_vm1 = vcmask 1045504   ;;  %s3863_s5 = smov 16   ;;  %vm1380_vm10 = vcmask 130048  }
  0x6b   : > { %s4701_s28 = smov (!%p1091_p6, %s4021_s28), 1  ;;  %3079 = vset.pattern.permute.xlu2 %v3862_v1  ;;  %s3864_s25 = smov 32   ;;  %vm1389_vm11 = vcmask 261120   ;;  %vm1415_vm12 = vcmask 392192  }
  0x6c   : > { %s2877_s8 = sshll.u32 %s4701_s28, 6  ;;  %s3865_s9 = smov 64  }
  0x6d   : > { %s3866_s27 = smov 96   ;;  %s3868_s11 = smov 112  }
  0x6e   : > { %s4697_s3 = sld [smem:[#allocation58_spill]] }
  0x6f   : > { %s1095_s26 = scalar_lea.vmem %s4695_s1, %s2877_s8  ;;  %s2878_s1 = smul.u32 24, %s4701_s28 }
  0x70   : > { %v1104_v2 = vld [vmem:[%s1095_s26 + $0x10] sm:$0xff]  ;;  %v1102_v3 = vld [vmem:[%s1095_s26] sm:$0xff]  ;;  %v1105_v5 = vld [vmem:[%s1095_s26 + $0x18] sm:$0xff]  ;;  %s4698_s15 = sld [smem:[#allocation59_spill]] }
  0x71   : > { %1124 = vperm.xlu1 %3078, %v1104_v2   ;;  %1114 = vperm.xlu0 %3077, %v1102_v3   ;;  %v1106_v4 = vld [vmem:[%s1095_s26 + $0x20] sm:$0xff]  ;;  %v1103_v6 = vld [vmem:[%s1095_s26 + $0x8] sm:$0xff]  ;;  %v1109_v8 = vld [vmem:[%s1095_s26 + $0x38] sm:$0xff] }
  0x72   : > { %1134 = vperm.xlu2 %3079, %v1106_v4   ;;  %v1107_v7 = vld [vmem:[%s1095_s26 + $0x28] sm:$0xff]  ;;  %v1108_v9 = vld [vmem:[%s1095_s26 + $0x30] sm:$0xff]  ;;  %v1110_v11 = vld [vmem:[%s4696_s7] sm:$0x7] }
  0x73   : > { %v4205_v12 = vperm.slane %v1110_v11, 1  ;;  %v4208_v14 = vperm.slane %v1110_v11, 0  ;;  %v4210_v15 = vperm.slane %v1110_v11, 2 }
  0x76   : > { %s1100_s7 = scalar_lea.vmem %s4698_s15, %s2878_s1 }
  0x79   : > { %1129 = vperm.xlu1 %3078, %v1105_v5   ;;  %1119 = vperm.xlu0 %3077, %v1103_v6  }
  0x7a   : > { %1139 = vperm.xlu2 %3079, %v1107_v7  }
  0x81   : > { %1149 = vperm.xlu1 %3078, %v1109_v8   ;;  %1144 = vperm.xlu0 %3077, %v1108_v9  }
  0xcc   : > { %v1135_v10 = vpop.permute.xlu2 %1134 }
  0xcd   : > { %v1177_v13 = vmul.f32 %v4205_v12, %v1135_v10  ;;  %v1157_v17 = vmul.f32 %v4208_v14, %v1135_v10  ;;  %v1226_v23 = vmul.f32 %v4210_v15, %v1135_v10 }
  0xcf   : > { %v1197_v19 = vrot.slane %v1177_v13, 1  ;;  %v1168_v24 = vadd.f32 %v4219_v21, %v1157_v17  ;;  %v1246_v27 = vrot.slane %v1226_v23, 2 }
  0xd4   : > { %v1140_v16 = vpop.permute.xlu2 %1139 }
  0xd5   : > { %v4214_v18 = vmul.f32 %v4205_v12, %v1140_v16  ;;  %v4217_v20 = vmul.f32 %v4210_v15, %v1140_v16  ;;  %v1158_v36 = vmul.f32 %v4208_v14, %v1140_v16 }
  0xd7   : > { %v1199_v22 = vrot.slane %v4214_v18, 1  ;;  %v1248_v26 = vrot.slane %v4217_v20, 2 }
  0xd9   : > { %v1200_v25 = vsel %vm1189_vm0, %v1197_v19, %v1199_v22  ;;  %v1249_v29 = vsel %vm1238_vm1, %v1246_v27, %v1248_v26 }
  0xda   : > { %v1217_v28 = vadd.f32 %v1200_v25, %v1168_v24 }
  0xdc   : > { %v1266_v30 = vadd.f32 %v1249_v29, %v1217_v28 }
  0xde   : > { %v1282_v33 = vmul.f32 0.2, %v1266_v30  ;;  %vm1274_vm2 = vcmp.gt.f32.partialorder %v1266_v30, 0.0 }
  0xe0   : > { %v4234_v37 = vsel %vm1274_vm2, %v1266_v30, %v1282_v33  ;;  %v1169_v30 = vadd.f32 %v4219_v21, %v1158_v36 }
  0xe1   : > { %v1309_v33 = vrot.slane %v4234_v37, 1 }
  0xe3   : > { %v1125_v31 = vpop.permute.xlu1 %1124  ;;  %v1115_v32 = vpop.permute.xlu0 %1114 }
  0xe4   : > { %v1155_v34 = vmul.f32 %v4208_v14, %v1125_v31  ;;  %v1175_v35 = vmul.f32 %v4205_v12, %v1125_v31  ;;  %v1224_v38 = vmul.f32 %v4210_v15, %v1125_v31  ;;  %v1153_v39 = vmul.f32 %v4208_v14, %v1115_v32 }
  0xe5   : > { %v1173_v40 = vmul.f32 %v4205_v12, %v1115_v32  ;;  %v1222_v41 = vmul.f32 %v4210_v15, %v1115_v32 }
  0xe6   : > { %v1166_v48 = vadd.f32 %v4219_v21, %v1155_v34  ;;  %v1193_v49 = vrot.slane %v1175_v35, 1  ;;  %v1242_v56 = vrot.slane %v1224_v38, 2  ;;  %v1164_v60 = vadd.f32 %v4219_v21, %v1153_v39 }
  0xe7   : > { %v1190_v57 = vrot.slane %v1173_v40, 1  ;;  %v1239_v61 = vrot.slane %v1222_v41, 2 }
  0xeb   : > { %v1130_v42 = vpop.permute.xlu1 %1129  ;;  %v1120_v43 = vpop.permute.xlu0 %1119 }
  0xec   : > { %v1156_v44 = vmul.f32 %v4208_v14, %v1130_v42  ;;  %v1176_v45 = vmul.f32 %v4205_v12, %v1130_v42  ;;  %v1225_v46 = vmul.f32 %v4210_v15, %v1130_v42  ;;  %v1154_v47 = vmul.f32 %v4208_v14, %v1120_v43 }
  0xed   : > { %v1174_v50 = vmul.f32 %v4205_v12, %v1120_v43  ;;  %v1223_v51 = vmul.f32 %v4210_v15, %v1120_v43 }
  0xee   : > { %v1167_v52 = vadd.f32 %v4219_v21, %v1156_v44  ;;  %v1195_v53 = vrot.slane %v1176_v45, 1  ;;  %v1244_v54 = vrot.slane %v1225_v46, 2  ;;  %v1165_v55 = vadd.f32 %v4219_v21, %v1154_v47 }
  0xef   : > { %v1191_v58 = vrot.slane %v1174_v50, 1  ;;  %v1240_v59 = vrot.slane %v1223_v51, 2 }
  0xf0   : > { %v1196_v62 = vsel %vm1189_vm0, %v1193_v49, %v1195_v53  ;;  %v1198_v63 = vsel %vm1189_vm0, %v1195_v53, %v1197_v19  ;;  %v1245_v4 = vsel %vm1238_vm1, %v1242_v56, %v1244_v54  ;;  %v1247_v5 = vsel %vm1238_vm1, %v1244_v54, %v1246_v27 }
  0xf1   : > { %v1215_v0 = vadd.f32 %v1196_v62, %v1166_v48  ;;  %v1216_v1 = vadd.f32 %v1198_v63, %v1167_v52  ;;  %v1192_v2 = vsel %vm1189_vm0, %v1190_v57, %v1191_v58  ;;  %v1194_v3 = vsel %vm1189_vm0, %v1191_v58, %v1193_v49 }
  0xf2   : > { %v1213_v6 = vadd.f32 %v1192_v2, %v1164_v60  ;;  %v1214_v7 = vadd.f32 %v1194_v3, %v1165_v55  ;;  %v1241_v10 = vsel %vm1238_vm1, %v1239_v61, %v1240_v59  ;;  %v1243_v11 = vsel %vm1238_vm1, %v1240_v59, %v1242_v56 }
  0xf3   : > { %v1264_v8 = vadd.f32 %v1245_v4, %v1215_v0  ;;  %v1265_v9 = vadd.f32 %v1247_v5, %v1216_v1  ;;  %v1150_v13 = vpop.permute.xlu1 %1149  ;;  %v1145_v16 = vpop.permute.xlu0 %1144  ;;  %v1348_v3 = vrot.slane %v4234_v37, 2 }
  0xf4   : > { %v1262_v17 = vadd.f32 %v1241_v10, %v1213_v6  ;;  %v1263_v19 = vadd.f32 %v1243_v11, %v1214_v7  ;;  %v1160_v23 = vmul.f32 %v4208_v14, %v1150_v13  ;;  %v1180_v24 = vmul.f32 %v4205_v12, %v1150_v13 }
  0xf5   : > { %v1280_v25 = vmul.f32 0.2, %v1264_v8  ;;  %v1281_v28 = vmul.f32 0.2, %v1265_v9  ;;  %v1229_v27 = vmul.f32 %v4210_v15, %v1150_v13  ;;  %v1159_v29 = vmul.f32 %v4208_v14, %v1145_v16 }
  0xf6   : > { %v1278_v31 = vmul.f32 0.2, %v1262_v17  ;;  %v1279_v32 = vmul.f32 0.2, %v1263_v19  ;;  %v1171_v34 = vadd.f32 %v4219_v21, %v1160_v23  ;;  %v1203_v35 = vrot.slane %v1180_v24, 1 }
  0xf7   : > { %v1179_v38 = vmul.f32 %v4205_v12, %v1145_v16  ;;  %v1228_v39 = vmul.f32 %v4210_v15, %v1145_v16  ;;  %v1252_v40 = vrot.slane %v1229_v27, 2  ;;  %v1170_v41 = vadd.f32 %v4219_v21, %v1159_v29 }
  0xf8   : > { %vm1272_vm3 = vcmp.gt.f32.partialorder %v1264_v8, 0.0  ;;  %vm1273_vm4 = vcmp.gt.f32.partialorder %v1265_v9, 0.0  ;;  %vm1270_vm5 = vcmp.gt.f32.partialorder %v1262_v17, 0.0  ;;  %vm1271_vm6 = vcmp.gt.f32.partialorder %v1263_v19, 0.0 }
  0xf9   : > { %v1201_v42 = vrot.slane %v1179_v38, 1  ;;  %v1250_v14 = vrot.slane %v1228_v39, 2  ;;  %v4268_v43 = vsel %vm1272_vm3, %v1264_v8, %v1280_v25  ;;  %v4270_v36 = vsel %vm1273_vm4, %v1265_v9, %v1281_v28  ;;  %v1402_v38 = vld [vmem:[#allocation7 + $0x20] sm:$0xff]  ;;  %v1403_v39 = vld [vmem:[#allocation7 + $0x28] sm:$0xff] }
  0xfa   : > { %v1305_v44 = vrot.slane %v4268_v43, 1  ;;  %v1307_v45 = vrot.slane %v4270_v36, 1  ;;  %v1220_v12 = vadd.f32 %v1203_v35, %v1171_v34  ;;  %v4286_v52 = vsel %vm1270_vm5, %v1262_v17, %v1278_v31 }
  0xfb   : > { %v1202_v15 = vsel %vm1189_vm0, %v1199_v22, %v1201_v42  ;;  %v1204_v21 = vsel %vm1189_vm0, %v1201_v42, %v1203_v35  ;;  %v1251_v46 = vsel %vm1238_vm1, %v1248_v26, %v1250_v14  ;;  %v1253_v49 = vsel %vm1238_vm1, %v1250_v14, %v1252_v40  ;;  %v1401_v42 = vld [vmem:[#allocation7 + $0x18] sm:$0xff] }
  0xfc   : > { %v1218_v47 = vadd.f32 %v1202_v15, %v1169_v30  ;;  %v1219_v48 = vadd.f32 %v1204_v21, %v1170_v41  ;;  %v1308_v50 = vsel %vm1189_vm0, %v1305_v44, %v1307_v45  ;;  %v1310_v51 = vsel %vm1189_vm0, %v1307_v45, %v1309_v33  ;;  %v1400_v41 = vld [vmem:[#allocation7 + $0x10] sm:$0xff]  ;;  %v1399_v45 = vld [vmem:[#allocation7 + $0x8] sm:$0xff] }
  0xfd   : > { %v4288_v18 = vsel %vm1271_vm6, %v1263_v19, %v1279_v32  ;;  %v1344_v22 = vrot.slane %v4268_v43, 2  ;;  %v3090_v54 = vpack.i.bf16 %v1310_v51, %v1308_v50  ;;  %v1341_v26 = vrot.slane %v4286_v52, 2 }
  0xfe   : > { %v1267_v53 = vadd.f32 %v1251_v46, %v1218_v47  ;;  %v1268_v20 = vadd.f32 %v1253_v49, %v1219_v48  ;;  %v1269_v55 = vadd.f32 %v1252_v40, %v1220_v12  ;;  %v1342_v56 = vrot.slane %v4288_v18, 2 }
  0xff   : > { %v1302_v57 = vrot.slane %v4286_v52, 1  ;;  %v1303_v58 = vrot.slane %v4288_v18, 1  ;;  %3091 = vrot.lane.b32.xlu1 %v3090_v54, %s3863_s5  ;;  %v1346_v5 = vrot.slane %v4270_v36, 2  ;;  %v1410_v40 = vpack.c.bf16 %v1403_v39, %v1402_v38 }
 0x100   : > { %v1283_v59 = vmul.f32 0.2, %v1267_v53  ;;  %v1284_v60 = vmul.f32 0.2, %v1268_v20  ;;  %vm1275_vm7 = vcmp.gt.f32.partialorder %v1267_v53, 0.0  ;;  %vm1276_vm8 = vcmp.gt.f32.partialorder %v1268_v20, 0.0 }
 0x101   : > { %v1343_v61 = vsel %vm1238_vm1, %v1341_v26, %v1342_v56  ;;  %v1345_v62 = vsel %vm1238_vm1, %v1342_v56, %v1344_v22  ;;  %v1304_v63 = vsel %vm1189_vm0, %v1302_v57, %v1303_v58  ;;  %v1306_v0 = vsel %vm1189_vm0, %v1303_v58, %v1305_v44  ;;  %1433 = vmatpush.bf16.msra.mxu0 %v1410_v40  ;;  %v1398_v44 = vld [vmem:[#allocation7] sm:$0xff] }
 0x102   : > { %v3085_v1 = vpack.i.bf16 %v1345_v62, %v1343_v61  ;;  %v3080_v2 = vpack.i.bf16 %v1306_v0, %v1304_v63  ;;  %v1285_v4 = vmul.f32 0.2, %v1269_v55  ;;  %v4302_v6 = vsel %vm1275_vm7, %v1267_v53, %v1283_v59 }
 0x103   : > { %v4304_v7 = vsel %vm1276_vm8, %v1268_v20, %v1284_v60  ;;  %v1350_v8 = vrot.slane %v4302_v6, 2  ;;  %v1311_v10 = vrot.slane %v4302_v6, 1  ;;  %vm1277_vm9 = vcmp.gt.f32.partialorder %v1269_v55, 0.0 }
 0x104   : > { %3086 = vrot.lane.b32.xlu0 %v3085_v1, %s3864_s25  ;;  %3081 = vrot.lane.b32.xlu2 %v3080_v2, %s3863_s5  ;;  %v1352_v9 = vrot.slane %v4304_v7, 2  ;;  %v1313_v11 = vrot.slane %v4304_v7, 1  ;;  %v1347_v23 = vsel %vm1238_vm1, %v1344_v22, %v1346_v5  ;;  %v1349_v24 = vsel %vm1238_vm1, %v1346_v5, %v1348_v3 }
 0x105   : > { %v1351_v13 = vsel %vm1238_vm1, %v1348_v3, %v1350_v8  ;;  %v1312_v17 = vsel %vm1189_vm0, %v1309_v33, %v1311_v10  ;;  %v4320_v27 = vsel %vm1277_vm9, %v1269_v55, %v1285_v4  ;;  %v3095_v29 = vpack.i.bf16 %v1349_v24, %v1347_v23 }
 0x106   : > { %v1353_v16 = vsel %vm1238_vm1, %v1350_v8, %v1352_v9  ;;  %v1314_v19 = vsel %vm1189_vm0, %v1311_v10, %v1313_v11  ;;  %v1315_v30 = vrot.slane %v4320_v27, 1  ;;  %v1354_v31 = vrot.slane %v4320_v27, 2 }
 0x107   : > { %v3105_v25 = vpack.i.bf16 %v1353_v16, %v1351_v13  ;;  %v3100_v28 = vpack.i.bf16 %v1314_v19, %v1312_v17  ;;  %v1409_v14 = vpack.c.bf16 %v1401_v42, %v1400_v41  ;;  %v1408_v12 = vpack.c.bf16 %v1399_v45, %v1398_v44 }
 0x108   : > { %v1316_v32 = vsel %vm1189_vm0, %v1313_v11, %v1315_v30  ;;  %v1355_v33 = vsel %vm1238_vm1, %v1352_v9, %v1354_v31  ;;  %vm1488_vm6 = vcmask 125952  }
 0x109   : > { %3106 = vrot.lane.b32.xlu1 %v3105_v25, %s3864_s25  ;;  %v3110_v34 = vpack.i.bf16 %v1315_v30, %v1316_v32  ;;  %v3115_v35 = vpack.i.bf16 %v1354_v31, %v1355_v33  ;;  %1434 = vmatpush.bf16.msra.mxu0 %v1409_v14  ;;  %v3241_v25 = vld [vmem:[#allocation9] ss:$0 sm:$0xff] }
 0x10c   : > { %3096 = vrot.lane.b32.xlu2 %v3095_v29, %s3864_s25  ;;  %3101 = vrot.lane.b32.xlu0 %v3100_v28, %s3863_s5 }
 0x10d   : > { %1435 = vmatpush.bf16.msra.mxu0 %v1408_v12 }
 0x114   : > { %3111 = vrot.lane.b32.xlu2 %v3110_v34, %s3863_s5  ;;  %3116 = vrot.lane.b32.xlu0 %v3115_v35, %s3864_s25 }
 0x15e   : > { %v3082_v15 = vpop.permute.xlu2 %3081 }
 0x15f   : > { %v3084_v21 = vunpack.i.h.bf16 %v3082_v15  ;;  %v3083_v46 = vunpack.i.l.bf16 %v3082_v15 }
 0x161   : > { %v1382_v50 = vsel %vm1380_vm10, %v4288_v18, %v3084_v21  ;;  %v1381_v51 = vsel %vm1380_vm10, %v4286_v52, %v3083_v46 }
 0x166   : > { %v3097_v56 = vpop.permute.xlu2 %3096 }
 0x167   : > { %v3099_v58 = vunpack.i.h.bf16 %v3097_v56  ;;  %v3098_v52 = vunpack.i.l.bf16 %v3097_v56 }
 0x16e   : > { %v3112_v9 = vpop.permute.xlu2 %3111 }
 0x16f   : > { %v3114_v11 = vunpack.i.h.bf16 %v3112_v9  ;;  %v3113_v13 = vunpack.i.l.bf16 %v3112_v9 }
 0x171   : > { %v3092_v54 = vpop.permute.xlu1 %3091  ;;  %v1388_v19 = vsel %vm1380_vm10, %v4320_v27, %v3114_v11 }
 0x172   : > { %v3094_v26 = vunpack.i.h.bf16 %v3092_v54  ;;  %v3093_v55 = vunpack.i.l.bf16 %v3092_v54 }
 0x174   : > { %v1384_v57 = vsel %vm1380_vm10, %v4270_v36, %v3094_v26  ;;  %v1383_v18 = vsel %vm1380_vm10, %v4268_v43, %v3093_v55 }
 0x175   : > { %v1392_v59 = vsel %vm1389_vm11, %v1383_v18, %v3098_v52  ;;  %v1393_v60 = vsel %vm1389_vm11, %v1384_v57, %v3099_v58 }
 0x176   : > { %v3087_v47 = vpop.permute.xlu0 %3086  ;;  %v1405_v61 = vpack.c.bf16 %v1393_v60, %v1392_v59 }
 0x177   : > { %v3089_v48 = vunpack.i.h.bf16 %v3087_v47  ;;  %v3088_v49 = vunpack.i.l.bf16 %v3087_v47 }
 0x179   : > { %v1390_v22 = vsel %vm1389_vm11, %v1381_v51, %v3088_v49  ;;  %v1391_v53 = vsel %vm1389_vm11, %v1382_v50, %v3089_v48 }
 0x17a   : > { %v1404_v20 = vpack.c.bf16 %v1391_v53, %v1390_v22 }
 0x17b   : > { %v3107_v63 = vpop.permute.xlu1 %3106 }
 0x17c   : > { %2846 = vmatmul.msk.bf16.vlgmr.msra.gmra.mxu0 %vm1415_vm12, %v1404_v20  ;;  %v3109_v2 = vunpack.i.h.bf16 %v3107_v63  ;;  %v3108_v3 = vunpack.i.l.bf16 %v3107_v63 }
 0x17e   : > { %v3102_v62 = vpop.permute.xlu0 %3101 }
 0x17f   : > { %v3104_v0 = vunpack.i.h.bf16 %v3102_v62  ;;  %v3103_v1 = vunpack.i.l.bf16 %v3102_v62 }
 0x181   : > { %v1386_v36 = vsel %vm1380_vm10, %v4302_v6, %v3104_v0  ;;  %v1385_v43 = vsel %vm1380_vm10, %v4234_v37, %v3103_v1  ;;  %v1387_v6 = vsel %vm1380_vm10, %v4304_v7, %v3113_v13 }
 0x182   : > { %v1394_v4 = vsel %vm1389_vm11, %v1385_v43, %v3108_v3  ;;  %v1395_v5 = vsel %vm1389_vm11, %v1386_v36, %v3109_v2 }
 0x183   : > { %v1406_v8 = vpack.c.bf16 %v1395_v5, %v1394_v4 }
 0x186   : > { %v3117_v10 = vpop.permute.xlu0 %3116 }
 0x187   : > { %v3119_v16 = vunpack.i.h.bf16 %v3117_v10  ;;  %v3118_v17 = vunpack.i.l.bf16 %v3117_v10 }
 0x189   : > { %v1396_v37 = vsel %vm1389_vm11, %v1387_v6, %v3118_v17  ;;  %v1397_v23 = vsel %vm1389_vm11, %v1388_v19, %v3119_v16 }
 0x18a   : > { %v1407_v24 = vpack.c.bf16 %v1397_v23, %v1396_v37 }
 0x18c   : > { %2847 = vmatmul.msk.bf16.gmra.mxu0 %vm1415_vm12, %v1405_v61 }
 0x19c   : > { %2848 = vmatmul.msk.bf16.gmra.mxu0 %vm1415_vm12, %v1406_v8 }
 0x1ac   : > { %2849 = vmatmul.msk.bf16.gmra.mxu0 %vm1415_vm12, %v1407_v24  ;;  %v1563_v24 = vld [vmem:[#allocation10 + $0x20] sm:$0xff] }
 0x1f9   : > { %v1437_v28 = vpop.f32.mrf.mxu0 }
 0x1fa   : > { %v1438_v29 = vadd.f32 %v3241_v25, %v1437_v28  ;;  %v1561_v28 = vld [vmem:[#allocation10 + $0x10] sm:$0xff] }
 0x1fc   : > { %vm1457_vm13 = vcmp.gt.f32.partialorder %v1438_v29, 0.0  ;;  %v1465_v30 = vmul.f32 0.2, %v1438_v29 }
 0x1fe   : > { %v1473_v31 = vsel %vm1457_vm13, %v1438_v29, %v1465_v30  ;;  %v1562_v30 = vld [vmem:[#allocation10 + $0x18] sm:$0xff] }
 0x1ff   : > { %1481 = vst.msk [vmem:[#allocation2] sm:$0xff] %vm1380_vm10, %v1473_v31  ;;  %v1568_v31 = vpack.c.bf16 %v1562_v30, %v1561_v28  ;;  %v1672_v28 = vld [vmem:[#allocation13 + $0x50] sm:$0xff] }
 0x201   : > { %v1439_v32 = vpop.f32.mrf.mxu0 }
 0x202   : > { %v1440_v27 = vadd.f32 %v3241_v25, %v1439_v32  ;;  %v1559_v32 = vld [vmem:[#allocation10] sm:$0xff] }
 0x204   : > { %vm1458_vm14 = vcmp.gt.f32.partialorder %v1440_v27, 0.0  ;;  %v1466_v33 = vmul.f32 0.2, %v1440_v27 }
 0x206   : > { %v1474_v7 = vsel %vm1458_vm14, %v1440_v27, %v1466_v33  ;;  %v1560_v27 = vld [vmem:[#allocation10 + $0x8] sm:$0xff] }
 0x207   : > { %1482 = vst.msk [vmem:[#allocation2 + $0x8] sm:$0xff] %vm1380_vm10, %v1474_v7  ;;  %v1567_v33 = vpack.c.bf16 %v1560_v27, %v1559_v32  ;;  %v1671_v32 = vld [vmem:[#allocation13 + $0x48] sm:$0xff]  ;;  %v1668_v27 = vld [vmem:[#allocation13 + $0x30] sm:$0xff] }
 0x209   : > { %v1442_v34 = vpop.f32.mrf.mxu0 }
 0x20a   : > { %v1443_v35 = vadd.f32 %v3241_v25, %v1442_v34 }
 0x20c   : > { %vm1459_vm15 = vcmp.gt.f32.partialorder %v1443_v35, 0.0  ;;  %v1467_v38 = vmul.f32 0.2, %v1443_v35 }
 0x20e   : > { %v1475_v39 = vsel %vm1459_vm15, %v1443_v35, %v1467_v38  ;;  %v1490_v53 = vld [vmem:[#allocation2] ss:$2 sm:$0xff]  ;;  %v1498_v20 = vld [vmem:[#allocation2 + $0x1] ss:$2 sm:$0xff]  ;;  %vm1657_vm15 = vcmask 523264  }
 0x20f   : > { %1483 = vst.msk [vmem:[#allocation2 + $0x10] sm:$0xff] %vm1380_vm10, %v1475_v39  ;;  %v1505_v55 = vmax.f32 %v1490_v53, %v1498_v20 }
 0x211   : > { %v1444_v40 = vpop.f32.mrf.mxu0  ;;  %v1532_v61 = vrot.slane %v1505_v55, 2  ;;  %v1513_v63 = vrot.slane %v1505_v55, 1 }
 0x212   : > { %v1445_v41 = vadd.f32 %v3241_v25, %v1444_v40 }
 0x214   : > { %vm1460_vm2 = vcmp.gt.f32.partialorder %v1445_v41, 0.0  ;;  %v1468_v42 = vmul.f32 0.2, %v1445_v41 }
 0x216   : > { %v1476_v14 = vsel %vm1460_vm2, %v1445_v41, %v1468_v42  ;;  %vm1686_vm2 = vcmask 785408  }
 0x217   : > { %1484 = vst.msk [vmem:[#allocation2 + $0x18] sm:$0xff] %vm1380_vm10, %v1476_v14 }
 0x219   : > { %v1447_v44 = vpop.f32.mrf.mxu0 }
 0x21a   : > { %v1448_v45 = vadd.f32 %v3241_v25, %v1447_v44 }
 0x21c   : > { %vm1461_vm3 = vcmp.gt.f32.partialorder %v1448_v45, 0.0  ;;  %v1469_v12 = vmul.f32 0.2, %v1448_v45 }
 0x21e   : > { %v1477_v15 = vsel %vm1461_vm3, %v1448_v45, %v1469_v12  ;;  %v1492_v49 = vld [vmem:[#allocation2 + $0x10] ss:$2 sm:$0xff]  ;;  %v1500_v50 = vld [vmem:[#allocation2 + $0x11] ss:$2 sm:$0xff] }
 0x21f   : > { %1485 = vst.msk [vmem:[#allocation2 + $0x20] sm:$0xff] %vm1380_vm10, %v1477_v15  ;;  %v1506_v54 = vmax.f32 %v1492_v49, %v1500_v50 }
 0x221   : > { %v1449_v21 = vpop.f32.mrf.mxu0  ;;  %v1533_v52 = vrot.slane %v1506_v54, 2  ;;  %v1514_v59 = vrot.slane %v1506_v54, 1 }
 0x222   : > { %v1450_v46 = vadd.f32 %v3241_v25, %v1449_v21 }
 0x223   : > { %v1534_v2 = vsel %vm1238_vm1, %v1532_v61, %v1533_v52  ;;  %v1515_v36 = vsel %vm1189_vm0, %v1513_v63, %v1514_v59 }
 0x224   : > { %vm1462_vm4 = vcmp.gt.f32.partialorder %v1450_v46, 0.0  ;;  %v1470_v47 = vmul.f32 0.2, %v1450_v46 }
 0x226   : > { %v1478_v48 = vsel %vm1462_vm4, %v1450_v46, %v1470_v47 }
 0x227   : > { %1486 = vst.msk [vmem:[#allocation2 + $0x28] sm:$0xff] %vm1380_vm10, %v1478_v48 }
 0x229   : > { %v1452_v51 = vpop.f32.mrf.mxu0 }
 0x22a   : > { %v1453_v22 = vadd.f32 %v3241_v25, %v1452_v51 }
 0x22c   : > { %vm1463_vm5 = vcmp.gt.f32.partialorder %v1453_v22, 0.0  ;;  %v1471_v26 = vmul.f32 0.2, %v1453_v22 }
 0x22e   : > { %v1479_v56 = vsel %vm1463_vm5, %v1453_v22, %v1471_v26  ;;  %v1494_v57 = vld [vmem:[#allocation2 + $0x20] ss:$2 sm:$0xff]  ;;  %v1502_v18 = vld [vmem:[#allocation2 + $0x21] ss:$2 sm:$0xff] }
 0x22f   : > { %1487 = vst.msk [vmem:[#allocation2 + $0x30] sm:$0xff] %vm1380_vm10, %v1479_v56  ;;  %v4366_v58 = vmax.f32 %v1494_v57, %v1502_v18 }
 0x231   : > { %v1454_v60 = vpop.f32.mrf.mxu0  ;;  %v1535_v62 = vrot.slane %v4366_v58, 2  ;;  %v1516_v0 = vrot.slane %v4366_v58, 1 }
 0x232   : > { %v1455_v1 = vadd.f32 %v3241_v25, %v1454_v60  ;;  %v1564_v25 = vld [vmem:[#allocation10 + $0x28] sm:$0xff] }
 0x233   : > { %v1536_v3 = vsel %vm1238_vm1, %v1533_v52, %v1535_v62  ;;  %v1517_v43 = vsel %vm1189_vm0, %v1514_v59, %v1516_v0  ;;  %v1569_v29 = vpack.c.bf16 %v1564_v25, %v1563_v24 }
 0x234   : > { %vm1464_vm7 = vcmp.gt.f32.partialorder %v1455_v1, 0.0  ;;  %v1472_v4 = vmul.f32 0.2, %v1455_v1  ;;  %v3125_v5 = vpack.i.bf16 %v1536_v3, %v1534_v2  ;;  %v3120_v8 = vpack.i.bf16 %v1517_v43, %v1515_v36 }
 0x235   : > { %1585 = vmatpush.bf16.msra.mxu1 %v1569_v29  ;;  %v1673_v29 = vld [vmem:[#allocation13 + $0x58] sm:$0xff] }
 0x236   : > { %v1480_v9 = vsel %vm1464_vm7, %v1455_v1, %v1472_v4  ;;  %3126 = vrot.lane.b32.xlu2 %v3125_v5, %s3864_s25  ;;  %3121 = vrot.lane.b32.xlu1 %v3120_v8, %s3863_s5  ;;  %v1681_v30 = vpack.c.bf16 %v1673_v29, %v1672_v28  ;;  %vm1727_vm7 = vcmask 254976  }
 0x237   : > { %1489 = vst.msk [vmem:[#allocation2 + $0x38] sm:$0xf] %vm1488_vm6, %v1480_v9 }
 0x238   : > { %1695 = vmatpush.bf16.msra.mxu2 %v1681_v30  ;;  %v1766_v30 = vld [vmem:[#allocation16 + $0x20] sm:$0xff] }
 0x239   : > { %1586 = vmatpush.bf16.msra.mxu1 %v1568_v31  ;;  %v1670_v31 = vld [vmem:[#allocation13 + $0x40] sm:$0xff] }
 0x23d   : > { %1587 = vmatpush.bf16.msra.mxu1 %v1567_v33  ;;  %v1680_v33 = vpack.c.bf16 %v1671_v32, %v1670_v31  ;;  %v1767_v31 = vld [vmem:[#allocation16 + $0x28] sm:$0xff] }
 0x23e   : > { %v1496_v10 = vld [vmem:[#allocation2 + $0x30] ss:$2 sm:$0x3f]  ;;  %v1504_v11 = vld [vmem:[#allocation2 + $0x31] ss:$2 sm:$0x3f] }
 0x23f   : > { %v1508_v13 = vmax.f32 %v1496_v10, %v1504_v11  ;;  %1696 = vmatpush.bf16.msra.mxu2 %v1680_v33  ;;  %v1777_v33 = vpack.c.bf16 %v1767_v31, %v1766_v30 }
 0x241   : > { %v1518_v16 = vrot.slane %v1508_v13, 1  ;;  %v1537_v17 = vrot.slane %v1508_v13, 2 }
 0x243   : > { %v1519_v19 = vsel %vm1189_vm0, %v1516_v0, %v1518_v16  ;;  %v1538_v6 = vsel %vm1238_vm1, %v1535_v62, %v1537_v17 }
 0x244   : > { %v3130_v37 = vpack.i.bf16 %v1518_v16, %v1519_v19  ;;  %v3135_v23 = vpack.i.bf16 %v1537_v17, %v1538_v6 }
 0x246   : > { %3131 = vrot.lane.b32.xlu0 %v3130_v37, %s3863_s5  ;;  %3136 = vrot.lane.b32.xlu1 %v3135_v23, %s3864_s25 }
 0x290   : > { %v3127_v7 = vpop.permute.xlu2 %3126 }
 0x291   : > { %v3129_v39 = vunpack.i.h.bf16 %v3127_v7  ;;  %v3128_v40 = vunpack.i.l.bf16 %v3127_v7  ;;  %v1669_v7 = vld [vmem:[#allocation13 + $0x38] sm:$0xff] }
 0x2a8   : > { %v3122_v34 = vpop.permute.xlu1 %3121 }
 0x2a9   : > { %v3124_v35 = vunpack.i.h.bf16 %v3122_v34  ;;  %v3123_v38 = vunpack.i.l.bf16 %v3122_v34  ;;  %v1679_v34 = vpack.c.bf16 %v1669_v7, %v1668_v27  ;;  %v1764_v7 = vld [vmem:[#allocation16 + $0x10] sm:$0xff] }
 0x2ab   : > { %v1552_v41 = vsel %vm1380_vm10, %v1506_v54, %v3124_v35  ;;  %v1551_v42 = vsel %vm1380_vm10, %v1505_v55, %v3123_v38  ;;  %v3242_v54 = vld [vmem:[#allocation12] ss:$0 sm:$0xff]  ;;  %v1666_v35 = vld [vmem:[#allocation13 + $0x20] sm:$0xff]  ;;  %v1667_v38 = vld [vmem:[#allocation13 + $0x28] sm:$0xff]  ;;  %1697 = vmatpush.bf16.msra.mxu2 %v1679_v34 }
 0x2ac   : > { %v1555_v14 = vsel %vm1389_vm11, %v1551_v42, %v3128_v40  ;;  %v1556_v44 = vsel %vm1389_vm11, %v1552_v41, %v3129_v39  ;;  %v1678_v39 = vpack.c.bf16 %v1667_v38, %v1666_v35  ;;  %v1664_v40 = vld [vmem:[#allocation13 + $0x10] sm:$0xff]  ;;  %v1665_v41 = vld [vmem:[#allocation13 + $0x18] sm:$0xff] }
 0x2ad   : > { %v1565_v45 = vpack.c.bf16 %v1556_v44, %v1555_v14  ;;  %v1677_v42 = vpack.c.bf16 %v1665_v41, %v1664_v40  ;;  %v1662_v14 = vld [vmem:[#allocation13] sm:$0xff]  ;;  %v1663_v44 = vld [vmem:[#allocation13 + $0x8] sm:$0xff] }
 0x2ae   : > { %v1765_v34 = vld [vmem:[#allocation16 + $0x18] sm:$0xff] }
 0x2af   : > { %2850 = vmatmul.msk.bf16.vlgmr.msra.gmra.mxu1 %vm1415_vm12, %v1565_v45  ;;  %1698 = vmatpush.bf16.msra.mxu2 %v1678_v39  ;;  %v1676_v45 = vpack.c.bf16 %v1663_v44, %v1662_v14  ;;  %v1776_v40 = vpack.c.bf16 %v1765_v34, %v1764_v7  ;;  %v1837_v7 = vld [vmem:[#allocation19 + $0x58] sm:$0xff] }
 0x2b3   : > { %1699 = vmatpush.bf16.msra.mxu2 %v1677_v42 }
 0x2b7   : > { %1700 = vmatpush.bf16.msra.mxu2 %v1676_v45 }
 0x2b8   : > { %v3132_v12 = vpop.permute.xlu0 %3131  ;;  %v3137_v15 = vpop.permute.xlu1 %3136 }
 0x2b9   : > { %v3134_v21 = vunpack.i.h.bf16 %v3132_v12  ;;  %v3133_v46 = vunpack.i.l.bf16 %v3132_v12  ;;  %v3139_v47 = vunpack.i.h.bf16 %v3137_v15  ;;  %v3138_v48 = vunpack.i.l.bf16 %v3137_v15 }
 0x2bb   : > { %v1554_v49 = vsel %vm1380_vm10, %v1508_v13, %v3134_v21  ;;  %v1553_v50 = vsel %vm1380_vm10, %v4366_v58, %v3133_v46 }
 0x2bc   : > { %v1557_v51 = vsel %vm1389_vm11, %v1553_v50, %v3138_v48  ;;  %v1558_v22 = vsel %vm1389_vm11, %v1554_v49, %v3139_v47 }
 0x2bd   : > { %v1566_v53 = vpack.c.bf16 %v1558_v22, %v1557_v51 }
 0x2bf   : > { %2851 = vmatmul.msk.bf16.gmra.mxu1 %vm1415_vm12, %v1566_v53 }
 0x32c   : > { %v1589_v20 = vpop.f32.mrf.mxu1 }
 0x32d   : > { %v1590_v56 = vadd.f32 %v3242_v54, %v1589_v20 }
 0x32f   : > { %v1603_v18 = vmul.f32 0.2, %v1590_v56  ;;  %vm1599_vm9 = vcmp.gt.f32.partialorder %v1590_v56, 0.0 }
 0x331   : > { %v4393_v60 = vsel %vm1599_vm9, %v1590_v56, %v1603_v18 }
 0x332   : > { %v1615_v1 = vrot.slane %v4393_v60, 1  ;;  %v1634_v2 = vrot.slane %v4393_v60, 2 }
 0x334   : > { %v1591_v26 = vpop.f32.mrf.mxu1 }
 0x335   : > { %v1592_v55 = vadd.f32 %v3242_v54, %v1591_v26 }
 0x337   : > { %v1604_v57 = vmul.f32 0.2, %v1592_v55  ;;  %vm1600_vm8 = vcmp.gt.f32.partialorder %v1592_v55, 0.0 }
 0x339   : > { %v4391_v59 = vsel %vm1600_vm8, %v1592_v55, %v1604_v57 }
 0x33a   : > { %v1616_v62 = vrot.slane %v4391_v59, 1  ;;  %v1635_v63 = vrot.slane %v4391_v59, 2 }
 0x33c   : > { %v1594_v52 = vpop.f32.mrf.mxu1  ;;  %v1636_v4 = vsel %vm1238_vm1, %v1634_v2, %v1635_v63  ;;  %v1617_v8 = vsel %vm1189_vm0, %v1615_v1, %v1616_v62 }
 0x33d   : > { %v1595_v58 = vadd.f32 %v3242_v54, %v1594_v52 }
 0x33f   : > { %vm1601_vm13 = vcmp.gt.f32.partialorder %v1595_v58, 0.0  ;;  %v1605_v61 = vmul.f32 0.2, %v1595_v58 }
 0x341   : > { %v4397_v0 = vsel %vm1601_vm13, %v1595_v58, %v1605_v61  ;;  %v3243_v61 = vld [vmem:[#allocation15] ss:$0 sm:$0xff] }
 0x342   : > { %v1618_v3 = vrot.slane %v4397_v0, 1  ;;  %v1637_v36 = vrot.slane %v4397_v0, 2 }
 0x344   : > { %v1596_v43 = vpop.f32.mrf.mxu1  ;;  %v1638_v5 = vsel %vm1238_vm1, %v1635_v63, %v1637_v36  ;;  %v1619_v9 = vsel %vm1189_vm0, %v1616_v62, %v1618_v3 }
 0x345   : > { %v1597_v10 = vadd.f32 %v3242_v54, %v1596_v43  ;;  %v3145_v11 = vpack.i.bf16 %v1638_v5, %v1636_v4  ;;  %v3140_v13 = vpack.i.bf16 %v1619_v9, %v1617_v8 }
 0x347   : > { %vm1602_vm14 = vcmp.gt.f32.partialorder %v1597_v10, 0.0  ;;  %v1606_v16 = vmul.f32 0.2, %v1597_v10  ;;  %3146 = vrot.lane.b32.xlu0 %v3145_v11, %s3865_s9  ;;  %3141 = vrot.lane.b32.xlu2 %v3140_v13, %s3864_s25  ;;  %v1773_v11 = vld [vmem:[#allocation16 + $0x58] sm:$0xff]  ;;  %v1770_v13 = vld [vmem:[#allocation16 + $0x40] sm:$0xff] }
 0x349   : > { %v1610_v17 = vsel %vm1602_vm14, %v1597_v10, %v1606_v16  ;;  %v1772_v10 = vld [vmem:[#allocation16 + $0x50] sm:$0xff]  ;;  %v1771_v16 = vld [vmem:[#allocation16 + $0x48] sm:$0xff] }
 0x34a   : > { %v1620_v19 = vrot.slane %v1610_v17, 1  ;;  %v1639_v6 = vrot.slane %v1610_v17, 2 }
 0x34c   : > { %v1621_v37 = vsel %vm1189_vm0, %v1618_v3, %v1620_v19  ;;  %v1640_v23 = vsel %vm1238_vm1, %v1637_v36, %v1639_v6 }
 0x34d   : > { %v3150_v24 = vpack.i.bf16 %v1620_v19, %v1621_v37  ;;  %v3155_v25 = vpack.i.bf16 %v1639_v6, %v1640_v23  ;;  %v1779_v37 = vpack.c.bf16 %v1771_v16, %v1770_v13  ;;  %v1768_v23 = vld [vmem:[#allocation16 + $0x30] sm:$0xff] }
 0x34f   : > { %3151 = vrot.lane.b32.xlu1 %v3150_v24, %s3864_s25  ;;  %3156 = vrot.lane.b32.xlu2 %v3155_v25, %s3865_s9  ;;  %v1769_v24 = vld [vmem:[#allocation16 + $0x38] sm:$0xff] }
 0x350   : > { %v1778_v29 = vpack.c.bf16 %v1769_v24, %v1768_v23  ;;  %v1838_v23 = vld [vmem:[#allocation19 + $0x60] sm:$0xff] }
 0x3a1   : > { %v3142_v12 = vpop.permute.xlu2 %3141 }
 0x3a2   : > { %v3144_v15 = vunpack.i.h.bf16 %v3142_v12  ;;  %v3143_v21 = vunpack.i.l.bf16 %v3142_v12 }
 0x3a4   : > { %v1654_v49 = vsel %vm1389_vm11, %v4391_v59, %v3144_v15  ;;  %v1653_v50 = vsel %vm1389_vm11, %v4393_v60, %v3143_v21 }
 0x3a9   : > { %v3157_v55 = vpop.permute.xlu2 %3156 }
 0x3aa   : > { %v3159_v18 = vunpack.i.h.bf16 %v3157_v55  ;;  %v3158_v52 = vunpack.i.l.bf16 %v3157_v55 }
 0x3b9   : > { %v3147_v46 = vpop.permute.xlu0 %3146 }
 0x3ba   : > { %v3149_v47 = vunpack.i.h.bf16 %v3147_v46  ;;  %v3148_v48 = vunpack.i.l.bf16 %v3147_v46 }
 0x3bc   : > { %v1658_v51 = vsel %vm1657_vm15, %v1653_v50, %v3148_v48  ;;  %v1659_v22 = vsel %vm1657_vm15, %v1654_v49, %v3149_v47  ;;  %v1762_v50 = vld [vmem:[#allocation16] sm:$0xff] }
 0x3bd   : > { %v1674_v53 = vpack.c.bf16 %v1659_v22, %v1658_v51  ;;  %v1763_v51 = vld [vmem:[#allocation16 + $0x8] sm:$0xff] }
 0x3be   : > { %v1775_v22 = vpack.c.bf16 %v1763_v51, %v1762_v50 }
 0x3bf   : > { %2852 = vmatmul.msk.bf16.vlgmr.msra.gmra.mxu2 %vm1686_vm2, %v1674_v53 }
 0x3c1   : > { %v3152_v20 = vpop.permute.xlu1 %3151 }
 0x3c2   : > { %v3154_v54 = vunpack.i.h.bf16 %v3152_v20  ;;  %v3153_v26 = vunpack.i.l.bf16 %v3152_v20 }
 0x3c4   : > { %v1656_v56 = vsel %vm1389_vm11, %v1610_v17, %v3154_v54  ;;  %v1655_v57 = vsel %vm1389_vm11, %v4397_v0, %v3153_v26  ;;  %v1780_v17 = vpack.c.bf16 %v1773_v11, %v1772_v10 }
 0x3c5   : > { %v1660_v59 = vsel %vm1657_vm15, %v1655_v57, %v3158_v52  ;;  %v1661_v58 = vsel %vm1657_vm15, %v1656_v56, %v3159_v18 }
 0x3c6   : > { %v1675_v60 = vpack.c.bf16 %v1661_v58, %v1660_v59  ;;  %1790 = vmatpush.bf16.msra.mxu3 %v1780_v17 }
 0x3ca   : > { %1791 = vmatpush.bf16.msra.mxu3 %v1779_v37  ;;  %v1841_v37 = vld [vmem:[#allocation19 + $0x78] sm:$0xff] }
 0x3ce   : > { %1792 = vmatpush.bf16.msra.mxu3 %v1778_v29 }
 0x3cf   : > { %2853 = vmatmul.msk.bf16.gmra.mxu2 %vm1686_vm2, %v1675_v60  ;;  %v1848_v60 = vld [vmem:[#allocation19 + $0xb0] sm:$0xff] }
 0x3d2   : > { %1793 = vmatpush.bf16.msra.mxu3 %v1777_v33  ;;  %v1836_v33 = vld [vmem:[#allocation19 + $0x50] sm:$0xff] }
 0x3d6   : > { %1794 = vmatpush.bf16.msra.mxu3 %v1776_v40  ;;  %v1857_v40 = vpack.c.bf16 %v1837_v7, %v1836_v33 }
 0x3da   : > { %1795 = vmatpush.bf16.msra.mxu3 %v1775_v22  ;;  %v2232_v22 = vld [vmem:[#allocation2 + $0x20] ss:$2 sm:$0x3f] }
 0x442   : > { %v1702_v62 = vpop.f32.mrf.mxu2 }
 0x443   : > { %v1703_v63 = vadd.f32 %v3243_v61, %v1702_v62 }
 0x445   : > { %vm1712_vm3 = vcmp.gt.f32.partialorder %v1703_v63, 0.0  ;;  %v1716_v1 = vmul.f32 0.2, %v1703_v63 }
 0x447   : > { %v1720_v2 = vsel %vm1712_vm3, %v1703_v63, %v1716_v1  ;;  %v1846_v63 = vld [vmem:[#allocation19 + $0xa0] sm:$0xff]  ;;  %v1847_v1 = vld [vmem:[#allocation19 + $0xa8] sm:$0xff] }
 0x448   : > { %1724 = vst.msk [vmem:[#allocation3] sm:$0xff] %vm1389_vm11, %v1720_v2  ;;  %v1862_v2 = vpack.c.bf16 %v1847_v1, %v1846_v63  ;;  %v1909_v63 = vld [vmem:[#allocation22 + $0x20] sm:$0xff]  ;;  %v1910_v1 = vld [vmem:[#allocation22 + $0x28] sm:$0xff] }
 0x44a   : > { %v1704_v3 = vpop.f32.mrf.mxu2 }
 0x44b   : > { %v1705_v36 = vadd.f32 %v3243_v61, %v1704_v3  ;;  %v1844_v3 = vld [vmem:[#allocation19 + $0x90] sm:$0xff] }
 0x44d   : > { %vm1713_vm4 = vcmp.gt.f32.partialorder %v1705_v36, 0.0  ;;  %v1717_v0 = vmul.f32 0.2, %v1705_v36 }
 0x44f   : > { %v1721_v43 = vsel %vm1713_vm4, %v1705_v36, %v1717_v0  ;;  %v1845_v36 = vld [vmem:[#allocation19 + $0x98] sm:$0xff] }
 0x450   : > { %1725 = vst.msk [vmem:[#allocation3 + $0x8] sm:$0xff] %vm1389_vm11, %v1721_v43  ;;  %v1861_v0 = vpack.c.bf16 %v1845_v36, %v1844_v3  ;;  %v1842_v43 = vld [vmem:[#allocation19 + $0x80] sm:$0xff]  ;;  %v1907_v3 = vld [vmem:[#allocation22 + $0x10] sm:$0xff] }
 0x451   : > { %v1908_v36 = vld [vmem:[#allocation22 + $0x18] sm:$0xff] }
 0x452   : > { %v1707_v4 = vpop.f32.mrf.mxu2 }
 0x453   : > { %v1708_v5 = vadd.f32 %v3243_v61, %v1707_v4  ;;  %v1843_v4 = vld [vmem:[#allocation19 + $0x88] sm:$0xff] }
 0x455   : > { %vm1714_vm5 = vcmp.gt.f32.partialorder %v1708_v5, 0.0  ;;  %v1718_v8 = vmul.f32 0.2, %v1708_v5 }
 0x457   : > { %v1722_v9 = vsel %vm1714_vm5, %v1708_v5, %v1718_v8  ;;  %v1729_v32 = vld [vmem:[#allocation3] ss:$2 sm:$0xff]  ;;  %v1733_v27 = vld [vmem:[#allocation3 + $0x1] ss:$2 sm:$0xff]  ;;  %v1860_v5 = vpack.c.bf16 %v1843_v4, %v1842_v43  ;;  %v1906_v4 = vld [vmem:[#allocation22 + $0x8] sm:$0xff] }
 0x458   : > { %1726 = vst.msk [vmem:[#allocation3 + $0x10] sm:$0xff] %vm1389_vm11, %v1722_v9  ;;  %v1736_v35 = vmax.f32 %v1729_v32, %v1733_v27  ;;  %v3244_v8 = vld [vmem:[#allocation18] ss:$0 sm:$0xff]  ;;  %v1905_v43 = vld [vmem:[#allocation22] sm:$0xff] }
 0x45a   : > { %v1709_v19 = vpop.f32.mrf.mxu2  ;;  %v1749_v42 = vrot.slane %v1736_v35, 2  ;;  %v1740_v44 = vrot.slane %v1736_v35, 1 }
 0x45b   : > { %v1710_v6 = vadd.f32 %v3243_v61, %v1709_v19  ;;  %v1849_v61 = vld [vmem:[#allocation19 + $0xb8] sm:$0xff] }
 0x45c   : > { %v1863_v62 = vpack.c.bf16 %v1849_v61, %v1848_v60  ;;  %v1911_v60 = vld [vmem:[#allocation22 + $0x30] sm:$0xff]  ;;  %v1912_v61 = vld [vmem:[#allocation22 + $0x38] sm:$0xff] }
 0x45d   : > { %vm1715_vm6 = vcmp.gt.f32.partialorder %v1710_v6, 0.0  ;;  %v1719_v25 = vmul.f32 0.2, %v1710_v6 }
 0x45e   : > { %1889 = vmatpush.bf16.msrb.mxu3 %v1863_v62  ;;  %v1917_v62 = vpack.c.bf16 %v1912_v61, %v1911_v60 }
 0x45f   : > { %v1723_v28 = vsel %vm1715_vm6, %v1710_v6, %v1719_v25  ;;  %v1940_v47 = vld [vmem:[#allocation3 + $0x4] ss:$2 sm:$0xff]  ;;  %v1942_v48 = vld [vmem:[#allocation3 + $0x14] ss:$2 sm:$0x1]  ;;  %v1840_v6 = vld [vmem:[#allocation19 + $0x70] sm:$0xff] }
 0x460   : > { %1728 = vst.msk [vmem:[#allocation3 + $0x18] sm:$0x3] %vm1727_vm7, %v1723_v28  ;;  %v3175_v49 = vpack.i.bf16 %v1942_v48, %v1940_v47  ;;  %v1859_v24 = vpack.c.bf16 %v1841_v37, %v1840_v6  ;;  %v1839_v25 = vld [vmem:[#allocation19 + $0x68] sm:$0xff]  ;;  %v1828_v48 = vld [vmem:[#allocation19 + $0x10] sm:$0xff] }
 0x461   : > { %v1858_v27 = vpack.c.bf16 %v1839_v25, %v1838_v23  ;;  %v1946_v50 = vld [vmem:[#allocation3 + $0x15] ss:$2 sm:$0x1] }
 0x462   : > { %1890 = vmatpush.bf16.msrb.mxu3 %v1862_v2  ;;  %1871 = vmatpush.bf16.msrb.mxu1 %v1859_v24  ;;  %v1916_v2 = vpack.c.bf16 %v1910_v1, %v1909_v63  ;;  %v2000_v63 = vld [vmem:[#allocation25 + $0x28] sm:$0xff] }
 0x466   : > { %1891 = vmatpush.bf16.msrb.mxu3 %v1861_v0  ;;  %1872 = vmatpush.bf16.msrb.mxu1 %v1858_v27  ;;  %v1915_v0 = vpack.c.bf16 %v1908_v36, %v1907_v3 }
 0x467   : > { %v1731_v38 = vld [vmem:[#allocation3 + $0x10] ss:$2 sm:$0x1f]  ;;  %v1735_v39 = vld [vmem:[#allocation3 + $0x11] ss:$2 sm:$0x1f] }
 0x468   : > { %v1737_v41 = vmax.f32 %v1731_v38, %v1735_v39 }
 0x46a   : > { %v1750_v14 = vrot.slane %v1737_v41, 2  ;;  %v1741_v45 = vrot.slane %v1737_v41, 1  ;;  %1892 = vmatpush.bf16.msrb.mxu3 %v1860_v5  ;;  %1873 = vmatpush.bf16.msrb.mxu1 %v1857_v40  ;;  %v1914_v5 = vpack.c.bf16 %v1906_v4, %v1905_v43  ;;  %v2013_v40 = vld [vmem:[#allocation25 + $0x90] sm:$0xff]  ;;  %v1998_v4 = vld [vmem:[#allocation25 + $0x18] sm:$0xff] }
 0x46b   : > { %v1997_v43 = vld [vmem:[#allocation25 + $0x10] sm:$0xff] }
 0x46c   : > { %v1751_v12 = vsel %vm1238_vm1, %v1749_v42, %v1750_v14  ;;  %v1742_v15 = vsel %vm1189_vm0, %v1740_v44, %v1741_v45  ;;  %v1835_v42 = vld [vmem:[#allocation19 + $0x48] sm:$0xff]  ;;  %v1832_v44 = vld [vmem:[#allocation19 + $0x30] sm:$0xff] }
 0x46d   : > { %v3165_v21 = vpack.i.bf16 %v1750_v14, %v1751_v12  ;;  %v3160_v46 = vpack.i.bf16 %v1741_v45, %v1742_v15  ;;  %v1833_v45 = vld [vmem:[#allocation19 + $0x38] sm:$0xff] }
 0x46e   : > { %v1944_v12 = vld [vmem:[#allocation3 + $0x5] ss:$2 sm:$0xff]  ;;  %v1855_v15 = vpack.c.bf16 %v1833_v45, %v1832_v44  ;;  %v2012_v44 = vld [vmem:[#allocation25 + $0x88] sm:$0xff] }
 0x46f   : > { %3166 = vrot.lane.b32.xlu1 %v3165_v21, %s3865_s9  ;;  %3161 = vrot.lane.b32.xlu0 %v3160_v46, %s3864_s25  ;;  %v1830_v21 = vld [vmem:[#allocation19 + $0x20] sm:$0xff]  ;;  %v1831_v46 = vld [vmem:[#allocation19 + $0x28] sm:$0xff] }
 0x470   : > { %v1854_v47 = vpack.c.bf16 %v1831_v46, %v1830_v21  ;;  %v2007_v21 = vld [vmem:[#allocation25 + $0x60] sm:$0xff] }
 0x477   : > { %3176 = vrot.lane.b32.xlu0 %v3175_v49, %s3864_s25  ;;  %v1829_v49 = vld [vmem:[#allocation19 + $0x18] sm:$0xff] }
 0x478   : > { %v1853_v51 = vpack.c.bf16 %v1829_v49, %v1828_v48  ;;  %v2005_v49 = vld [vmem:[#allocation25 + $0x50] sm:$0xff] }
 0x4e1   : > { %v3167_v53 = vpop.permute.xlu1 %3166  ;;  %v3162_v20 = vpop.permute.xlu0 %3161 }
 0x4e2   : > { %v3169_v54 = vunpack.i.h.bf16 %v3167_v53  ;;  %v3168_v26 = vunpack.i.l.bf16 %v3167_v53  ;;  %v3164_v55 = vunpack.i.h.bf16 %v3162_v20  ;;  %v3163_v56 = vunpack.i.l.bf16 %v3162_v20  ;;  %v2231_v53 = vld [vmem:[#allocation2 + $0x10] ss:$2 sm:$0xff] }
 0x4e3   : > { %v3195_v20 = vpack.i.bf16 %v2232_v22, %v2231_v53  ;;  %v2003_v53 = vld [vmem:[#allocation25 + $0x40] sm:$0xff] }
 0x4e4   : > { %v1759_v57 = vsel %vm1389_vm11, %v1737_v41, %v3164_v55  ;;  %v1758_v18 = vsel %vm1389_vm11, %v1736_v35, %v3163_v56  ;;  %v1834_v41 = vld [vmem:[#allocation19 + $0x40] sm:$0xff] }
 0x4e5   : > { %v1760_v52 = vsel %vm1657_vm15, %v1758_v18, %v3168_v26  ;;  %v1761_v59 = vsel %vm1657_vm15, %v1759_v57, %v3169_v54  ;;  %v1856_v14 = vpack.c.bf16 %v1835_v42, %v1834_v41  ;;  %v1826_v54 = vld [vmem:[#allocation19] sm:$0xff]  ;;  %v1827_v26 = vld [vmem:[#allocation19 + $0x8] sm:$0xff] }
 0x4e6   : > { %v1774_v58 = vpack.c.bf16 %v1761_v59, %v1760_v52  ;;  %v1852_v55 = vpack.c.bf16 %v1827_v26, %v1826_v54  ;;  %v2014_v41 = vld [vmem:[#allocation25 + $0x98] sm:$0xff] }
 0x4e7   : > { %1874 = vmatpush.bf16.msrb.mxu1 %v1856_v14  ;;  %v2030_v42 = vpack.c.bf16 %v2014_v41, %v2013_v40  ;;  %v2011_v14 = vld [vmem:[#allocation25 + $0x80] sm:$0xff]  ;;  %v2111_v41 = vld [vmem:[#allocation28 + $0x30] sm:$0xff] }
 0x4e8   : > { %2854 = vmatmul.msk.bf16.vlgmr.msra.gmra.mxu3 %vm1686_vm2, %v1774_v58  ;;  %v2029_v45 = vpack.c.bf16 %v2012_v44, %v2011_v14 }
 0x4eb   : > { %1875 = vmatpush.bf16.msrb.mxu1 %v1855_v15  ;;  %v2010_v15 = vld [vmem:[#allocation25 + $0x78] sm:$0xff] }
 0x4ef   : > { %1876 = vmatpush.bf16.msrb.mxu1 %v1854_v47  ;;  %v2008_v47 = vld [vmem:[#allocation25 + $0x68] sm:$0xff] }
 0x4f0   : > { %v2027_v48 = vpack.c.bf16 %v2008_v47, %v2007_v21 }
 0x4f3   : > { %1877 = vmatpush.bf16.msrb.mxu1 %v1853_v51  ;;  %v3177_v51 = vpop.permute.xlu0 %3176 }
 0x4f4   : > { %v3179_v54 = vunpack.i.h.bf16 %v3177_v51  ;;  %v3178_v26 = vunpack.i.l.bf16 %v3177_v51 }
 0x4f7   : > { %1878 = vmatpush.bf16.msrb.mxu1 %v1852_v55 }
 0x4fb   : > { %1929 = vmatpush.bf16.msra.mxu1 %v1917_v62  ;;  %v1999_v62 = vld [vmem:[#allocation25 + $0x20] sm:$0xff] }
 0x4ff   : > { %1930 = vmatpush.bf16.msra.mxu1 %v1916_v2 }
 0x503   : > { %1931 = vmatpush.bf16.msra.mxu1 %v1915_v0  ;;  %v2023_v0 = vpack.c.bf16 %v2000_v63, %v1999_v62  ;;  %v2108_v62 = vld [vmem:[#allocation28 + $0x18] sm:$0xff] }
 0x507   : > { %1932 = vmatpush.bf16.msra.mxu1 %v1914_v5  ;;  %v2022_v5 = vpack.c.bf16 %v1998_v4, %v1997_v43 }
 0x56b   : > { %v1797_v9 = vpop.f32.mrf.mxu3 }
 0x56c   : > { %v1798_v10 = vadd.f32 %v3244_v8, %v1797_v9 }
 0x56e   : > { %v1804_v11 = vmul.f32 0.2, %v1798_v10  ;;  %vm1802_vm8 = vcmp.gt.f32.partialorder %v1798_v10, 0.0 }
 0x570   : > { %v1806_v17 = vsel %vm1802_vm8, %v1798_v10, %v1804_v11  ;;  %vm2170_vm8 = vcmask 113664  }
 0x571   : > { %v1810_v28 = vrot.slane %v1806_v17, 1  ;;  %v1819_v30 = vrot.slane %v1806_v17, 2 }
 0x573   : > { %v1799_v13 = vpop.f32.mrf.mxu3 }
 0x574   : > { %v1800_v16 = vadd.f32 %v3244_v8, %v1799_v13  ;;  %v3245_v8 = vld [vmem:[#allocation21] ss:$0 sm:$0xff] }
 0x576   : > { %vm1803_vm9 = vcmp.gt.f32.partialorder %v1800_v16, 0.0  ;;  %v1805_v19 = vmul.f32 0.2, %v1800_v16 }
 0x578   : > { %v1807_v29 = vsel %vm1803_vm9, %v1800_v16, %v1805_v19 }
 0x579   : > { %v1820_v31 = vrot.slane %v1807_v29, 2  ;;  %v1811_v32 = vrot.slane %v1807_v29, 1 }
 0x57b   : > { %v1821_v34 = vsel %vm1238_vm1, %v1819_v30, %v1820_v31  ;;  %v1812_v35 = vsel %vm1189_vm0, %v1810_v28, %v1811_v32  ;;  %v2018_v30 = vld [vmem:[#allocation25 + $0xb8] sm:$0xff] }
 0x57c   : > { %v1851_v38 = vpack.c.bf16 %v1820_v31, %v1821_v34  ;;  %v3170_v39 = vpack.i.bf16 %v1811_v32, %v1812_v35  ;;  %v3246_v32 = vld [vmem:[#allocation24] ss:$0 sm:$0xff]  ;;  %v2015_v35 = vld [vmem:[#allocation25 + $0xa0] sm:$0xff] }
 0x57e   : > { %2855 = vmatmul.msk.bf16.vlgmr.msrb.gmra.mxu3 %vm1657_vm15, %v1851_v38  ;;  %3171 = vrot.lane.b32.xlu2 %v3170_v39, %s3865_s9  ;;  %v2016_v38 = vld [vmem:[#allocation25 + $0xa8] sm:$0xff] }
 0x57f   : > { %v2031_v39 = vpack.c.bf16 %v2016_v38, %v2015_v35 }
 0x586   : > { %1957 = vrot.lane.b32.xlu2 %v1944_v12, %s3864_s25  ;;  %v2009_v12 = vld [vmem:[#allocation25 + $0x70] sm:$0xff] }
 0x587   : > { %v2028_v46 = vpack.c.bf16 %v2010_v15, %v2009_v12  ;;  %v2110_v12 = vld [vmem:[#allocation28 + $0x28] sm:$0xff] }
 0x589   : > { %2040 = vmatpush.bf16.msra.mxu3 %v2028_v46 }
 0x58d   : > { %2041 = vmatpush.bf16.msra.mxu3 %v2027_v48 }
 0x58e   : > { %1971 = vrot.lane.b32.xlu2 %v1946_v50, %s3864_s25  ;;  %v2006_v50 = vld [vmem:[#allocation25 + $0x58] sm:$0xff] }
 0x58f   : > { %v2026_v22 = vpack.c.bf16 %v2006_v50, %v2005_v49 }
 0x591   : > { %2042 = vmatpush.bf16.msra.mxu3 %v2026_v22 }
 0x596   : > { %3196 = vrot.lane.b32.xlu2 %v3195_v20, %s3863_s5  ;;  %v2004_v20 = vld [vmem:[#allocation25 + $0x48] sm:$0xff] }
 0x5d8   : > { %v3172_v56 = vpop.permute.xlu2 %3171 }
 0x5d9   : > { %v3174_v57 = vunpack.i.h.bf16 %v3172_v56  ;;  %v3173_v18 = vunpack.i.l.bf16 %v3172_v56  ;;  %v2025_v56 = vpack.c.bf16 %v2004_v20, %v2003_v53 }
 0x5db   : > { %v1824_v52 = vsel %vm1657_vm15, %v1806_v17, %v3173_v18  ;;  %v1825_v59 = vsel %vm1657_vm15, %v1807_v29, %v3174_v57  ;;  %v2017_v29 = vld [vmem:[#allocation25 + $0xb0] sm:$0xff]  ;;  %v2002_v18 = vld [vmem:[#allocation25 + $0x38] sm:$0xff]  ;;  %2043 = vmatpush.bf16.msra.mxu3 %v2025_v56 }
 0x5dc   : > { %v1850_v58 = vpack.c.bf16 %v1825_v59, %v1824_v52  ;;  %v2032_v31 = vpack.c.bf16 %v2018_v30, %v2017_v29  ;;  %v2001_v57 = vld [vmem:[#allocation25 + $0x30] sm:$0xff] }
 0x5dd   : > { %v2024_v60 = vpack.c.bf16 %v2002_v18, %v2001_v57 }
 0x5de   : > { %1879 = vmatmul.bf16.vlgmr.msrb.gmra.mxu1 %v1850_v58 }
 0x5df   : > { %2058 = vmatpush.bf16.msrb.mxu1 %v2032_v31  ;;  %2044 = vmatpush.bf16.msra.mxu3 %v2024_v60  ;;  %v3247_v31 = vld [vmem:[#allocation27] ss:$0 sm:$0xff] }
 0x5e0   : > { %v1958_v58 = vpop.permute.xlu2 %1957 }
 0x5e3   : > { %2059 = vmatpush.bf16.msrb.mxu1 %v2031_v39  ;;  %2045 = vmatpush.bf16.msra.mxu3 %v2023_v0 }
 0x5e7   : > { %2060 = vmatpush.bf16.msrb.mxu1 %v2030_v42  ;;  %2046 = vmatpush.bf16.msra.mxu3 %v2022_v5  ;;  %v2112_v42 = vld [vmem:[#allocation28 + $0x38] sm:$0xff] }
 0x5e8   : > { %v2121_v44 = vpack.c.bf16 %v2112_v42, %v2111_v41 }
 0x5eb   : > { %2061 = vmatpush.bf16.msrb.mxu1 %v2029_v45  ;;  %v2109_v45 = vld [vmem:[#allocation28 + $0x20] sm:$0xff] }
 0x5ec   : > { %v2120_v46 = vpack.c.bf16 %v2110_v12, %v2109_v45  ;;  %v2205_v45 = vld [vmem:[#allocation31 + $0x10] sm:$0xff]  ;;  %v2206_v12 = vld [vmem:[#allocation31 + $0x18] sm:$0xff] }
 0x601   : > { %v1894_v9 = vpop.f32.mrf.mxu3 }
 0x609   : > { %v1896_v19 = vpop.f32.mrf.mxu3 }
 0x65b   : > { %v1880_v10 = vpop.f32.mrf.mxu1 }
 0x65c   : > { %v1881_v11 = vadd.f32 %v3245_v8, %v1880_v10 }
 0x65e   : > { %v1895_v13 = vadd.f32 %v1894_v9, %v1881_v11 }
 0x660   : > { %v1901_v6 = vmul.f32 0.2, %v1895_v13  ;;  %vm1899_vm13 = vcmp.gt.f32.partialorder %v1895_v13, 0.0 }
 0x662   : > { %v1903_v24 = vsel %vm1899_vm13, %v1895_v13, %v1901_v6  ;;  %v1996_v6 = vld [vmem:[#allocation25 + $0x8] sm:$0xff]  ;;  %vm2275_vm13 = vcmask 1043456  }
 0x663   : > { %v1882_v16 = vpop.f32.mrf.mxu1 }
 0x664   : > { %v1883_v17 = vadd.f32 %v3245_v8, %v1882_v16  ;;  %v1972_v8 = vpop.permute.xlu2 %1971 }
 0x666   : > { %v1897_v37 = vadd.f32 %v1896_v19, %v1883_v17  ;;  %v1995_v19 = vld [vmem:[#allocation25] sm:$0xff] }
 0x668   : > { %vm1900_vm14 = vcmp.gt.f32.partialorder %v1897_v37, 0.0  ;;  %v1902_v23 = vmul.f32 0.2, %v1897_v37 }
 0x66a   : > { %v1904_v25 = vsel %vm1900_vm14, %v1897_v37, %v1902_v23  ;;  %v2021_v37 = vpack.c.bf16 %v1996_v6, %v1995_v19  ;;  %vm2265_vm14 = vcmask 1044480  }
 0x66b   : > { %v1913_v28 = vpack.c.bf16 %v1904_v25, %v1903_v24 }
 0x66c   : > { %2047 = vmatpush.bf16.msra.mxu3 %v2021_v37 }
 0x66d   : > { %2856 = vmatmul.msk.bf16.vlgmr.msra.gmra.mxu1 %vm1657_vm15, %v1913_v28 }
 0x6ea   : > { %v1934_v27 = vpop.f32.mrf.mxu1 }
 0x6eb   : > { %v1935_v33 = vadd.f32 %v3246_v32, %v1934_v27  ;;  %v2116_v27 = vld [vmem:[#allocation28 + $0x58] sm:$0xff] }
 0x6ed   : > { %1953 = vrot.lane.b32.xlu1 %v1935_v33, %s3866_s27  ;;  %v1951_v52 = vsel %vm1389_vm11, %v1935_v33, %v3178_v26  ;;  %v2113_v33 = vld [vmem:[#allocation28 + $0x40] sm:$0xff] }
 0x6ee   : > { %v1977_v61 = vrot.slane %v1951_v52, 1 }
 0x6f2   : > { %v1936_v7 = vpop.f32.mrf.mxu1 }
 0x6f3   : > { %v1937_v34 = vadd.f32 %v3246_v32, %v1936_v7  ;;  %v2115_v32 = vld [vmem:[#allocation28 + $0x50] sm:$0xff] }
 0x6f4   : > { %v2123_v7 = vpack.c.bf16 %v2116_v27, %v2115_v32 }
 0x6f5   : > { %1967 = vrot.lane.b32.xlu1 %v1937_v34, %s3866_s27  ;;  %v1965_v55 = vsel %vm1389_vm11, %v1937_v34, %v3179_v54  ;;  %v2114_v34 = vld [vmem:[#allocation28 + $0x48] sm:$0xff] }
 0x6f6   : > { %v1978_v59 = vrot.slane %v1965_v55, 1  ;;  %2133 = vmatpush.bf16.msrb.mxu0 %v2123_v7  ;;  %v2122_v39 = vpack.c.bf16 %v2114_v34, %v2113_v33 }
 0x6f8   : > { %v1979_v3 = vsel %vm1189_vm0, %v1977_v61, %v1978_v59  ;;  %v2234_v59 = vld [vmem:[#allocation2 + $0x21] ss:$2 sm:$0x3f] }
 0x6f9   : > { %v2107_v61 = vld [vmem:[#allocation28 + $0x10] sm:$0xff] }
 0x6fa   : > { %2134 = vmatpush.bf16.msrb.mxu0 %v2122_v39  ;;  %v2119_v63 = vpack.c.bf16 %v2108_v62, %v2107_v61 }
 0x6fe   : > { %2135 = vmatpush.bf16.msrb.mxu0 %v2121_v44 }
 0x702   : > { %2136 = vmatpush.bf16.msrb.mxu0 %v2120_v46  ;;  %v2204_v46 = vld [vmem:[#allocation31 + $0x8] sm:$0xff] }
 0x706   : > { %2137 = vmatpush.bf16.msrb.mxu0 %v2119_v63 }
 0x75f   : > { %v1954_v1 = vpop.permute.xlu1 %1953 }
 0x760   : > { %v1960_v2 = vsel %vm1389_vm11, %v1954_v1, %v1958_v58  ;;  %v2233_v58 = vld [vmem:[#allocation2 + $0x11] ss:$2 sm:$0xff] }
 0x761   : > { %v3180_v36 = vpack.i.bf16 %v1979_v3, %v1960_v2  ;;  %v1983_v11 = vrot.slane %v1960_v2, 1  ;;  %v3205_v60 = vpack.i.bf16 %v2234_v59, %v2233_v58  ;;  %v2105_v1 = vld [vmem:[#allocation28] sm:$0xff] }
 0x763   : > { %3181 = vrot.lane.b32.xlu0 %v3180_v36, %s3865_s9 }
 0x767   : > { %v1968_v9 = vpop.permute.xlu1 %1967 }
 0x768   : > { %v1974_v10 = vsel %vm1389_vm11, %v1968_v9, %v1972_v8 }
 0x769   : > { %v1984_v13 = vrot.slane %v1974_v10, 1 }
 0x76b   : > { %v1985_v16 = vsel %vm1189_vm0, %v1983_v11, %v1984_v13 }
 0x76c   : > { %v2020_v17 = vpack.c.bf16 %v1985_v16, %v1979_v3 }
 0x76e   : > { %2857 = vmatmul.msk.bf16.vlgmr.msrb.gmra.mxu1 %vm1657_vm15, %v2020_v17  ;;  %v2151_v17 = vlaneseq }
 0x770   : > { %v4470_v19 = vshrl.u32 %v2151_v17, 7 }
 0x772   : > { %v2158_v6 = vand.u32 1, %v4470_v19 }
 0x7d5   : > { %v3182_v23 = vpop.permute.xlu0 %3181 }
 0x7d6   : > { %v3184_v24 = vunpack.i.h.bf16 %v3182_v23  ;;  %v3183_v25 = vunpack.i.l.bf16 %v3182_v23  ;;  %v2156_v23 = vshra.s32 %v4470_v19, 1 }
 0x7d8   : > { %v1994_v28 = vsel %vm1657_vm15, %v1960_v2, %v3184_v24  ;;  %v1993_v29 = vsel %vm1657_vm15, %v1951_v52, %v3183_v25  ;;  %v2106_v2 = vld [vmem:[#allocation28 + $0x8] sm:$0xff]  ;;  %v2160_v24 = vmul.u32 7, %v2158_v6  ;;  %v3248_v25 = vld [vmem:[#allocation30] ss:$0 sm:$0xff] }
 0x7d9   : > { %v2019_v30 = vpack.c.bf16 %v1994_v28, %v1993_v29  ;;  %v2118_v3 = vpack.c.bf16 %v2106_v2, %v2105_v1  ;;  %v4477_v28 = vadd.s32 8, %v4470_v19  ;;  %v4479_v29 = vand.u32 127, %v2151_v17 }
 0x7db   : > { %2048 = vmatmul.bf16.vlgmr.msra.gmra.mxu3 %v2019_v30  ;;  %2138 = vmatpush.bf16.msrb.mxu0 %v2118_v3  ;;  %v2162_v30 = vadd.s32 %v2160_v24, %v2156_v23  ;;  %v2159_v32 = vand.u32 1, %v4477_v28  ;;  %v2157_v7 = vshra.s32 %v4477_v28, 1  ;;  %v3252_v28 = vld [vmem:[%s4697_s3] ss:$0 sm:$0xff] }
 0x7dd   : > { %vm2164_vm5 = vcmp.eq.s32.totalorder %v4479_v29, %v2162_v30 }
 0x7eb   : > { %v2063_v35 = vpop.f32.mrf.mxu1 }
 0x7f3   : > { %v2065_v48 = vpop.f32.mrf.mxu1 }
 0x85e   : > { %v2049_v38 = vpop.f32.mrf.mxu3 }
 0x85f   : > { %v2050_v40 = vadd.f32 %v3247_v31, %v2049_v38  ;;  %v2161_v38 = vmul.u32 7, %v2159_v32 }
 0x861   : > { %v2064_v14 = vadd.f32 %v2063_v35, %v2050_v40  ;;  %v3867_v40 = vmov 0.0  }
 0x862   : > { %v2859_v41 = vsel %vm2164_vm5, 1.0, %v3867_v40 }
 0x863   : > { %v2070_v15 = vmul.f32 0.2, %v2064_v14  ;;  %vm2068_vm3 = vcmp.gt.f32.partialorder %v2064_v14, 0.0 }
 0x865   : > { %v2072_v49 = vsel %vm2068_vm3, %v2064_v14, %v2070_v15  ;;  %v2163_v14 = vadd.s32 %v2161_v38, %v2157_v7  ;;  %v2209_v15 = vpack.c.bf16 %v2206_v12, %v2205_v45  ;;  %v2332_v38 = vld [vmem:[%s4656_s21 + $0x40] sm:$0xff]  ;;  %v2329_v12 = vld [vmem:[%s4656_s21 + $0x28] sm:$0xff] }
 0x866   : > { %v2051_v21 = vpop.f32.mrf.mxu3  ;;  %v2079_v22 = vrot.slane %v2072_v49, 2  ;;  %v2082_v20 = vrot.slane %v2072_v49, 1  ;;  %v2328_v45 = vld [vmem:[%s4656_s21 + $0x20] sm:$0xff] }
 0x867   : > { %v2052_v47 = vadd.f32 %v3247_v31, %v2051_v21  ;;  %vm2165_vm9 = vcmp.eq.s32.totalorder %v4479_v29, %v2163_v14  ;;  %2223 = vmatpush.bf16.msra.mxu1 %v2209_v15  ;;  %v2203_v21 = vld [vmem:[#allocation31] sm:$0xff]  ;;  %v2340_v15 = vpack.c.bf16 %v2329_v12, %v2328_v45 }
 0x868   : > { %v2860_v44 = vsel %vm2165_vm9, 1.0, %v3867_v40  ;;  %v2331_v14 = vld [vmem:[%s4656_s21 + $0x38] sm:$0xff]  ;;  %vm2569_vm9 = vcmask 7168  }
 0x869   : > { %v2066_v50 = vadd.f32 %v2065_v48, %v2052_v47  ;;  %v2208_v47 = vpack.c.bf16 %v2204_v46, %v2203_v21  ;;  %v2326_v21 = vld [vmem:[%s4656_s21 + $0x10] sm:$0xff]  ;;  %v2327_v46 = vld [vmem:[%s4656_s21 + $0x18] sm:$0xff] }
 0x86b   : > { %vm2069_vm4 = vcmp.gt.f32.partialorder %v2066_v50, 0.0  ;;  %v2071_v51 = vmul.f32 0.2, %v2066_v50  ;;  %2224 = vmatpush.bf16.msra.mxu1 %v2208_v47  ;;  %v2339_v47 = vpack.c.bf16 %v2327_v46, %v2326_v21 }
 0x86d   : > { %v2073_v53 = vsel %vm2069_vm4, %v2066_v50, %v2071_v51 }
 0x86e   : > { %v2075_v54 = vrot.slane %v2073_v53, 1  ;;  %v2081_v26 = vsel %vm1189_vm0, %v2073_v53, %v2079_v22  ;;  %v2084_v55 = vrot.slane %v2073_v53, 2  ;;  %v3197_v53 = vpop.permute.xlu2 %3196 }
 0x86f   : > { %v3185_v56 = vpack.i.bf16 %v2079_v22, %v2081_v26  ;;  %v3249_v22 = vld [vmem:[%s4655_s20] ss:$0 sm:$0xff] }
 0x870   : > { %v2086_v57 = vsel %vm1189_vm0, %v2082_v20, %v2084_v55  ;;  %v2077_v18 = vsel %vm1189_vm0, %v2072_v49, %v2075_v54 }
 0x871   : > { %3186 = vrot.lane.b32.xlu0 %v3185_v56, %s3864_s25  ;;  %v3190_v52 = vpack.i.bf16 %v2084_v55, %v2086_v57  ;;  %v3199_v55 = vunpack.i.h.bf16 %v3197_v53 }
 0x873   : > { %3191 = vrot.lane.b32.xlu1 %v3190_v52, %s3865_s9 }
 0x87b   : > { %3206 = vrot.lane.b32.xlu1 %v3205_v60, %s3863_s5 }
 0x8e3   : > { %v3187_v36 = vpop.permute.xlu0 %3186 }
 0x8e4   : > { %v3189_v0 = vunpack.i.h.bf16 %v3187_v36  ;;  %v3188_v43 = vunpack.i.l.bf16 %v3187_v36 }
 0x8e5   : > { %v3192_v4 = vpop.permute.xlu1 %3191 }
 0x8e6   : > { %v2102_v5 = vsel %vm1389_vm11, %v2075_v54, %v3189_v0  ;;  %v2101_v8 = vsel %vm1389_vm11, %v2077_v18, %v3188_v43  ;;  %v3194_v9 = vunpack.i.h.bf16 %v3192_v4  ;;  %v3193_v10 = vunpack.i.l.bf16 %v3192_v4 }
 0x8e7   : > { %v3198_v54 = vunpack.i.l.bf16 %v3197_v53 }
 0x8e8   : > { %v2103_v11 = vsel %vm1657_vm15, %v2101_v8, %v3193_v10  ;;  %v2104_v13 = vsel %vm1657_vm15, %v2102_v5, %v3194_v9 }
 0x8e9   : > { %v2117_v16 = vpack.c.bf16 %v2104_v13, %v2103_v11 }
 0x8eb   : > { %2858 = vmatmul.msk.bf16.vlgmr.msrb.gmra.mxu0 %vm1686_vm2, %v2117_v16 }
 0x8ed   : > { %v3207_v62 = vpop.permute.xlu1 %3206 }
 0x8ee   : > { %v3209_v63 = vunpack.i.h.bf16 %v3207_v62  ;;  %v3208_v1 = vunpack.i.l.bf16 %v3207_v62 }
 0x968   : > { %v2140_v37 = vpop.f32.mrf.mxu0 }
 0x969   : > { %v2141_v31 = vadd.f32 %v3248_v25, %v2140_v37 }
 0x96b   : > { %v2147_v35 = vmul.f32 0.2, %v2141_v31  ;;  %vm2145_vm7 = vcmp.gt.f32.partialorder %v2141_v31, 0.0 }
 0x96d   : > { %v2149_v42 = vsel %vm2145_vm7, %v2141_v31, %v2147_v35 }
 0x970   : > { %v2142_v27 = vpop.f32.mrf.mxu0 }
 0x971   : > { %v2143_v33 = vadd.f32 %v3248_v25, %v2142_v27 }
 0x973   : > { %v2148_v34 = vmul.f32 0.2, %v2143_v33  ;;  %vm2146_vm6 = vcmp.gt.f32.partialorder %v2143_v33, 0.0 }
 0x975   : > { %v2150_v39 = vsel %vm2146_vm6, %v2143_v33, %v2148_v34  ;;  %v2334_v33 = vld [vmem:[%s4656_s21 + $0x50] sm:$0xff]  ;;  %v2335_v34 = vld [vmem:[%s4656_s21 + $0x58] sm:$0xff]  ;;  %vm2510_vm6 = vcmask 195584  }
 0x976   : > { %2861 = vmatpush.msk.msrb.mxu2 %vm1238_vm1, %v2150_v39  ;;  %v2343_v35 = vpack.c.bf16 %v2335_v34, %v2334_v33  ;;  %v2333_v39 = vld [vmem:[%s4656_s21 + $0x48] sm:$0xff] }
 0x978   : > { %2195 = vmatpush.msrb.mxu2 %v2149_v42  ;;  %v2330_v42 = vld [vmem:[%s4656_s21 + $0x30] sm:$0xff] }
 0x979   : > { %2862 = vmatmul.msk.f32.vlgmr.msrb.gmra.mxu2 %vm2170_vm8, %v2859_v41  ;;  %v2342_v41 = vpack.c.bf16 %v2333_v39, %v2332_v38 }
 0x97a   : > { %2356 = vmatpush.bf16.msra.mxu2 %v2343_v35 }
 0x97e   : > { %2357 = vmatpush.bf16.msra.mxu2 %v2342_v41 }
 0x981   : > { %2863 = vmatmul.msk.f32.gmra.mxu2 %vm2170_vm8, %v2860_v44  ;;  %v2341_v44 = vpack.c.bf16 %v2331_v14, %v2330_v42 }
 0x983   : > { %2358 = vmatpush.bf16.msra.mxu2 %v2341_v44 }
 0x987   : > { %2359 = vmatpush.bf16.msra.mxu2 %v2340_v15 }
 0x98b   : > { %2360 = vmatpush.bf16.msra.mxu2 %v2339_v47 }
 0x9fc   : > { %v2197_v48 = vpop.f32.mrf.mxu2 }
 0xa04   : > { %v2200_v49 = vpop.f32.mrf.mxu2 }
 0xa05   : > { %v2207_v50 = vpack.c.bf16 %v2200_v49, %v2197_v48  ;;  %v2324_v48 = vld [vmem:[%s4656_s21] sm:$0xff]  ;;  %v2325_v49 = vld [vmem:[%s4656_s21 + $0x8] sm:$0xff] }
 0xa07   : > { %2864 = vmatmul.msk.bf16.vlgmr.msra.gmra.mxu1 %vm1389_vm11, %v2207_v50  ;;  %v2338_v50 = vpack.c.bf16 %v2325_v49, %v2324_v48 }
 0xa09   : > { %2361 = vmatpush.bf16.msra.mxu2 %v2338_v50 }
 0xa84   : > { %v2226_v51 = vpop.f32.mrf.mxu1 }
 0xa85   : > { %v2227_v20 = vadd.f32 %v3249_v22, %v2226_v51 }
 0xa87   : > { %v4499_v56 = vsel %vm1380_vm10, %v2227_v20, %v3198_v54 }
 0xa88   : > { %v2276_v59 = vrot.slane %v4499_v56, 4  ;;  %v2281_v43 = vrot.slane %v4499_v56, 1 }
 0xa8c   : > { %v2228_v26 = vpop.f32.mrf.mxu1 }
 0xa8d   : > { %v2229_v57 = vadd.f32 %v3249_v22, %v2228_v26 }
 0xa8f   : > { %v2244_v18 = vsel %vm1380_vm10, %v2229_v57, %v3199_v55  ;;  %v3200_v52 = vpack.i.bf16 %v2229_v57, %v2227_v20 }
 0xa90   : > { %v2277_v58 = vrot.slane %v2244_v18, 4  ;;  %v2282_v3 = vrot.slane %v2244_v18, 1 }
 0xa91   : > { %3201 = vrot.lane.b32.xlu0 %v3200_v52, %s3868_s11 }
 0xa92   : > { %v2278_v60 = vsel %vm2275_vm13, %v2276_v59, %v2277_v58  ;;  %v2283_v16 = vsel %vm1189_vm0, %v2281_v43, %v2282_v3 }
 0xa93   : > { %v3220_v61 = vpack.i.bf16 %v2277_v58, %v2278_v60 }
 0xa95   : > { %3221 = vrot.lane.b32.xlu1 %v3220_v61, %s3864_s25 }
 0xb03   : > { %v3202_v2 = vpop.permute.xlu0 %3201 }
 0xb04   : > { %v3204_v36 = vunpack.i.h.bf16 %v3202_v2  ;;  %v3203_v0 = vunpack.i.l.bf16 %v3202_v2 }
 0xb06   : > { %v2262_v4 = vsel %vm1380_vm10, %v3204_v36, %v3209_v63  ;;  %v2261_v5 = vsel %vm1380_vm10, %v3203_v0, %v3208_v1 }
 0xb07   : > { %v2267_v8 = vrot.slane %v2262_v4, 3  ;;  %v2266_v9 = vrot.slane %v2261_v5, 3  ;;  %v2285_v10 = vrot.slane %v2261_v5, 4  ;;  %v2280_v11 = vsel %vm2265_vm14, %v2262_v4, %v2276_v59  ;;  %v3222_v22 = vpop.permute.xlu1 %3221 }
 0xb08   : > { %v3210_v13 = vpack.i.bf16 %v2280_v11, %v2261_v5  ;;  %v2286_v24 = vrot.slane %v2262_v4, 4  ;;  %v3224_v53 = vunpack.i.h.bf16 %v3222_v22  ;;  %v3223_v20 = vunpack.i.l.bf16 %v3222_v22  ;;  %v3250_v4 = vld [vmem:[%s4657_s22] ss:$0 sm:$0xff] }
 0xb09   : > { %v2268_v17 = vsel %vm2265_vm14, %v2266_v9, %v2267_v8  ;;  %v2289_v37 = vsel %vm2265_vm14, %v2282_v3, %v2285_v10  ;;  %v2272_v25 = vsel %vm2265_vm14, %v2244_v18, %v2266_v9 }
 0xb0a   : > { %3211 = vrot.lane.b32.xlu2 %v3210_v13, %s3864_s25  ;;  %v3215_v30 = vpack.i.bf16 %v2289_v37, %v2283_v16  ;;  %v2287_v31 = vsel %vm2275_vm13, %v2285_v10, %v2286_v24  ;;  %v2319_v57 = vsel %vm1389_vm11, %v2267_v8, %v3224_v53  ;;  %v2318_v18 = vsel %vm1389_vm11, %v2268_v17, %v3223_v20 }
 0xb0b   : > { %v3225_v27 = vpack.i.bf16 %v2286_v24, %v2287_v31 }
 0xb0c   : > { %3216 = vrot.lane.b32.xlu0 %v3215_v30, %s3865_s9 }
 0xb12   : > { %3226 = vrot.lane.b32.xlu2 %v3225_v27, %s3865_s9 }
 0xb64   : > { %v3212_v51 = vpop.permute.xlu2 %3211 }
 0xb65   : > { %v3214_v60 = vunpack.i.h.bf16 %v3212_v51  ;;  %v3213_v61 = vunpack.i.l.bf16 %v3212_v51 }
 0xb67   : > { %v2317_v2 = vsel %vm1389_vm11, %v2272_v25, %v3214_v60  ;;  %v2316_v3 = vsel %vm1389_vm11, %v4499_v56, %v3213_v61  ;;  %v2444_v61 = vld [vmem:[%s4658_s23] sm:$0xff] }
 0xb6c   : > { %v3227_v54 = vpop.permute.xlu2 %3226 }
 0xb6d   : > { %v3229_v26 = vunpack.i.h.bf16 %v3227_v54  ;;  %v3228_v55 = vunpack.i.l.bf16 %v3227_v54 }
 0xb6f   : > { %v2322_v52 = vsel %vm1657_vm15, %v2318_v18, %v3228_v55  ;;  %v2323_v59 = vsel %vm1657_vm15, %v2319_v57, %v3229_v26  ;;  %v2448_v57 = vld [vmem:[%s4658_s23 + $0x20] sm:$0xff]  ;;  %v2449_v18 = vld [vmem:[%s4658_s23 + $0x28] sm:$0xff] }
 0xb70   : > { %v2337_v58 = vpack.c.bf16 %v2323_v59, %v2322_v52  ;;  %v2446_v52 = vld [vmem:[%s4658_s23 + $0x10] sm:$0xff]  ;;  %v2454_v59 = vpack.c.bf16 %v2449_v18, %v2448_v57 }
 0xb72   : > { %2470 = vmatpush.bf16.msrb.mxu3 %v2454_v59 }
 0xb7e   : > { %v3217_v62 = vpop.permute.xlu0 %3216 }
 0xb7f   : > { %v3219_v63 = vunpack.i.h.bf16 %v3217_v62  ;;  %v3218_v1 = vunpack.i.l.bf16 %v3217_v62  ;;  %v2445_v62 = vld [vmem:[%s4658_s23 + $0x8] sm:$0xff] }
 0xb81   : > { %v2320_v36 = vsel %vm1657_vm15, %v2316_v3, %v3218_v1  ;;  %v2321_v0 = vsel %vm1657_vm15, %v2317_v2, %v3219_v63  ;;  %vm2396_vm15 = vcmask 1042432   ;;  %v2452_v63 = vpack.c.bf16 %v2445_v62, %v2444_v61 }
 0xb82   : > { %v2336_v43 = vpack.c.bf16 %v2321_v0, %v2320_v36 }
 0xb84   : > { %2865 = vmatmul.msk.bf16.vlgmr.msra.gmra.mxu2 %vm1686_vm2, %v2336_v43 }
 0xb94   : > { %2866 = vmatmul.msk.bf16.gmra.mxu2 %vm1686_vm2, %v2337_v58  ;;  %v2447_v58 = vld [vmem:[%s4658_s23 + $0x18] sm:$0xff] }
 0xb95   : > { %v2453_v60 = vpack.c.bf16 %v2447_v58, %v2446_v52 }
 0xb97   : > { %2471 = vmatpush.bf16.msrb.mxu3 %v2453_v60 }
 0xb9b   : > { %2472 = vmatpush.bf16.msrb.mxu3 %v2452_v63 }
 0xc07   : > { %v2363_v5 = vpop.f32.mrf.mxu2 }
 0xc08   : > { %v2364_v8 = vadd.f32 %v3250_v4, %v2363_v5 }
 0xc0a   : > { %v2377_v9 = vmul.f32 0.2, %v2364_v8  ;;  %vm2373_vm3 = vcmp.gt.f32.partialorder %v2364_v8, 0.0 }
 0xc0c   : > { %v2381_v56 = vsel %vm2373_vm3, %v2364_v8, %v2377_v9 }
 0xc0d   : > { %v2404_v37 = vrot.slane %v2381_v56, 5  ;;  %v2408_v39 = vrot.slane %v2381_v56, 1 }
 0xc0f   : > { %v2365_v10 = vpop.f32.mrf.mxu2 }
 0xc10   : > { %v2366_v11 = vadd.f32 %v3250_v4, %v2365_v10 }
 0xc12   : > { %vm2374_vm4 = vcmp.gt.f32.partialorder %v2366_v11, 0.0  ;;  %v2378_v13 = vmul.f32 0.2, %v2366_v11 }
 0xc14   : > { %v2382_v16 = vsel %vm2374_vm4, %v2366_v11, %v2378_v13 }
 0xc15   : > { %v2397_v17 = vrot.slane %v2382_v16, 5  ;;  %v2388_v27 = vrot.slane %v2382_v16, 1  ;;  %v2411_v34 = vrot.slane %v2382_v16, 2 }
 0xc17   : > { %v2368_v24 = vpop.f32.mrf.mxu2  ;;  %v2405_v25 = vsel %vm2396_vm15, %v2404_v37, %v2397_v17  ;;  %v2409_v45 = vsel %vm1189_vm0, %v2408_v39, %v2388_v27 }
 0xc18   : > { %v2369_v30 = vadd.f32 %v3250_v4, %v2368_v24  ;;  %2423 = vrot.lane.b32.xlu2 %v2405_v25, %s3863_s5  ;;  %v2495_v25 = vmul.u32 12, %v2158_v6  ;;  %v2496_v6 = vmul.u32 12, %v2159_v32 }
 0xc1a   : > { %vm2375_vm2 = vcmp.gt.f32.partialorder %v2369_v30, 0.0  ;;  %v2379_v31 = vmul.f32 0.2, %v2369_v30 }
 0xc1c   : > { %v2383_v33 = vsel %vm2375_vm2, %v2369_v30, %v2379_v31  ;;  %v3251_v30 = vld [vmem:[%s4659_s24] ss:$0 sm:$0xff] }
 0xc1d   : > { %v2389_v35 = vrot.slane %v2383_v33, 1  ;;  %v2412_v38 = vrot.slane %v2383_v33, 2  ;;  %v2398_v47 = vrot.slane %v2383_v33, 5  ;;  %v2498_v33 = vadd.s32 %v2495_v25, %v2156_v23 }
 0xc1f   : > { %v2370_v41 = vpop.f32.mrf.mxu2  ;;  %v2413_v42 = vsel %vm1238_vm1, %v2411_v34, %v2412_v38  ;;  %v2390_v14 = vsel %vm1189_vm0, %v2388_v27, %v2389_v35  ;;  %v2399_v53 = vsel %vm2396_vm15, %v2397_v17, %v2398_v47 }
 0xc20   : > { %v2371_v44 = vadd.f32 %v3250_v4, %v2370_v41  ;;  %v2417_v12 = vsel %vm2275_vm13, %v2388_v27, %v2413_v42  ;;  %v2395_v15 = vsel %vm2275_vm13, %v2382_v16, %v2390_v14  ;;  %v2492_v14 = vadd.s32 16, %v4470_v19 }
 0xc21   : > { %v3235_v21 = vpack.i.bf16 %v2417_v12, %v2409_v45 }
 0xc22   : > { %vm2376_vm5 = vcmp.gt.f32.partialorder %v2371_v44, 0.0  ;;  %v2380_v46 = vmul.f32 0.2, %v2371_v44  ;;  %v2493_v32 = vshra.s32 %v2492_v14, 1 }
 0xc23   : > { %3236 = vrot.lane.b32.xlu1 %v3235_v21, %s3864_s25  ;;  %v2494_v21 = vand.u32 1, %v2492_v14 }
 0xc24   : > { %v2384_v48 = vsel %vm2376_vm5, %v2371_v44, %v2380_v46 }
 0xc25   : > { %v2391_v49 = vrot.slane %v2384_v48, 1  ;;  %v2400_v50 = vrot.slane %v2384_v48, 5  ;;  %v2414_v26 = vrot.slane %v2384_v48, 2  ;;  %v2497_v46 = vmul.u32 12, %v2494_v21 }
 0xc27   : > { %v2401_v51 = vsel %vm2396_vm15, %v2398_v47, %v2400_v50  ;;  %v2392_v22 = vsel %vm1189_vm0, %v2389_v35, %v2391_v49  ;;  %v2415_v55 = vsel %vm1238_vm1, %v2412_v38, %v2414_v26  ;;  %v2500_v47 = vadd.s32 %v2497_v46, %v2493_v32 }
 0xc28   : > { %v2407_v20 = vsel %vm2275_vm13, %v2401_v51, %v2404_v37 }
 0xc29   : > { %v3230_v54 = vpack.i.bf16 %v2407_v20, %v2399_v53  ;;  %vm2503_vm8 = vcmp.eq.s32.totalorder %v4479_v29, %v2500_v47 }
 0xc2a   : > { %v2871_v48 = vsel %vm2503_vm8, 1.0, %v3867_v40 }
 0xc2b   : > { %3231 = vrot.lane.b32.xlu0 %v3230_v54, %s3863_s5 }
 0xc33   : > { %2433 = vrot.lane.b32.xlu0 %v2415_v55, %s3864_s25 }
 0xc72   : > { %v2424_v11 = vpop.permute.xlu2 %2423 }
 0xc73   : > { %v2440_v16 = vsel %vm1380_vm10, %v2392_v22, %v2424_v11 }
 0xc95   : > { %v3237_v1 = vpop.permute.xlu1 %3236 }
 0xc96   : > { %v3239_v0 = vunpack.i.h.bf16 %v3237_v1  ;;  %v3238_v43 = vunpack.i.l.bf16 %v3237_v1 }
 0xc9d   : > { %v3232_v2 = vpop.permute.xlu0 %3231 }
 0xc9e   : > { %v3234_v3 = vunpack.i.h.bf16 %v3232_v2  ;;  %v3233_v36 = vunpack.i.l.bf16 %v3232_v2 }
 0xca0   : > { %v2438_v4 = vsel %vm1380_vm10, %v2381_v56, %v3233_v36  ;;  %v2439_v5 = vsel %vm1380_vm10, %v2395_v15, %v3234_v3  ;;  %v2499_v15 = vadd.s32 %v2496_v6, %v2157_v7 }
 0xca1   : > { %v2441_v8 = vsel %vm1389_vm11, %v2438_v4, %v3238_v43  ;;  %v2442_v9 = vsel %vm1389_vm11, %v2439_v5, %v3239_v0 }
 0xca2   : > { %v2450_v10 = vpack.c.bf16 %v2442_v9, %v2441_v8  ;;  %vm2502_vm7 = vcmp.eq.s32.totalorder %v4479_v29, %v2499_v15 }
 0xca3   : > { %v2870_v19 = vsel %vm2502_vm7, 1.0, %v3867_v40 }
 0xca4   : > { %2867 = vmatmul.msk.bf16.vlgmr.msrb.gmra.mxu3 %vm1415_vm12, %v2450_v10 }
 0xca5   : > { %v2434_v13 = vpop.permute.xlu0 %2433 }
 0xca6   : > { %v2443_v17 = vsel %vm1389_vm11, %v2440_v16, %v2434_v13  ;;  %vm2501_vm11 = vcmp.eq.s32.totalorder %v4479_v29, %v2498_v33 }
 0xca7   : > { %v2451_v37 = vpack.c.bf16 %v2443_v17, %v2443_v17  ;;  %v2869_v23 = vsel %vm2501_vm11, 1.0, %v3867_v40  ;;  %v3253_v40 = vld [vmem:[#allocation4] ss:$0 sm:$0xff] }
 0xcb4   : > { %2868 = vmatmul.msk.bf16.gmra.mxu3 %vm1415_vm12, %v2451_v37 }
 0xd27   : > { %v2474_v24 = vpop.f32.mrf.mxu3 }
 0xd28   : > { %v2475_v34 = vadd.f32 %v3251_v30, %v2474_v24 }
 0xd2a   : > { %v2486_v41 = vmul.f32 0.2, %v2475_v34  ;;  %vm2483_vm12 = vcmp.gt.f32.partialorder %v2475_v34, 0.0 }
 0xd2c   : > { %v2489_v12 = vsel %vm2483_vm12, %v2475_v34, %v2486_v41 }
 0xd2f   : > { %v2476_v56 = vpop.f32.mrf.mxu3 }
 0xd30   : > { %v2477_v31 = vadd.f32 %v3251_v30, %v2476_v56 }
 0xd32   : > { %v2487_v38 = vmul.f32 0.2, %v2477_v31  ;;  %vm2484_vm1 = vcmp.gt.f32.partialorder %v2477_v31, 0.0 }
 0xd34   : > { %v2490_v44 = vsel %vm2484_vm1, %v2477_v31, %v2487_v38 }
 0xd37   : > { %v2479_v27 = vpop.f32.mrf.mxu3 }
 0xd38   : > { %v2480_v35 = vadd.f32 %v3251_v30, %v2479_v27 }
 0xd3a   : > { %vm2485_vm0 = vcmp.gt.f32.partialorder %v2480_v35, 0.0  ;;  %v2488_v39 = vmul.f32 0.2, %v2480_v35 }
 0xd3c   : > { %v2491_v42 = vsel %vm2485_vm0, %v2480_v35, %v2488_v39 }
 0xd3d   : > { %2533 = vmatpush.msra.mxu0 %v2491_v42 }
 0xd3f   : > { %v2481_v45 = vpop.f32.mrf.mxu3  ;;  %2534 = vmatpush.msra.mxu0 %v2490_v44 }
 0xd41   : > { %2535 = vmatpush.msra.mxu0 %v2489_v12 }
 0xd42   : > { %2872 = vmatmul.msk.f32.vlgmr.msra.gmra.mxu0 %vm2510_vm6, %v2869_v23 }
 0xd4a   : > { %2873 = vmatmul.msk.f32.gmra.mxu0 %vm2510_vm6, %v2870_v19 }
 0xd52   : > { %2874 = vmatmul.msk.f32.gmra.mxu0 %vm2510_vm6, %v2871_v48 }
 0xdbf   : > { %v2537_v7 = vpop.f32.mrf.mxu0 }
 0xdc0   : > { %v2551_v49 = vmul.f32 %v3252_v28, %v2537_v7 }
 0xdc2   : > { %v2554_v50 = vsel %vm1380_vm10, %v2551_v49, 0.0 }
 0xdc3   : > { %2555 = vadd.xlane.f32.xlu1 %v2554_v50 }
 0xdc7   : > { %v2540_v51 = vpop.f32.mrf.mxu0 }
 0xdc8   : > { %v2552_v22 = vmul.f32 %v3252_v28, %v2540_v51 }
 0xdca   : > { %v2557_v53 = vsel %vm1380_vm10, %v2552_v22, 0.0 }
 0xdcb   : > { %2558 = vadd.xlane.f32.xlu2 %v2557_v53 }
 0xdcf   : > { %v2543_v20 = vpop.f32.mrf.mxu0 }
 0xdd0   : > { %v2553_v29 = vmul.f32 %v3252_v28, %v2543_v20 }
 0xdd2   : > { %v2560_v54 = vsel %vm1380_vm10, %v2553_v29, 0.0 }
 0xdd3   : > { %2561 = vadd.xlane.f32.xlu0 %v2560_v54 }
 0xe36   : > { %v2556_v26 = vpop.xlane.xlu1 %2555 }
 0xe37   : > { %v2566_v55 = vadd.f32 %v3253_v40, %v2556_v26 }
 0xe39   : > { %2570 = vst.msk [vmem:[%s1100_s7] sm:$0xff] %vm2569_vm9, %v2566_v55 }
 0xe3e   : > { %v2559_v57 = vpop.xlane.xlu2 %2558 }
 0xe3f   : > { %v2567_v18 = vadd.f32 %v3253_v40, %v2559_v57 }
 0xe41   : > { %2571 = vst.msk [vmem:[%s1100_s7 + $0x8] sm:$0xff] %vm2569_vm9, %v2567_v18 }
 0xe46   : > { %v2562_v52 = vpop.xlane.xlu0 %2561 }
 0xe47   : > { %v2568_v59 = vadd.f32 %v3253_v40, %v2562_v52 }
 0xe49   : > { %2572 = vst.msk [vmem:[%s1100_s7 + $0x10] sm:$0xff] %vm2569_vm9, %v2568_v59 }
 0xe4a PF: > { %s4699_s9 = sld [smem:[#allocation43_spill]] }
 0xe50   : > { %s49_s8 = sadd.s32 1, %s4699_s9  }
 0xe51   : > { %p46_p7 = scmp.ge.s32.totalorder %s49_s8, 4  }
 0xe53   :  { %48 = sbr.rel (!%p46_p7) target bundleno = 27 (0x1b), region = 245 }
 0xe58   :  { %2594 = vsyncpa [#allocation6], 1 }
 0xe59   :  { %2596 = vsyncpa [#allocation6 + $0x1], 1 }
 0xe5a   :  { %2597 = vsyncpa [#allocation8], 1 }
 0xe5b   :  { %2598 = vsyncpa [#allocation11], 1 }
 0xe5c   :  { %2599 = vsyncpa [#allocation14], 1 }
 0xe5d   :  { %2600 = vsyncpa [#allocation17], 1 }
 0xe5e   :  { %2601 = vsyncpa [#allocation20], 1 }
 0xe5f   :  { %2602 = vsyncpa [#allocation23], 1 }
 0xe60   :  { %2603 = vsyncpa [#allocation26], 1 }
 0xe61   :  { %2604 = vsyncpa [#allocation29], 1 }
 0xe62   :  { %2605 = vsyncpa [#allocation32], 1 }

</bundles_post_ra>
